<compile_context>
chip_gen: v5e
topology: v5e:2x2
jax: 0.10.0
libtpu: 0.0.40
codegen_flags: <defaults>
</compile_context>

<pallas_src>
import math

import jax
import jax.numpy as jnp
from jax import lax
from jax.experimental import pallas as pl
from jax.experimental.pallas import tpu as pltpu

INF = 10000000000.0
EPS = 1e-6


# ----------------------------------------------------------------------------
# Fused DecoderLayer kernel
# ----------------------------------------------------------------------------
def make_decoder_layer_kernel(b_block, T, S, D, H, n_heads):
    dh = D // n_heads
    BT = b_block * T
    BS = b_block * S
    inv_scale = 1.0 / math.sqrt(D)  # module uses sqrt(d_model), not sqrt(d_head)

    def layer_norm(y, gamma, beta):
        # torch-style custom LayerNorm: unbiased std, eps added OUTSIDE sqrt.
        mean = jnp.mean(y, axis=-1, keepdims=True)
        var = jnp.sum((y - mean) ** 2, axis=-1, keepdims=True) * (1.0 / (D - 1))
        std = jnp.sqrt(var)
        return gamma * (y - mean) * pl.reciprocal(std + EPS, approx=True) + beta

    def attention(q, k, v, wo_ref, Tq, Sk, causal, pv_scratch):
        # q: (b_block*Tq, D) f32, already scaled by 1/sqrt(D).
        # k, v: (b_block*Sk, D) f32.  Heads are lane-contiguous slices of D.
        qb = q.astype(jnp.bfloat16)
        kb = k.astype(jnp.bfloat16)
        vb = v.astype(jnp.bfloat16)

        mask_sub = None
        if causal:
            # Built once, shared across batch/head iterations.  Mask applies to
            # the pre-scaled scores, so the constant is INF/scale; exp of it
            # still underflows to exactly 0.
            ri = lax.broadcasted_iota(jnp.int32, (Tq, Sk), 0)
            ci = lax.broadcasted_iota(jnp.int32, (Tq, Sk), 1)
            mask_sub = jnp.where(ci > ri, jnp.float32(INF * inv_scale),
                                 jnp.float32(0.0))

        # Per-(batch, head) softmax: scores stay (Tq, Sk).  b_block / n_heads
        # are small here so the static unrolled loop is fine.
        # TODO(synk): convert to lax.fori_loop if n_heads/b_block grow (vregs).
        for b in range(b_block):
            q_b = qb[b * Tq:(b + 1) * Tq]
            k_b = kb[b * Sk:(b + 1) * Sk]
            v_b = vb[b * Sk:(b + 1) * Sk]
            for h in range(n_heads):
                sl = slice(h * dh, (h + 1) * dh)
                # Contract the last axes directly: no materialized k.T.
                s = lax.dot_general(
                    q_b[:, sl], k_b[:, sl],
                    dimension_numbers=(((1,), (1,)), ((), ())),
                    preferred_element_type=jnp.float32)        # (Tq, Sk) f32
                if causal:
                    s = s - mask_sub
                m = jnp.max(s, axis=-1, keepdims=True)
                e = jnp.exp(s - m)
                p = e * pl.reciprocal(jnp.sum(e, axis=-1, keepdims=True),
                                      approx=True)
                pv = jnp.dot(p.astype(jnp.bfloat16), v_b[:, sl],
                             preferred_element_type=jnp.float32)  # (Tq, dh)
                # Stage head output at its lane offset -> one K=D Wo matmul.
                pv_scratch[b * Tq:(b + 1) * Tq, h * dh:(h + 1) * dh] = pv
        return jnp.dot(pv_scratch[...].astype(jnp.bfloat16), wo_ref[...],
                       preferred_element_type=jnp.float32)        # (BTq, D)

    def kernel(x_ref, enc_ref,
               sa_wqkv, sa_wo, sa_g, sa_b,
               ca_wq, ca_wkv, ca_wo, ca_g, ca_b,
               ff_w1, ff_b1, ff_w2, ff_b2, ff_g, ff_b,
               o_ref, pv_scratch):
        # Fold batch into the matmul M dimension (leading-dim reshape is free).
        x = x_ref[...].reshape(BT, D)       # bf16 (b_block*T, D)
        enc = enc_ref[...].reshape(BS, D)   # bf16 (b_block*S, D)

        # --- self-attention residual block (causal): fused QKV projection ---
        qkv = jnp.dot(x, sa_wqkv[...], preferred_element_type=jnp.float32)
        q = qkv[:, :D] * inv_scale           # 1/sqrt(D) folded into q once
        k = qkv[:, D:2 * D]
        v = qkv[:, 2 * D:]
        sa_out = attention(q, k, v, sa_wo, T, T, True, pv_scratch)
        x1 = layer_norm(x.astype(jnp.float32) + sa_out, sa_g[...], sa_b[...])

        # --- cross-attention residual block: fused K|V projection on enc ---
        q2 = jnp.dot(x1.astype(jnp.bfloat16), ca_wq[...],
                     preferred_element_type=jnp.float32) * inv_scale
        kv2 = jnp.dot(enc, ca_wkv[...], preferred_element_type=jnp.float32)
        ca_out = attention(q2, kv2[:, :D], kv2[:, D:], ca_wo, T, S, False,
                           pv_scratch)
        x2 = layer_norm(x1 + ca_out, ca_g[...], ca_b[...])

        # --- feed-forward residual block ---
        h = jnp.dot(x2.astype(jnp.bfloat16), ff_w1[...],
                    preferred_element_type=jnp.float32) + ff_b1[...]
        h = jnp.maximum(h, 0.0)
        f = jnp.dot(h.astype(jnp.bfloat16), ff_w2[...],
                    preferred_element_type=jnp.float32) + ff_b2[...]
        x3 = layer_norm(x2 + f, ff_g[...], ff_b[...])

        o_ref[...] = x3.reshape(b_block, T, D).astype(o_ref.dtype)

    return kernel


# ----------------------------------------------------------------------------
# One-time parameter preparation (weight fusion + bf16 casts hoisted here)
# ----------------------------------------------------------------------------
def prepare_decoder_params(params):
    bf = lambda a: a.astype(jnp.bfloat16)
    return {
        "sa_wqkv": bf(jnp.concatenate(
            [params["sa_wq"], params["sa_wk"], params["sa_wv"]], axis=1)),
        "sa_wo": bf(params["sa_wo"]),
        "sa_gamma": params["sa_gamma"], "sa_beta": params["sa_beta"],
        "ca_wq": bf(params["ca_wq"]),
        "ca_wkv": bf(jnp.concatenate(
            [params["ca_wk"], params["ca_wv"]], axis=1)),
        "ca_wo": bf(params["ca_wo"]),
        "ca_gamma": params["ca_gamma"], "ca_beta": params["ca_beta"],
        "ff_w1": bf(params["ff_w1"]), "ff_b1": params["ff_b1"],
        "ff_w2": bf(params["ff_w2"]), "ff_b2": params["ff_b2"],
        "ff_gamma": params["ff_gamma"], "ff_beta": params["ff_beta"],
    }


# ----------------------------------------------------------------------------
# Pallas wrapper: single fused pallas_call over grid=(B // b_block,)
# ----------------------------------------------------------------------------
def decoder_layer(p, x, encoding, *, n_heads, b_block=None):
    B, T, D = x.shape
    S = encoding.shape[1]
    H = p["ff_w1"].shape[1]
    if b_block is None:
        b_block = B
    assert B % b_block == 0, "B must be divisible by b_block"
    grid = (B // b_block,)

    # Activations to bf16 at the boundary: halves activation DMA into the
    # kernel (weights are already bf16 from prepare_decoder_params).
    x_bf = x.astype(jnp.bfloat16)
    enc_bf = encoding.astype(jnp.bfloat16)

    kernel = make_decoder_layer_kernel(b_block, T, S, D, H, n_heads)
    wspec = lambda shp: pl.BlockSpec(shp, lambda g: (0, 0))

    # Advisory cost estimate so XLA schedules neighbouring ops around the call.
    flops = int(2 * B * (
        T * D * 3 * D + 2 * T * T * D + T * D * D            # self-attention
        + T * D * D + S * D * 2 * D + 2 * T * S * D + T * D * D  # cross-attn
        + T * D * H + T * H * D))                              # feed-forward
    transcendentals = int(B * (T * T + T * S))
    bytes_accessed = int(
        2 * (B * T * D + B * S * D) + 4 * B * T * D            # acts in/out
        + 2 * (3 * D * D + D * D + D * D + 2 * D * D + D * D   # bf16 weights
               + D * H + H * D)
        + 4 * (7 * D + H))                                      # f32 LN/bias

    return pl.pallas_call(
        kernel,
        out_shape=jax.ShapeDtypeStruct((B, T, D), jnp.float32),
        grid=grid,
        in_specs=[
            pl.BlockSpec((b_block, T, D), lambda g: (g, 0, 0)),   # x
            pl.BlockSpec((b_block, S, D), lambda g: (g, 0, 0)),   # encoding
            # self-attention: fused QKV, Wo, LN params
            wspec((D, 3 * D)), wspec((D, D)), wspec((1, D)), wspec((1, D)),
            # cross-attention: Wq, fused KV, Wo, LN params
            wspec((D, D)), wspec((D, 2 * D)), wspec((D, D)),
            wspec((1, D)), wspec((1, D)),
            # feed-forward: W1/b1, W2/b2, LN params
            wspec((D, H)), wspec((1, H)), wspec((H, D)),
            wspec((1, D)), wspec((1, D)), wspec((1, D)),
        ],
        out_specs=pl.BlockSpec((b_block, T, D), lambda g: (g, 0, 0)),
        scratch_shapes=[pltpu.VMEM((b_block * T, D), jnp.float32)],
        compiler_params=pltpu.CompilerParams(
            dimension_semantics=("parallel",),
            vmem_limit_bytes=64 * 1024 * 1024),
        cost_estimate=pl.CostEstimate(flops=flops,
                                      transcendentals=transcendentals,
                                      bytes_accessed=bytes_accessed),
    )(x_bf, enc_bf,
      p["sa_wqkv"], p["sa_wo"], p["sa_gamma"], p["sa_beta"],
      p["ca_wq"], p["ca_wkv"], p["ca_wo"], p["ca_gamma"], p["ca_beta"],
      p["ff_w1"], p["ff_b1"], p["ff_w2"], p["ff_b2"], p["ff_gamma"], p["ff_beta"])


# ----------------------------------------------------------------------------
# Pure-JAX reference (mirrors the PyTorch module exactly, dropout = identity)
# ----------------------------------------------------------------------------
def _layernorm_ref(y, gamma, beta):
    mean = jnp.mean(y, axis=-1, keepdims=True)
    std = jnp.sqrt(jnp.sum((y - mean) ** 2, axis=-1, keepdims=True)
                   / (y.shape[-1] - 1))
    return gamma[0] * (y - mean) / (std + EPS) + beta[0]


def _mha_ref(q_in, kv_in, wq, wk, wv, wo, n_heads, causal):
    D = q_in.shape[-1]
    dh = D // n_heads
    scale = math.sqrt(D)
    q, k, v = q_in @ wq, kv_in @ wk, kv_in @ wv
    outs = []
    for h in range(n_heads):
        qh, kh, vh = (t[..., h * dh:(h + 1) * dh] for t in (q, k, v))
        s = jnp.einsum("btd,bsd->bts", qh, kh)
        if causal:
            T, S = s.shape[-2:]
            mask = jnp.triu(jnp.ones((T, S), jnp.float32), 1) * INF
            s = s - mask[None]
        p = jax.nn.softmax(s / scale, axis=-1)
        outs.append(jnp.einsum("bts,bsd->btd", p, vh))
    return jnp.concatenate(outs, axis=-1) @ wo


def decoder_layer_ref(params, x, encoding, *, n_heads):
    p = params
    x = _layernorm_ref(x + _mha_ref(x, x, p["sa_wq"], p["sa_wk"], p["sa_wv"],
                                    p["sa_wo"], n_heads, True),
                       p["sa_gamma"], p["sa_beta"])
    x = _layernorm_ref(x + _mha_ref(x, encoding, p["ca_wq"], p["ca_wk"],
                                    p["ca_wv"], p["ca_wo"], n_heads, False),
                       p["ca_gamma"], p["ca_beta"])
    h = jnp.maximum(x @ p["ff_w1"] + p["ff_b1"][0], 0.0)
    f = h @ p["ff_w2"] + p["ff_b2"][0]
    return _layernorm_ref(x + f, p["ff_gamma"], p["ff_beta"])


# ----------------------------------------------------------------------------
# Deterministic parameter init
# ----------------------------------------------------------------------------
def init_params(key, d_model, d_hidden):
    ks = iter(jax.random.split(key, 16))

    def w(shape, scale=0.05):
        return jax.random.normal(next(ks), shape, jnp.float32) * scale

    return {
        # self-attention
        "sa_wq": w((d_model, d_model)), "sa_wk": w((d_model, d_model)),
        "sa_wv": w((d_model, d_model)), "sa_wo": w((d_model, d_model)),
        "sa_gamma": jnp.ones((1, d_model), jnp.float32),
        "sa_beta": jnp.zeros((1, d_model), jnp.float32),
        # cross-attention
        "ca_wq": w((d_model, d_model)), "ca_wk": w((d_model, d_model)),
        "ca_wv": w((d_model, d_model)), "ca_wo": w((d_model, d_model)),
        "ca_gamma": jnp.ones((1, d_model), jnp.float32),
        "ca_beta": jnp.zeros((1, d_model), jnp.float32),
        # feed-forward
        "ff_w1": w((d_model, d_hidden)), "ff_b1": w((1, d_hidden)),
        "ff_w2": w((d_hidden, d_model)), "ff_b2": w((1, d_model)),
        "ff_gamma": jnp.ones((1, d_model), jnp.float32),
        "ff_beta": jnp.zeros((1, d_model), jnp.float32),
    }


# ----------------------------------------------------------------------------
if __name__ == "__main__":
    # Small but lane-dense shapes: d_model = 128 (one full lane tile).
    B, T, S, D, H, n_heads = 2, 8, 16, 128, 256, 4

    key = jax.random.PRNGKey(0)
    k_p, k_x, k_e = jax.random.split(key, 3)
    params = init_params(k_p, D, H)
    x = jax.random.normal(k_x, (B, T, D), jnp.float32)
    encoding = jax.random.normal(k_e, (B, S, D), jnp.float32)

    prepared = prepare_decoder_params(params)   # one-time fuse + bf16 cast
    out = decoder_layer(prepared, x, encoding, n_heads=n_heads)
    out = jax.block_until_ready(out)

    ref = decoder_layer_ref(params, x, encoding, n_heads=n_heads)
    assert out.shape == (B, T, D)
    # bf16 MXU inputs/activations + approx reciprocals -> compare at a
    # bf16-appropriate tolerance against the f32 reference.
    assert jnp.allclose(out, ref, atol=5e-2, rtol=5e-2), "mismatch vs reference"

    print("KERNEL_OK")
</pallas_src>

<mosaic_0001>
module attributes {stable_mosaic.version = 11 : i64} {
  func.func @kernel(%arg0: i32, %arg1: memref<2x8x128xbf16, #tpu.memory_space<vmem>>, %arg2: memref<2x16x128xbf16, #tpu.memory_space<vmem>>, %arg3: memref<128x384xbf16, #tpu.memory_space<vmem>>, %arg4: memref<128x128xbf16, #tpu.memory_space<vmem>>, %arg5: memref<1x128xf32, #tpu.memory_space<vmem>>, %arg6: memref<1x128xf32, #tpu.memory_space<vmem>>, %arg7: memref<128x128xbf16, #tpu.memory_space<vmem>>, %arg8: memref<128x256xbf16, #tpu.memory_space<vmem>>, %arg9: memref<128x128xbf16, #tpu.memory_space<vmem>>, %arg10: memref<1x128xf32, #tpu.memory_space<vmem>>, %arg11: memref<1x128xf32, #tpu.memory_space<vmem>>, %arg12: memref<128x256xbf16, #tpu.memory_space<vmem>>, %arg13: memref<1x256xf32, #tpu.memory_space<vmem>>, %arg14: memref<256x128xbf16, #tpu.memory_space<vmem>>, %arg15: memref<1x128xf32, #tpu.memory_space<vmem>>, %arg16: memref<1x128xf32, #tpu.memory_space<vmem>>, %arg17: memref<1x128xf32, #tpu.memory_space<vmem>>, %arg18: memref<2x8x128xf32, #tpu.memory_space<vmem>>, %arg19: memref<16x128xf32, #tpu.memory_space<vmem>>) attributes {dimension_semantics = [#tpu.dimension_semantics<parallel>], iteration_bounds = array<i64: 1>, scalar_prefetch = 0 : i64, scratch_operands = 1 : i64, tpu.core_type = #tpu.core_type<tc>, window_params = [{transform_indices = @transform_0, window_bounds = array<i64: 2, 8, 128>}, {transform_indices = @transform_1, window_bounds = array<i64: 2, 16, 128>}, {pipeline_mode = #tpu.pipeline_mode<synchronous>, transform_indices = @transform_2, window_bounds = array<i64: 128, 384>}, {pipeline_mode = #tpu.pipeline_mode<synchronous>, transform_indices = @transform_3, window_bounds = array<i64: 128, 128>}, {pipeline_mode = #tpu.pipeline_mode<synchronous>, transform_indices = @transform_4, window_bounds = array<i64: 1, 128>}, {pipeline_mode = #tpu.pipeline_mode<synchronous>, transform_indices = @transform_5, window_bounds = array<i64: 1, 128>}, {pipeline_mode = #tpu.pipeline_mode<synchronous>, transform_indices = @transform_6, window_bounds = array<i64: 128, 128>}, {pipeline_mode = #tpu.pipeline_mode<synchronous>, transform_indices = @transform_7, window_bounds = array<i64: 128, 256>}, {pipeline_mode = #tpu.pipeline_mode<synchronous>, transform_indices = @transform_8, window_bounds = array<i64: 128, 128>}, {pipeline_mode = #tpu.pipeline_mode<synchronous>, transform_indices = @transform_9, window_bounds = array<i64: 1, 128>}, {pipeline_mode = #tpu.pipeline_mode<synchronous>, transform_indices = @transform_10, window_bounds = array<i64: 1, 128>}, {pipeline_mode = #tpu.pipeline_mode<synchronous>, transform_indices = @transform_11, window_bounds = array<i64: 128, 256>}, {pipeline_mode = #tpu.pipeline_mode<synchronous>, transform_indices = @transform_12, window_bounds = array<i64: 1, 256>}, {pipeline_mode = #tpu.pipeline_mode<synchronous>, transform_indices = @transform_13, window_bounds = array<i64: 256, 128>}, {pipeline_mode = #tpu.pipeline_mode<synchronous>, transform_indices = @transform_14, window_bounds = array<i64: 1, 128>}, {pipeline_mode = #tpu.pipeline_mode<synchronous>, transform_indices = @transform_15, window_bounds = array<i64: 1, 128>}, {pipeline_mode = #tpu.pipeline_mode<synchronous>, transform_indices = @transform_16, window_bounds = array<i64: 1, 128>}, {transform_indices = @transform_17, window_bounds = array<i64: 2, 8, 128>}]} {
    %c0 = arith.constant 0 : index
    %c0_0 = arith.constant 0 : index
    %c0_1 = arith.constant 0 : index
    %0 = vector.load %arg1[%c0, %c0_0, %c0_1] : memref<2x8x128xbf16, #tpu.memory_space<vmem>>, vector<2x8x128xbf16>
    %1 = vector.shape_cast %0 : vector<2x8x128xbf16> to vector<16x128xbf16>
    %c0_2 = arith.constant 0 : index
    %c0_3 = arith.constant 0 : index
    %c0_4 = arith.constant 0 : index
    %2 = vector.load %arg2[%c0_2, %c0_3, %c0_4] : memref<2x16x128xbf16, #tpu.memory_space<vmem>>, vector<2x16x128xbf16>
    %3 = vector.shape_cast %2 : vector<2x16x128xbf16> to vector<32x128xbf16>
    %c0_5 = arith.constant 0 : index
    %c0_6 = arith.constant 0 : index
    %4 = vector.load %arg3[%c0_5, %c0_6] : memref<128x384xbf16, #tpu.memory_space<vmem>>, vector<128x384xbf16>
    %cst = arith.constant dense<0.000000e+00> : vector<16x384xf32>
    %5 = tpu.matmul %1, %4, %cst {dimension_numbers = #tpu.dot_dimension_numbers<[1], [0], [0], [1], [0, 0, 1, 1], [], []>} : vector<16x128xbf16>, vector<128x384xbf16>, vector<16x384xf32> -> vector<16x384xf32>
    %6 = vector.extract_strided_slice %5 {offsets = [0, 0], sizes = [16, 128], strides = [1, 1]} : vector<16x384xf32> to vector<16x128xf32>
    %cst_7 = arith.constant 0.0883883461 : f32
    %7 = vector.broadcast %cst_7 : f32 to vector<16x128xf32>
    %8 = arith.mulf %6, %7 : vector<16x128xf32>
    %9 = vector.extract_strided_slice %5 {offsets = [0, 128], sizes = [16, 128], strides = [1, 1]} : vector<16x384xf32> to vector<16x128xf32>
    %10 = vector.extract_strided_slice %5 {offsets = [0, 256], sizes = [16, 128], strides = [1, 1]} : vector<16x384xf32> to vector<16x128xf32>
    %11 = arith.truncf %8 : vector<16x128xf32> to vector<16x128xbf16>
    %12 = arith.truncf %9 : vector<16x128xf32> to vector<16x128xbf16>
    %13 = arith.truncf %10 : vector<16x128xf32> to vector<16x128xbf16>
    %14 = tpu.iota {dimensions = array<i32: 0>} : vector<8x8xi32>
    %15 = tpu.iota {dimensions = array<i32: 1>} : vector<8x8xi32>
    %16 = arith.cmpi sgt, %15, %14 : vector<8x8xi32>
    %cst_8 = arith.constant 0x4E52BBF7 : f32
    %cst_9 = arith.constant 0.000000e+00 : f32
    %17 = vector.broadcast %cst_8 : f32 to vector<8x8xf32>
    %18 = vector.broadcast %cst_9 : f32 to vector<8x8xf32>
    %19 = arith.select %16, %17, %18 : vector<8x8xi1>, vector<8x8xf32>
    %20 = vector.extract_strided_slice %11 {offsets = [0, 0], sizes = [8, 128], strides = [1, 1]} : vector<16x128xbf16> to vector<8x128xbf16>
    %21 = vector.extract_strided_slice %12 {offsets = [0, 0], sizes = [8, 128], strides = [1, 1]} : vector<16x128xbf16> to vector<8x128xbf16>
    %22 = vector.extract_strided_slice %13 {offsets = [0, 0], sizes = [8, 128], strides = [1, 1]} : vector<16x128xbf16> to vector<8x128xbf16>
    %23 = vector.extract_strided_slice %20 {offsets = [0, 0], sizes = [8, 32], strides = [1, 1]} : vector<8x128xbf16> to vector<8x32xbf16>
    %24 = vector.extract_strided_slice %21 {offsets = [0, 0], sizes = [8, 32], strides = [1, 1]} : vector<8x128xbf16> to vector<8x32xbf16>
    %cst_10 = arith.constant dense<0.000000e+00> : vector<8x8xf32>
    %25 = tpu.matmul %23, %24, %cst_10 {dimension_numbers = #tpu.dot_dimension_numbers<[1], [1], [0], [0], [0, 0, 1, 0], [], []>} : vector<8x32xbf16>, vector<8x32xbf16>, vector<8x8xf32> -> vector<8x8xf32>
    %26 = arith.subf %25, %19 : vector<8x8xf32>
    %cst_11 = arith.constant dense<0xFF800000> : vector<8xf32>
    %27 = vector.multi_reduction <maximumf>, %26, %cst_11 [1] : vector<8x8xf32> to vector<8xf32>
    %28 = vector.shape_cast %27 : vector<8xf32> to vector<8x1xf32>
    %29 = vector.broadcast %28 : vector<8x1xf32> to vector<8x8xf32>
    %30 = arith.subf %26, %29 : vector<8x8xf32>
    %31 = math.exp %30 : vector<8x8xf32>
    %cst_12 = arith.constant dense<0.000000e+00> : vector<8xf32>
    %32 = vector.multi_reduction <add>, %31, %cst_12 [1] : vector<8x8xf32> to vector<8xf32>
    %33 = vector.shape_cast %32 : vector<8xf32> to vector<8x1xf32>
    %34 = tpu.reciprocal %33 {approx = true} : vector<8x1xf32> -> vector<8x1xf32>
    %35 = vector.broadcast %34 : vector<8x1xf32> to vector<8x8xf32>
    %36 = arith.mulf %31, %35 : vector<8x8xf32>
    %37 = arith.truncf %36 : vector<8x8xf32> to vector<8x8xbf16>
    %38 = vector.extract_strided_slice %22 {offsets = [0, 0], sizes = [8, 32], strides = [1, 1]} : vector<8x128xbf16> to vector<8x32xbf16>
    %cst_13 = arith.constant dense<0.000000e+00> : vector<8x32xf32>
    %39 = tpu.matmul %37, %38, %cst_13 {dimension_numbers = #tpu.dot_dimension_numbers<[1], [0], [0], [1], [0, 0, 1, 1], [], []>} : vector<8x8xbf16>, vector<8x32xbf16>, vector<8x32xf32> -> vector<8x32xf32>
    %c0_14 = arith.constant 0 : index
    %c0_15 = arith.constant 0 : index
    %40 = vector.load %arg19[%c0_14, %c0_15] : memref<16x128xf32, #tpu.memory_space<vmem>>, vector<8x32xf32>
    tpu.vector_store %arg19[%c0_14, %c0_15], %39 {strides = array<i32>} : memref<16x128xf32, #tpu.memory_space<vmem>>, vector<8x32xf32>,
    %41 = vector.extract_strided_slice %20 {offsets = [0, 32], sizes = [8, 32], strides = [1, 1]} : vector<8x128xbf16> to vector<8x32xbf16>
    %42 = vector.extract_strided_slice %21 {offsets = [0, 32], sizes = [8, 32], strides = [1, 1]} : vector<8x128xbf16> to vector<8x32xbf16>
    %cst_16 = arith.constant dense<0.000000e+00> : vector<8x8xf32>
    %43 = tpu.matmul %41, %42, %cst_16 {dimension_numbers = #tpu.dot_dimension_numbers<[1], [1], [0], [0], [0, 0, 1, 0], [], []>} : vector<8x32xbf16>, vector<8x32xbf16>, vector<8x8xf32> -> vector<8x8xf32>
    %44 = arith.subf %43, %19 : vector<8x8xf32>
    %cst_17 = arith.constant dense<0xFF800000> : vector<8xf32>
    %45 = vector.multi_reduction <maximumf>, %44, %cst_17 [1] : vector<8x8xf32> to vector<8xf32>
    %46 = vector.shape_cast %45 : vector<8xf32> to vector<8x1xf32>
    %47 = vector.broadcast %46 : vector<8x1xf32> to vector<8x8xf32>
    %48 = arith.subf %44, %47 : vector<8x8xf32>
    %49 = math.exp %48 : vector<8x8xf32>
    %cst_18 = arith.constant dense<0.000000e+00> : vector<8xf32>
    %50 = vector.multi_reduction <add>, %49, %cst_18 [1] : vector<8x8xf32> to vector<8xf32>
    %51 = vector.shape_cast %50 : vector<8xf32> to vector<8x1xf32>
    %52 = tpu.reciprocal %51 {approx = true} : vector<8x1xf32> -> vector<8x1xf32>
    %53 = vector.broadcast %52 : vector<8x1xf32> to vector<8x8xf32>
    %54 = arith.mulf %49, %53 : vector<8x8xf32>
    %55 = arith.truncf %54 : vector<8x8xf32> to vector<8x8xbf16>
    %56 = vector.extract_strided_slice %22 {offsets = [0, 32], sizes = [8, 32], strides = [1, 1]} : vector<8x128xbf16> to vector<8x32xbf16>
    %cst_19 = arith.constant dense<0.000000e+00> : vector<8x32xf32>
    %57 = tpu.matmul %55, %56, %cst_19 {dimension_numbers = #tpu.dot_dimension_numbers<[1], [0], [0], [1], [0, 0, 1, 1], [], []>} : vector<8x8xbf16>, vector<8x32xbf16>, vector<8x32xf32> -> vector<8x32xf32>
    %c0_20 = arith.constant 0 : index
    %c32 = arith.constant 32 : index
    %58 = vector.load %arg19[%c0_20, %c32] : memref<16x128xf32, #tpu.memory_space<vmem>>, vector<8x32xf32>
    tpu.vector_store %arg19[%c0_20, %c32], %57 {strides = array<i32>} : memref<16x128xf32, #tpu.memory_space<vmem>>, vector<8x32xf32>,
    %59 = vector.extract_strided_slice %20 {offsets = [0, 64], sizes = [8, 32], strides = [1, 1]} : vector<8x128xbf16> to vector<8x32xbf16>
    %60 = vector.extract_strided_slice %21 {offsets = [0, 64], sizes = [8, 32], strides = [1, 1]} : vector<8x128xbf16> to vector<8x32xbf16>
    %cst_21 = arith.constant dense<0.000000e+00> : vector<8x8xf32>
    %61 = tpu.matmul %59, %60, %cst_21 {dimension_numbers = #tpu.dot_dimension_numbers<[1], [1], [0], [0], [0, 0, 1, 0], [], []>} : vector<8x32xbf16>, vector<8x32xbf16>, vector<8x8xf32> -> vector<8x8xf32>
    %62 = arith.subf %61, %19 : vector<8x8xf32>
    %cst_22 = arith.constant dense<0xFF800000> : vector<8xf32>
    %63 = vector.multi_reduction <maximumf>, %62, %cst_22 [1] : vector<8x8xf32> to vector<8xf32>
    %64 = vector.shape_cast %63 : vector<8xf32> to vector<8x1xf32>
    %65 = vector.broadcast %64 : vector<8x1xf32> to vector<8x8xf32>
    %66 = arith.subf %62, %65 : vector<8x8xf32>
    %67 = math.exp %66 : vector<8x8xf32>
    %cst_23 = arith.constant dense<0.000000e+00> : vector<8xf32>
    %68 = vector.multi_reduction <add>, %67, %cst_23 [1] : vector<8x8xf32> to vector<8xf32>
    %69 = vector.shape_cast %68 : vector<8xf32> to vector<8x1xf32>
    %70 = tpu.reciprocal %69 {approx = true} : vector<8x1xf32> -> vector<8x1xf32>
    %71 = vector.broadcast %70 : vector<8x1xf32> to vector<8x8xf32>
    %72 = arith.mulf %67, %71 : vector<8x8xf32>
    %73 = arith.truncf %72 : vector<8x8xf32> to vector<8x8xbf16>
    %74 = vector.extract_strided_slice %22 {offsets = [0, 64], sizes = [8, 32], strides = [1, 1]} : vector<8x128xbf16> to vector<8x32xbf16>
    %cst_24 = arith.constant dense<0.000000e+00> : vector<8x32xf32>
    %75 = tpu.matmul %73, %74, %cst_24 {dimension_numbers = #tpu.dot_dimension_numbers<[1], [0], [0], [1], [0, 0, 1, 1], [], []>} : vector<8x8xbf16>, vector<8x32xbf16>, vector<8x32xf32> -> vector<8x32xf32>
    %c0_25 = arith.constant 0 : index
    %c64 = arith.constant 64 : index
    %76 = vector.load %arg19[%c0_25, %c64] : memref<16x128xf32, #tpu.memory_space<vmem>>, vector<8x32xf32>
    tpu.vector_store %arg19[%c0_25, %c64], %75 {strides = array<i32>} : memref<16x128xf32, #tpu.memory_space<vmem>>, vector<8x32xf32>,
    %77 = vector.extract_strided_slice %20 {offsets = [0, 96], sizes = [8, 32], strides = [1, 1]} : vector<8x128xbf16> to vector<8x32xbf16>
    %78 = vector.extract_strided_slice %21 {offsets = [0, 96], sizes = [8, 32], strides = [1, 1]} : vector<8x128xbf16> to vector<8x32xbf16>
    %cst_26 = arith.constant dense<0.000000e+00> : vector<8x8xf32>
    %79 = tpu.matmul %77, %78, %cst_26 {dimension_numbers = #tpu.dot_dimension_numbers<[1], [1], [0], [0], [0, 0, 1, 0], [], []>} : vector<8x32xbf16>, vector<8x32xbf16>, vector<8x8xf32> -> vector<8x8xf32>
    %80 = arith.subf %79, %19 : vector<8x8xf32>
    %cst_27 = arith.constant dense<0xFF800000> : vector<8xf32>
    %81 = vector.multi_reduction <maximumf>, %80, %cst_27 [1] : vector<8x8xf32> to vector<8xf32>
    %82 = vector.shape_cast %81 : vector<8xf32> to vector<8x1xf32>
    %83 = vector.broadcast %82 : vector<8x1xf32> to vector<8x8xf32>
    %84 = arith.subf %80, %83 : vector<8x8xf32>
    %85 = math.exp %84 : vector<8x8xf32>
    %cst_28 = arith.constant dense<0.000000e+00> : vector<8xf32>
    %86 = vector.multi_reduction <add>, %85, %cst_28 [1] : vector<8x8xf32> to vector<8xf32>
    %87 = vector.shape_cast %86 : vector<8xf32> to vector<8x1xf32>
    %88 = tpu.reciprocal %87 {approx = true} : vector<8x1xf32> -> vector<8x1xf32>
    %89 = vector.broadcast %88 : vector<8x1xf32> to vector<8x8xf32>
    %90 = arith.mulf %85, %89 : vector<8x8xf32>
    %91 = arith.truncf %90 : vector<8x8xf32> to vector<8x8xbf16>
    %92 = vector.extract_strided_slice %22 {offsets = [0, 96], sizes = [8, 32], strides = [1, 1]} : vector<8x128xbf16> to vector<8x32xbf16>
    %cst_29 = arith.constant dense<0.000000e+00> : vector<8x32xf32>
    %93 = tpu.matmul %91, %92, %cst_29 {dimension_numbers = #tpu.dot_dimension_numbers<[1], [0], [0], [1], [0, 0, 1, 1], [], []>} : vector<8x8xbf16>, vector<8x32xbf16>, vector<8x32xf32> -> vector<8x32xf32>
    %c0_30 = arith.constant 0 : index
    %c96 = arith.constant 96 : index
    %94 = vector.load %arg19[%c0_30, %c96] : memref<16x128xf32, #tpu.memory_space<vmem>>, vector<8x32xf32>
    tpu.vector_store %arg19[%c0_30, %c96], %93 {strides = array<i32>} : memref<16x128xf32, #tpu.memory_space<vmem>>, vector<8x32xf32>,
    %95 = vector.extract_strided_slice %11 {offsets = [8, 0], sizes = [8, 128], strides = [1, 1]} : vector<16x128xbf16> to vector<8x128xbf16>
    %96 = vector.extract_strided_slice %12 {offsets = [8, 0], sizes = [8, 128], strides = [1, 1]} : vector<16x128xbf16> to vector<8x128xbf16>
    %97 = vector.extract_strided_slice %13 {offsets = [8, 0], sizes = [8, 128], strides = [1, 1]} : vector<16x128xbf16> to vector<8x128xbf16>
    %98 = vector.extract_strided_slice %95 {offsets = [0, 0], sizes = [8, 32], strides = [1, 1]} : vector<8x128xbf16> to vector<8x32xbf16>
    %99 = vector.extract_strided_slice %96 {offsets = [0, 0], sizes = [8, 32], strides = [1, 1]} : vector<8x128xbf16> to vector<8x32xbf16>
    %cst_31 = arith.constant dense<0.000000e+00> : vector<8x8xf32>
    %100 = tpu.matmul %98, %99, %cst_31 {dimension_numbers = #tpu.dot_dimension_numbers<[1], [1], [0], [0], [0, 0, 1, 0], [], []>} : vector<8x32xbf16>, vector<8x32xbf16>, vector<8x8xf32> -> vector<8x8xf32>
    %101 = arith.subf %100, %19 : vector<8x8xf32>
    %cst_32 = arith.constant dense<0xFF800000> : vector<8xf32>
    %102 = vector.multi_reduction <maximumf>, %101, %cst_32 [1] : vector<8x8xf32> to vector<8xf32>
    %103 = vector.shape_cast %102 : vector<8xf32> to vector<8x1xf32>
    %104 = vector.broadcast %103 : vector<8x1xf32> to vector<8x8xf32>
    %105 = arith.subf %101, %104 : vector<8x8xf32>
    %106 = math.exp %105 : vector<8x8xf32>
    %cst_33 = arith.constant dense<0.000000e+00> : vector<8xf32>
    %107 = vector.multi_reduction <add>, %106, %cst_33 [1] : vector<8x8xf32> to vector<8xf32>
    %108 = vector.shape_cast %107 : vector<8xf32> to vector<8x1xf32>
    %109 = tpu.reciprocal %108 {approx = true} : vector<8x1xf32> -> vector<8x1xf32>
    %110 = vector.broadcast %109 : vector<8x1xf32> to vector<8x8xf32>
    %111 = arith.mulf %106, %110 : vector<8x8xf32>
    %112 = arith.truncf %111 : vector<8x8xf32> to vector<8x8xbf16>
    %113 = vector.extract_strided_slice %97 {offsets = [0, 0], sizes = [8, 32], strides = [1, 1]} : vector<8x128xbf16> to vector<8x32xbf16>
    %cst_34 = arith.constant dense<0.000000e+00> : vector<8x32xf32>
    %114 = tpu.matmul %112, %113, %cst_34 {dimension_numbers = #tpu.dot_dimension_numbers<[1], [0], [0], [1], [0, 0, 1, 1], [], []>} : vector<8x8xbf16>, vector<8x32xbf16>, vector<8x32xf32> -> vector<8x32xf32>
    %c8 = arith.constant 8 : index
    %c0_35 = arith.constant 0 : index
    %115 = vector.load %arg19[%c8, %c0_35] : memref<16x128xf32, #tpu.memory_space<vmem>>, vector<8x32xf32>
    tpu.vector_store %arg19[%c8, %c0_35], %114 {strides = array<i32>} : memref<16x128xf32, #tpu.memory_space<vmem>>, vector<8x32xf32>,
    %116 = vector.extract_strided_slice %95 {offsets = [0, 32], sizes = [8, 32], strides = [1, 1]} : vector<8x128xbf16> to vector<8x32xbf16>
    %117 = vector.extract_strided_slice %96 {offsets = [0, 32], sizes = [8, 32], strides = [1, 1]} : vector<8x128xbf16> to vector<8x32xbf16>
    %cst_36 = arith.constant dense<0.000000e+00> : vector<8x8xf32>
    %118 = tpu.matmul %116, %117, %cst_36 {dimension_numbers = #tpu.dot_dimension_numbers<[1], [1], [0], [0], [0, 0, 1, 0], [], []>} : vector<8x32xbf16>, vector<8x32xbf16>, vector<8x8xf32> -> vector<8x8xf32>
    %119 = arith.subf %118, %19 : vector<8x8xf32>
    %cst_37 = arith.constant dense<0xFF800000> : vector<8xf32>
    %120 = vector.multi_reduction <maximumf>, %119, %cst_37 [1] : vector<8x8xf32> to vector<8xf32>
    %121 = vector.shape_cast %120 : vector<8xf32> to vector<8x1xf32>
    %122 = vector.broadcast %121 : vector<8x1xf32> to vector<8x8xf32>
    %123 = arith.subf %119, %122 : vector<8x8xf32>
    %124 = math.exp %123 : vector<8x8xf32>
    %cst_38 = arith.constant dense<0.000000e+00> : vector<8xf32>
    %125 = vector.multi_reduction <add>, %124, %cst_38 [1] : vector<8x8xf32> to vector<8xf32>
    %126 = vector.shape_cast %125 : vector<8xf32> to vector<8x1xf32>
    %127 = tpu.reciprocal %126 {approx = true} : vector<8x1xf32> -> vector<8x1xf32>
    %128 = vector.broadcast %127 : vector<8x1xf32> to vector<8x8xf32>
    %129 = arith.mulf %124, %128 : vector<8x8xf32>
    %130 = arith.truncf %129 : vector<8x8xf32> to vector<8x8xbf16>
    %131 = vector.extract_strided_slice %97 {offsets = [0, 32], sizes = [8, 32], strides = [1, 1]} : vector<8x128xbf16> to vector<8x32xbf16>
    %cst_39 = arith.constant dense<0.000000e+00> : vector<8x32xf32>
    %132 = tpu.matmul %130, %131, %cst_39 {dimension_numbers = #tpu.dot_dimension_numbers<[1], [0], [0], [1], [0, 0, 1, 1], [], []>} : vector<8x8xbf16>, vector<8x32xbf16>, vector<8x32xf32> -> vector<8x32xf32>
    %c8_40 = arith.constant 8 : index
    %c32_41 = arith.constant 32 : index
    %133 = vector.load %arg19[%c8_40, %c32_41] : memref<16x128xf32, #tpu.memory_space<vmem>>, vector<8x32xf32>
    tpu.vector_store %arg19[%c8_40, %c32_41], %132 {strides = array<i32>} : memref<16x128xf32, #tpu.memory_space<vmem>>, vector<8x32xf32>,
    %134 = vector.extract_strided_slice %95 {offsets = [0, 64], sizes = [8, 32], strides = [1, 1]} : vector<8x128xbf16> to vector<8x32xbf16>
    %135 = vector.extract_strided_slice %96 {offsets = [0, 64], sizes = [8, 32], strides = [1, 1]} : vector<8x128xbf16> to vector<8x32xbf16>
    %cst_42 = arith.constant dense<0.000000e+00> : vector<8x8xf32>
    %136 = tpu.matmul %134, %135, %cst_42 {dimension_numbers = #tpu.dot_dimension_numbers<[1], [1], [0], [0], [0, 0, 1, 0], [], []>} : vector<8x32xbf16>, vector<8x32xbf16>, vector<8x8xf32> -> vector<8x8xf32>
    %137 = arith.subf %136, %19 : vector<8x8xf32>
    %cst_43 = arith.constant dense<0xFF800000> : vector<8xf32>
    %138 = vector.multi_reduction <maximumf>, %137, %cst_43 [1] : vector<8x8xf32> to vector<8xf32>
    %139 = vector.shape_cast %138 : vector<8xf32> to vector<8x1xf32>
    %140 = vector.broadcast %139 : vector<8x1xf32> to vector<8x8xf32>
    %141 = arith.subf %137, %140 : vector<8x8xf32>
    %142 = math.exp %141 : vector<8x8xf32>
    %cst_44 = arith.constant dense<0.000000e+00> : vector<8xf32>
    %143 = vector.multi_reduction <add>, %142, %cst_44 [1] : vector<8x8xf32> to vector<8xf32>
    %144 = vector.shape_cast %143 : vector<8xf32> to vector<8x1xf32>
    %145 = tpu.reciprocal %144 {approx = true} : vector<8x1xf32> -> vector<8x1xf32>
    %146 = vector.broadcast %145 : vector<8x1xf32> to vector<8x8xf32>
    %147 = arith.mulf %142, %146 : vector<8x8xf32>
    %148 = arith.truncf %147 : vector<8x8xf32> to vector<8x8xbf16>
    %149 = vector.extract_strided_slice %97 {offsets = [0, 64], sizes = [8, 32], strides = [1, 1]} : vector<8x128xbf16> to vector<8x32xbf16>
    %cst_45 = arith.constant dense<0.000000e+00> : vector<8x32xf32>
    %150 = tpu.matmul %148, %149, %cst_45 {dimension_numbers = #tpu.dot_dimension_numbers<[1], [0], [0], [1], [0, 0, 1, 1], [], []>} : vector<8x8xbf16>, vector<8x32xbf16>, vector<8x32xf32> -> vector<8x32xf32>
    %c8_46 = arith.constant 8 : index
    %c64_47 = arith.constant 64 : index
    %151 = vector.load %arg19[%c8_46, %c64_47] : memref<16x128xf32, #tpu.memory_space<vmem>>, vector<8x32xf32>
    tpu.vector_store %arg19[%c8_46, %c64_47], %150 {strides = array<i32>} : memref<16x128xf32, #tpu.memory_space<vmem>>, vector<8x32xf32>,
    %152 = vector.extract_strided_slice %95 {offsets = [0, 96], sizes = [8, 32], strides = [1, 1]} : vector<8x128xbf16> to vector<8x32xbf16>
    %153 = vector.extract_strided_slice %96 {offsets = [0, 96], sizes = [8, 32], strides = [1, 1]} : vector<8x128xbf16> to vector<8x32xbf16>
    %cst_48 = arith.constant dense<0.000000e+00> : vector<8x8xf32>
    %154 = tpu.matmul %152, %153, %cst_48 {dimension_numbers = #tpu.dot_dimension_numbers<[1], [1], [0], [0], [0, 0, 1, 0], [], []>} : vector<8x32xbf16>, vector<8x32xbf16>, vector<8x8xf32> -> vector<8x8xf32>
    %155 = arith.subf %154, %19 : vector<8x8xf32>
    %cst_49 = arith.constant dense<0xFF800000> : vector<8xf32>
    %156 = vector.multi_reduction <maximumf>, %155, %cst_49 [1] : vector<8x8xf32> to vector<8xf32>
    %157 = vector.shape_cast %156 : vector<8xf32> to vector<8x1xf32>
    %158 = vector.broadcast %157 : vector<8x1xf32> to vector<8x8xf32>
    %159 = arith.subf %155, %158 : vector<8x8xf32>
    %160 = math.exp %159 : vector<8x8xf32>
    %cst_50 = arith.constant dense<0.000000e+00> : vector<8xf32>
    %161 = vector.multi_reduction <add>, %160, %cst_50 [1] : vector<8x8xf32> to vector<8xf32>
    %162 = vector.shape_cast %161 : vector<8xf32> to vector<8x1xf32>
    %163 = tpu.reciprocal %162 {approx = true} : vector<8x1xf32> -> vector<8x1xf32>
    %164 = vector.broadcast %163 : vector<8x1xf32> to vector<8x8xf32>
    %165 = arith.mulf %160, %164 : vector<8x8xf32>
    %166 = arith.truncf %165 : vector<8x8xf32> to vector<8x8xbf16>
    %167 = vector.extract_strided_slice %97 {offsets = [0, 96], sizes = [8, 32], strides = [1, 1]} : vector<8x128xbf16> to vector<8x32xbf16>
    %cst_51 = arith.constant dense<0.000000e+00> : vector<8x32xf32>
    %168 = tpu.matmul %166, %167, %cst_51 {dimension_numbers = #tpu.dot_dimension_numbers<[1], [0], [0], [1], [0, 0, 1, 1], [], []>} : vector<8x8xbf16>, vector<8x32xbf16>, vector<8x32xf32> -> vector<8x32xf32>
    %c8_52 = arith.constant 8 : index
    %c96_53 = arith.constant 96 : index
    %169 = vector.load %arg19[%c8_52, %c96_53] : memref<16x128xf32, #tpu.memory_space<vmem>>, vector<8x32xf32>
    tpu.vector_store %arg19[%c8_52, %c96_53], %168 {strides = array<i32>} : memref<16x128xf32, #tpu.memory_space<vmem>>, vector<8x32xf32>,
    %c0_54 = arith.constant 0 : index
    %c0_55 = arith.constant 0 : index
    %170 = vector.load %arg19[%c0_54, %c0_55] : memref<16x128xf32, #tpu.memory_space<vmem>>, vector<16x128xf32>
    %171 = arith.truncf %170 : vector<16x128xf32> to vector<16x128xbf16>
    %c0_56 = arith.constant 0 : index
    %c0_57 = arith.constant 0 : index
    %172 = vector.load %arg4[%c0_56, %c0_57] : memref<128x128xbf16, #tpu.memory_space<vmem>>, vector<128x128xbf16>
    %cst_58 = arith.constant dense<0.000000e+00> : vector<16x128xf32>
    %173 = tpu.matmul %171, %172, %cst_58 {dimension_numbers = #tpu.dot_dimension_numbers<[1], [0], [0], [1], [0, 0, 1, 1], [], []>} : vector<16x128xbf16>, vector<128x128xbf16>, vector<16x128xf32> -> vector<16x128xf32>
    %174 = arith.extf %1 : vector<16x128xbf16> to vector<16x128xf32>
    %175 = arith.addf %174, %173 : vector<16x128xf32>
    %c0_59 = arith.constant 0 : index
    %c0_60 = arith.constant 0 : index
    %176 = vector.load %arg5[%c0_59, %c0_60] : memref<1x128xf32, #tpu.memory_space<vmem>>, vector<1x128xf32>
    %c0_61 = arith.constant 0 : index
    %c0_62 = arith.constant 0 : index
    %177 = vector.load %arg6[%c0_61, %c0_62] : memref<1x128xf32, #tpu.memory_space<vmem>>, vector<1x128xf32>
    %cst_63 = arith.constant dense<0.000000e+00> : vector<16xf32>
    %178 = vector.multi_reduction <add>, %175, %cst_63 [1] : vector<16x128xf32> to vector<16xf32>
    %179 = vector.shape_cast %178 : vector<16xf32> to vector<16x1xf32>
    %cst_64 = arith.constant 1.280000e+02 : f32
    %180 = vector.broadcast %cst_64 : f32 to vector<16x1xf32>
    %181 = arith.divf %179, %180 : vector<16x1xf32>
    %182 = vector.broadcast %181 : vector<16x1xf32> to vector<16x128xf32>
    %183 = arith.subf %175, %182 : vector<16x128xf32>
    %184 = arith.mulf %183, %183 : vector<16x128xf32>
    %cst_65 = arith.constant dense<0.000000e+00> : vector<16xf32>
    %185 = vector.multi_reduction <add>, %184, %cst_65 [1] : vector<16x128xf32> to vector<16xf32>
    %186 = vector.shape_cast %185 : vector<16xf32> to vector<16x1xf32>
    %cst_66 = arith.constant 0.00787401571 : f32
    %187 = vector.broadcast %cst_66 : f32 to vector<16x1xf32>
    %188 = arith.mulf %186, %187 : vector<16x1xf32>
    %189 = math.sqrt %188 : vector<16x1xf32>
    %190 = vector.broadcast %181 : vector<16x1xf32> to vector<16x128xf32>
    %191 = arith.subf %175, %190 : vector<16x128xf32>
    %192 = vector.broadcast %176 : vector<1x128xf32> to vector<16x128xf32>
    %193 = arith.mulf %192, %191 : vector<16x128xf32>
    %cst_67 = arith.constant 9.99999997E-7 : f32
    %194 = vector.broadcast %cst_67 : f32 to vector<16x1xf32>
    %195 = arith.addf %189, %194 : vector<16x1xf32>
    %196 = tpu.reciprocal %195 {approx = true} : vector<16x1xf32> -> vector<16x1xf32>
    %197 = vector.broadcast %196 : vector<16x1xf32> to vector<16x128xf32>
    %198 = arith.mulf %193, %197 : vector<16x128xf32>
    %199 = vector.broadcast %177 : vector<1x128xf32> to vector<16x128xf32>
    %200 = arith.addf %198, %199 : vector<16x128xf32>
    %201 = arith.truncf %200 : vector<16x128xf32> to vector<16x128xbf16>
    %c0_68 = arith.constant 0 : index
    %c0_69 = arith.constant 0 : index
    %202 = vector.load %arg7[%c0_68, %c0_69] : memref<128x128xbf16, #tpu.memory_space<vmem>>, vector<128x128xbf16>
    %cst_70 = arith.constant dense<0.000000e+00> : vector<16x128xf32>
    %203 = tpu.matmul %201, %202, %cst_70 {dimension_numbers = #tpu.dot_dimension_numbers<[1], [0], [0], [1], [0, 0, 1, 1], [], []>} : vector<16x128xbf16>, vector<128x128xbf16>, vector<16x128xf32> -> vector<16x128xf32>
    %cst_71 = arith.constant 0.0883883461 : f32
    %204 = vector.broadcast %cst_71 : f32 to vector<16x128xf32>
    %205 = arith.mulf %203, %204 : vector<16x128xf32>
    %c0_72 = arith.constant 0 : index
    %c0_73 = arith.constant 0 : index
    %206 = vector.load %arg8[%c0_72, %c0_73] : memref<128x256xbf16, #tpu.memory_space<vmem>>, vector<128x256xbf16>
    %cst_74 = arith.constant dense<0.000000e+00> : vector<32x256xf32>
    %207 = tpu.matmul %3, %206, %cst_74 {dimension_numbers = #tpu.dot_dimension_numbers<[1], [0], [0], [1], [0, 0, 1, 1], [], []>} : vector<32x128xbf16>, vector<128x256xbf16>, vector<32x256xf32> -> vector<32x256xf32>
    %208 = vector.extract_strided_slice %207 {offsets = [0, 0], sizes = [32, 128], strides = [1, 1]} : vector<32x256xf32> to vector<32x128xf32>
    %209 = vector.extract_strided_slice %207 {offsets = [0, 128], sizes = [32, 128], strides = [1, 1]} : vector<32x256xf32> to vector<32x128xf32>
    %210 = arith.truncf %205 : vector<16x128xf32> to vector<16x128xbf16>
    %211 = arith.truncf %208 : vector<32x128xf32> to vector<32x128xbf16>
    %212 = arith.truncf %209 : vector<32x128xf32> to vector<32x128xbf16>
    %213 = vector.extract_strided_slice %210 {offsets = [0, 0], sizes = [8, 128], strides = [1, 1]} : vector<16x128xbf16> to vector<8x128xbf16>
    %214 = vector.extract_strided_slice %211 {offsets = [0, 0], sizes = [16, 128], strides = [1, 1]} : vector<32x128xbf16> to vector<16x128xbf16>
    %215 = vector.extract_strided_slice %212 {offsets = [0, 0], sizes = [16, 128], strides = [1, 1]} : vector<32x128xbf16> to vector<16x128xbf16>
    %216 = vector.extract_strided_slice %213 {offsets = [0, 0], sizes = [8, 32], strides = [1, 1]} : vector<8x128xbf16> to vector<8x32xbf16>
    %217 = vector.extract_strided_slice %214 {offsets = [0, 0], sizes = [16, 32], strides = [1, 1]} : vector<16x128xbf16> to vector<16x32xbf16>
    %cst_75 = arith.constant dense<0.000000e+00> : vector<8x16xf32>
    %218 = tpu.matmul %216, %217, %cst_75 {dimension_numbers = #tpu.dot_dimension_numbers<[1], [1], [0], [0], [0, 0, 1, 0], [], []>} : vector<8x32xbf16>, vector<16x32xbf16>, vector<8x16xf32> -> vector<8x16xf32>
    %cst_76 = arith.constant dense<0xFF800000> : vector<8xf32>
    %219 = vector.multi_reduction <maximumf>, %218, %cst_76 [1] : vector<8x16xf32> to vector<8xf32>
    %220 = vector.shape_cast %219 : vector<8xf32> to vector<8x1xf32>
    %221 = vector.broadcast %220 : vector<8x1xf32> to vector<8x16xf32>
    %222 = arith.subf %218, %221 : vector<8x16xf32>
    %223 = math.exp %222 : vector<8x16xf32>
    %cst_77 = arith.constant dense<0.000000e+00> : vector<8xf32>
    %224 = vector.multi_reduction <add>, %223, %cst_77 [1] : vector<8x16xf32> to vector<8xf32>
    %225 = vector.shape_cast %224 : vector<8xf32> to vector<8x1xf32>
    %226 = tpu.reciprocal %225 {approx = true} : vector<8x1xf32> -> vector<8x1xf32>
    %227 = vector.broadcast %226 : vector<8x1xf32> to vector<8x16xf32>
    %228 = arith.mulf %223, %227 : vector<8x16xf32>
    %229 = arith.truncf %228 : vector<8x16xf32> to vector<8x16xbf16>
    %230 = vector.extract_strided_slice %215 {offsets = [0, 0], sizes = [16, 32], strides = [1, 1]} : vector<16x128xbf16> to vector<16x32xbf16>
    %cst_78 = arith.constant dense<0.000000e+00> : vector<8x32xf32>
    %231 = tpu.matmul %229, %230, %cst_78 {dimension_numbers = #tpu.dot_dimension_numbers<[1], [0], [0], [1], [0, 0, 1, 1], [], []>} : vector<8x16xbf16>, vector<16x32xbf16>, vector<8x32xf32> -> vector<8x32xf32>
    %c0_79 = arith.constant 0 : index
    %c0_80 = arith.constant 0 : index
    %232 = vector.load %arg19[%c0_79, %c0_80] : memref<16x128xf32, #tpu.memory_space<vmem>>, vector<8x32xf32>
    tpu.vector_store %arg19[%c0_79, %c0_80], %231 {strides = array<i32>} : memref<16x128xf32, #tpu.memory_space<vmem>>, vector<8x32xf32>,
    %233 = vector.extract_strided_slice %213 {offsets = [0, 32], sizes = [8, 32], strides = [1, 1]} : vector<8x128xbf16> to vector<8x32xbf16>
    %234 = vector.extract_strided_slice %214 {offsets = [0, 32], sizes = [16, 32], strides = [1, 1]} : vector<16x128xbf16> to vector<16x32xbf16>
    %cst_81 = arith.constant dense<0.000000e+00> : vector<8x16xf32>
    %235 = tpu.matmul %233, %234, %cst_81 {dimension_numbers = #tpu.dot_dimension_numbers<[1], [1], [0], [0], [0, 0, 1, 0], [], []>} : vector<8x32xbf16>, vector<16x32xbf16>, vector<8x16xf32> -> vector<8x16xf32>
    %cst_82 = arith.constant dense<0xFF800000> : vector<8xf32>
    %236 = vector.multi_reduction <maximumf>, %235, %cst_82 [1] : vector<8x16xf32> to vector<8xf32>
    %237 = vector.shape_cast %236 : vector<8xf32> to vector<8x1xf32>
    %238 = vector.broadcast %237 : vector<8x1xf32> to vector<8x16xf32>
    %239 = arith.subf %235, %238 : vector<8x16xf32>
    %240 = math.exp %239 : vector<8x16xf32>
    %cst_83 = arith.constant dense<0.000000e+00> : vector<8xf32>
    %241 = vector.multi_reduction <add>, %240, %cst_83 [1] : vector<8x16xf32> to vector<8xf32>
    %242 = vector.shape_cast %241 : vector<8xf32> to vector<8x1xf32>
    %243 = tpu.reciprocal %242 {approx = true} : vector<8x1xf32> -> vector<8x1xf32>
    %244 = vector.broadcast %243 : vector<8x1xf32> to vector<8x16xf32>
    %245 = arith.mulf %240, %244 : vector<8x16xf32>
    %246 = arith.truncf %245 : vector<8x16xf32> to vector<8x16xbf16>
    %247 = vector.extract_strided_slice %215 {offsets = [0, 32], sizes = [16, 32], strides = [1, 1]} : vector<16x128xbf16> to vector<16x32xbf16>
    %cst_84 = arith.constant dense<0.000000e+00> : vector<8x32xf32>
    %248 = tpu.matmul %246, %247, %cst_84 {dimension_numbers = #tpu.dot_dimension_numbers<[1], [0], [0], [1], [0, 0, 1, 1], [], []>} : vector<8x16xbf16>, vector<16x32xbf16>, vector<8x32xf32> -> vector<8x32xf32>
    %c0_85 = arith.constant 0 : index
    %c32_86 = arith.constant 32 : index
    %249 = vector.load %arg19[%c0_85, %c32_86] : memref<16x128xf32, #tpu.memory_space<vmem>>, vector<8x32xf32>
    tpu.vector_store %arg19[%c0_85, %c32_86], %248 {strides = array<i32>} : memref<16x128xf32, #tpu.memory_space<vmem>>, vector<8x32xf32>,
    %250 = vector.extract_strided_slice %213 {offsets = [0, 64], sizes = [8, 32], strides = [1, 1]} : vector<8x128xbf16> to vector<8x32xbf16>
    %251 = vector.extract_strided_slice %214 {offsets = [0, 64], sizes = [16, 32], strides = [1, 1]} : vector<16x128xbf16> to vector<16x32xbf16>
    %cst_87 = arith.constant dense<0.000000e+00> : vector<8x16xf32>
    %252 = tpu.matmul %250, %251, %cst_87 {dimension_numbers = #tpu.dot_dimension_numbers<[1], [1], [0], [0], [0, 0, 1, 0], [], []>} : vector<8x32xbf16>, vector<16x32xbf16>, vector<8x16xf32> -> vector<8x16xf32>
    %cst_88 = arith.constant dense<0xFF800000> : vector<8xf32>
    %253 = vector.multi_reduction <maximumf>, %252, %cst_88 [1] : vector<8x16xf32> to vector<8xf32>
    %254 = vector.shape_cast %253 : vector<8xf32> to vector<8x1xf32>
    %255 = vector.broadcast %254 : vector<8x1xf32> to vector<8x16xf32>
    %256 = arith.subf %252, %255 : vector<8x16xf32>
    %257 = math.exp %256 : vector<8x16xf32>
    %cst_89 = arith.constant dense<0.000000e+00> : vector<8xf32>
    %258 = vector.multi_reduction <add>, %257, %cst_89 [1] : vector<8x16xf32> to vector<8xf32>
    %259 = vector.shape_cast %258 : vector<8xf32> to vector<8x1xf32>
    %260 = tpu.reciprocal %259 {approx = true} : vector<8x1xf32> -> vector<8x1xf32>
    %261 = vector.broadcast %260 : vector<8x1xf32> to vector<8x16xf32>
    %262 = arith.mulf %257, %261 : vector<8x16xf32>
    %263 = arith.truncf %262 : vector<8x16xf32> to vector<8x16xbf16>
    %264 = vector.extract_strided_slice %215 {offsets = [0, 64], sizes = [16, 32], strides = [1, 1]} : vector<16x128xbf16> to vector<16x32xbf16>
    %cst_90 = arith.constant dense<0.000000e+00> : vector<8x32xf32>
    %265 = tpu.matmul %263, %264, %cst_90 {dimension_numbers = #tpu.dot_dimension_numbers<[1], [0], [0], [1], [0, 0, 1, 1], [], []>} : vector<8x16xbf16>, vector<16x32xbf16>, vector<8x32xf32> -> vector<8x32xf32>
    %c0_91 = arith.constant 0 : index
    %c64_92 = arith.constant 64 : index
    %266 = vector.load %arg19[%c0_91, %c64_92] : memref<16x128xf32, #tpu.memory_space<vmem>>, vector<8x32xf32>
    tpu.vector_store %arg19[%c0_91, %c64_92], %265 {strides = array<i32>} : memref<16x128xf32, #tpu.memory_space<vmem>>, vector<8x32xf32>,
    %267 = vector.extract_strided_slice %213 {offsets = [0, 96], sizes = [8, 32], strides = [1, 1]} : vector<8x128xbf16> to vector<8x32xbf16>
    %268 = vector.extract_strided_slice %214 {offsets = [0, 96], sizes = [16, 32], strides = [1, 1]} : vector<16x128xbf16> to vector<16x32xbf16>
    %cst_93 = arith.constant dense<0.000000e+00> : vector<8x16xf32>
    %269 = tpu.matmul %267, %268, %cst_93 {dimension_numbers = #tpu.dot_dimension_numbers<[1], [1], [0], [0], [0, 0, 1, 0], [], []>} : vector<8x32xbf16>, vector<16x32xbf16>, vector<8x16xf32> -> vector<8x16xf32>
    %cst_94 = arith.constant dense<0xFF800000> : vector<8xf32>
    %270 = vector.multi_reduction <maximumf>, %269, %cst_94 [1] : vector<8x16xf32> to vector<8xf32>
    %271 = vector.shape_cast %270 : vector<8xf32> to vector<8x1xf32>
    %272 = vector.broadcast %271 : vector<8x1xf32> to vector<8x16xf32>
    %273 = arith.subf %269, %272 : vector<8x16xf32>
    %274 = math.exp %273 : vector<8x16xf32>
    %cst_95 = arith.constant dense<0.000000e+00> : vector<8xf32>
    %275 = vector.multi_reduction <add>, %274, %cst_95 [1] : vector<8x16xf32> to vector<8xf32>
    %276 = vector.shape_cast %275 : vector<8xf32> to vector<8x1xf32>
    %277 = tpu.reciprocal %276 {approx = true} : vector<8x1xf32> -> vector<8x1xf32>
    %278 = vector.broadcast %277 : vector<8x1xf32> to vector<8x16xf32>
    %279 = arith.mulf %274, %278 : vector<8x16xf32>
    %280 = arith.truncf %279 : vector<8x16xf32> to vector<8x16xbf16>
    %281 = vector.extract_strided_slice %215 {offsets = [0, 96], sizes = [16, 32], strides = [1, 1]} : vector<16x128xbf16> to vector<16x32xbf16>
    %cst_96 = arith.constant dense<0.000000e+00> : vector<8x32xf32>
    %282 = tpu.matmul %280, %281, %cst_96 {dimension_numbers = #tpu.dot_dimension_numbers<[1], [0], [0], [1], [0, 0, 1, 1], [], []>} : vector<8x16xbf16>, vector<16x32xbf16>, vector<8x32xf32> -> vector<8x32xf32>
    %c0_97 = arith.constant 0 : index
    %c96_98 = arith.constant 96 : index
    %283 = vector.load %arg19[%c0_97, %c96_98] : memref<16x128xf32, #tpu.memory_space<vmem>>, vector<8x32xf32>
    tpu.vector_store %arg19[%c0_97, %c96_98], %282 {strides = array<i32>} : memref<16x128xf32, #tpu.memory_space<vmem>>, vector<8x32xf32>,
    %284 = vector.extract_strided_slice %210 {offsets = [8, 0], sizes = [8, 128], strides = [1, 1]} : vector<16x128xbf16> to vector<8x128xbf16>
    %285 = vector.extract_strided_slice %211 {offsets = [16, 0], sizes = [16, 128], strides = [1, 1]} : vector<32x128xbf16> to vector<16x128xbf16>
    %286 = vector.extract_strided_slice %212 {offsets = [16, 0], sizes = [16, 128], strides = [1, 1]} : vector<32x128xbf16> to vector<16x128xbf16>
    %287 = vector.extract_strided_slice %284 {offsets = [0, 0], sizes = [8, 32], strides = [1, 1]} : vector<8x128xbf16> to vector<8x32xbf16>
    %288 = vector.extract_strided_slice %285 {offsets = [0, 0], sizes = [16, 32], strides = [1, 1]} : vector<16x128xbf16> to vector<16x32xbf16>
    %cst_99 = arith.constant dense<0.000000e+00> : vector<8x16xf32>
    %289 = tpu.matmul %287, %288, %cst_99 {dimension_numbers = #tpu.dot_dimension_numbers<[1], [1], [0], [0], [0, 0, 1, 0], [], []>} : vector<8x32xbf16>, vector<16x32xbf16>, vector<8x16xf32> -> vector<8x16xf32>
    %cst_100 = arith.constant dense<0xFF800000> : vector<8xf32>
    %290 = vector.multi_reduction <maximumf>, %289, %cst_100 [1] : vector<8x16xf32> to vector<8xf32>
    %291 = vector.shape_cast %290 : vector<8xf32> to vector<8x1xf32>
    %292 = vector.broadcast %291 : vector<8x1xf32> to vector<8x16xf32>
    %293 = arith.subf %289, %292 : vector<8x16xf32>
    %294 = math.exp %293 : vector<8x16xf32>
    %cst_101 = arith.constant dense<0.000000e+00> : vector<8xf32>
    %295 = vector.multi_reduction <add>, %294, %cst_101 [1] : vector<8x16xf32> to vector<8xf32>
    %296 = vector.shape_cast %295 : vector<8xf32> to vector<8x1xf32>
    %297 = tpu.reciprocal %296 {approx = true} : vector<8x1xf32> -> vector<8x1xf32>
    %298 = vector.broadcast %297 : vector<8x1xf32> to vector<8x16xf32>
    %299 = arith.mulf %294, %298 : vector<8x16xf32>
    %300 = arith.truncf %299 : vector<8x16xf32> to vector<8x16xbf16>
    %301 = vector.extract_strided_slice %286 {offsets = [0, 0], sizes = [16, 32], strides = [1, 1]} : vector<16x128xbf16> to vector<16x32xbf16>
    %cst_102 = arith.constant dense<0.000000e+00> : vector<8x32xf32>
    %302 = tpu.matmul %300, %301, %cst_102 {dimension_numbers = #tpu.dot_dimension_numbers<[1], [0], [0], [1], [0, 0, 1, 1], [], []>} : vector<8x16xbf16>, vector<16x32xbf16>, vector<8x32xf32> -> vector<8x32xf32>
    %c8_103 = arith.constant 8 : index
    %c0_104 = arith.constant 0 : index
    %303 = vector.load %arg19[%c8_103, %c0_104] : memref<16x128xf32, #tpu.memory_space<vmem>>, vector<8x32xf32>
    tpu.vector_store %arg19[%c8_103, %c0_104], %302 {strides = array<i32>} : memref<16x128xf32, #tpu.memory_space<vmem>>, vector<8x32xf32>,
    %304 = vector.extract_strided_slice %284 {offsets = [0, 32], sizes = [8, 32], strides = [1, 1]} : vector<8x128xbf16> to vector<8x32xbf16>
    %305 = vector.extract_strided_slice %285 {offsets = [0, 32], sizes = [16, 32], strides = [1, 1]} : vector<16x128xbf16> to vector<16x32xbf16>
    %cst_105 = arith.constant dense<0.000000e+00> : vector<8x16xf32>
    %306 = tpu.matmul %304, %305, %cst_105 {dimension_numbers = #tpu.dot_dimension_numbers<[1], [1], [0], [0], [0, 0, 1, 0], [], []>} : vector<8x32xbf16>, vector<16x32xbf16>, vector<8x16xf32> -> vector<8x16xf32>
    %cst_106 = arith.constant dense<0xFF800000> : vector<8xf32>
    %307 = vector.multi_reduction <maximumf>, %306, %cst_106 [1] : vector<8x16xf32> to vector<8xf32>
    %308 = vector.shape_cast %307 : vector<8xf32> to vector<8x1xf32>
    %309 = vector.broadcast %308 : vector<8x1xf32> to vector<8x16xf32>
    %310 = arith.subf %306, %309 : vector<8x16xf32>
    %311 = math.exp %310 : vector<8x16xf32>
    %cst_107 = arith.constant dense<0.000000e+00> : vector<8xf32>
    %312 = vector.multi_reduction <add>, %311, %cst_107 [1] : vector<8x16xf32> to vector<8xf32>
    %313 = vector.shape_cast %312 : vector<8xf32> to vector<8x1xf32>
    %314 = tpu.reciprocal %313 {approx = true} : vector<8x1xf32> -> vector<8x1xf32>
    %315 = vector.broadcast %314 : vector<8x1xf32> to vector<8x16xf32>
    %316 = arith.mulf %311, %315 : vector<8x16xf32>
    %317 = arith.truncf %316 : vector<8x16xf32> to vector<8x16xbf16>
    %318 = vector.extract_strided_slice %286 {offsets = [0, 32], sizes = [16, 32], strides = [1, 1]} : vector<16x128xbf16> to vector<16x32xbf16>
    %cst_108 = arith.constant dense<0.000000e+00> : vector<8x32xf32>
    %319 = tpu.matmul %317, %318, %cst_108 {dimension_numbers = #tpu.dot_dimension_numbers<[1], [0], [0], [1], [0, 0, 1, 1], [], []>} : vector<8x16xbf16>, vector<16x32xbf16>, vector<8x32xf32> -> vector<8x32xf32>
    %c8_109 = arith.constant 8 : index
    %c32_110 = arith.constant 32 : index
    %320 = vector.load %arg19[%c8_109, %c32_110] : memref<16x128xf32, #tpu.memory_space<vmem>>, vector<8x32xf32>
    tpu.vector_store %arg19[%c8_109, %c32_110], %319 {strides = array<i32>} : memref<16x128xf32, #tpu.memory_space<vmem>>, vector<8x32xf32>,
    %321 = vector.extract_strided_slice %284 {offsets = [0, 64], sizes = [8, 32], strides = [1, 1]} : vector<8x128xbf16> to vector<8x32xbf16>
    %322 = vector.extract_strided_slice %285 {offsets = [0, 64], sizes = [16, 32], strides = [1, 1]} : vector<16x128xbf16> to vector<16x32xbf16>
    %cst_111 = arith.constant dense<0.000000e+00> : vector<8x16xf32>
    %323 = tpu.matmul %321, %322, %cst_111 {dimension_numbers = #tpu.dot_dimension_numbers<[1], [1], [0], [0], [0, 0, 1, 0], [], []>} : vector<8x32xbf16>, vector<16x32xbf16>, vector<8x16xf32> -> vector<8x16xf32>
    %cst_112 = arith.constant dense<0xFF800000> : vector<8xf32>
    %324 = vector.multi_reduction <maximumf>, %323, %cst_112 [1] : vector<8x16xf32> to vector<8xf32>
    %325 = vector.shape_cast %324 : vector<8xf32> to vector<8x1xf32>
    %326 = vector.broadcast %325 : vector<8x1xf32> to vector<8x16xf32>
    %327 = arith.subf %323, %326 : vector<8x16xf32>
    %328 = math.exp %327 : vector<8x16xf32>
    %cst_113 = arith.constant dense<0.000000e+00> : vector<8xf32>
    %329 = vector.multi_reduction <add>, %328, %cst_113 [1] : vector<8x16xf32> to vector<8xf32>
    %330 = vector.shape_cast %329 : vector<8xf32> to vector<8x1xf32>
    %331 = tpu.reciprocal %330 {approx = true} : vector<8x1xf32> -> vector<8x1xf32>
    %332 = vector.broadcast %331 : vector<8x1xf32> to vector<8x16xf32>
    %333 = arith.mulf %328, %332 : vector<8x16xf32>
    %334 = arith.truncf %333 : vector<8x16xf32> to vector<8x16xbf16>
    %335 = vector.extract_strided_slice %286 {offsets = [0, 64], sizes = [16, 32], strides = [1, 1]} : vector<16x128xbf16> to vector<16x32xbf16>
    %cst_114 = arith.constant dense<0.000000e+00> : vector<8x32xf32>
    %336 = tpu.matmul %334, %335, %cst_114 {dimension_numbers = #tpu.dot_dimension_numbers<[1], [0], [0], [1], [0, 0, 1, 1], [], []>} : vector<8x16xbf16>, vector<16x32xbf16>, vector<8x32xf32> -> vector<8x32xf32>
    %c8_115 = arith.constant 8 : index
    %c64_116 = arith.constant 64 : index
    %337 = vector.load %arg19[%c8_115, %c64_116] : memref<16x128xf32, #tpu.memory_space<vmem>>, vector<8x32xf32>
    tpu.vector_store %arg19[%c8_115, %c64_116], %336 {strides = array<i32>} : memref<16x128xf32, #tpu.memory_space<vmem>>, vector<8x32xf32>,
    %338 = vector.extract_strided_slice %284 {offsets = [0, 96], sizes = [8, 32], strides = [1, 1]} : vector<8x128xbf16> to vector<8x32xbf16>
    %339 = vector.extract_strided_slice %285 {offsets = [0, 96], sizes = [16, 32], strides = [1, 1]} : vector<16x128xbf16> to vector<16x32xbf16>
    %cst_117 = arith.constant dense<0.000000e+00> : vector<8x16xf32>
    %340 = tpu.matmul %338, %339, %cst_117 {dimension_numbers = #tpu.dot_dimension_numbers<[1], [1], [0], [0], [0, 0, 1, 0], [], []>} : vector<8x32xbf16>, vector<16x32xbf16>, vector<8x16xf32> -> vector<8x16xf32>
    %cst_118 = arith.constant dense<0xFF800000> : vector<8xf32>
    %341 = vector.multi_reduction <maximumf>, %340, %cst_118 [1] : vector<8x16xf32> to vector<8xf32>
    %342 = vector.shape_cast %341 : vector<8xf32> to vector<8x1xf32>
    %343 = vector.broadcast %342 : vector<8x1xf32> to vector<8x16xf32>
    %344 = arith.subf %340, %343 : vector<8x16xf32>
    %345 = math.exp %344 : vector<8x16xf32>
    %cst_119 = arith.constant dense<0.000000e+00> : vector<8xf32>
    %346 = vector.multi_reduction <add>, %345, %cst_119 [1] : vector<8x16xf32> to vector<8xf32>
    %347 = vector.shape_cast %346 : vector<8xf32> to vector<8x1xf32>
    %348 = tpu.reciprocal %347 {approx = true} : vector<8x1xf32> -> vector<8x1xf32>
    %349 = vector.broadcast %348 : vector<8x1xf32> to vector<8x16xf32>
    %350 = arith.mulf %345, %349 : vector<8x16xf32>
    %351 = arith.truncf %350 : vector<8x16xf32> to vector<8x16xbf16>
    %352 = vector.extract_strided_slice %286 {offsets = [0, 96], sizes = [16, 32], strides = [1, 1]} : vector<16x128xbf16> to vector<16x32xbf16>
    %cst_120 = arith.constant dense<0.000000e+00> : vector<8x32xf32>
    %353 = tpu.matmul %351, %352, %cst_120 {dimension_numbers = #tpu.dot_dimension_numbers<[1], [0], [0], [1], [0, 0, 1, 1], [], []>} : vector<8x16xbf16>, vector<16x32xbf16>, vector<8x32xf32> -> vector<8x32xf32>
    %c8_121 = arith.constant 8 : index
    %c96_122 = arith.constant 96 : index
    %354 = vector.load %arg19[%c8_121, %c96_122] : memref<16x128xf32, #tpu.memory_space<vmem>>, vector<8x32xf32>
    tpu.vector_store %arg19[%c8_121, %c96_122], %353 {strides = array<i32>} : memref<16x128xf32, #tpu.memory_space<vmem>>, vector<8x32xf32>,
    %c0_123 = arith.constant 0 : index
    %c0_124 = arith.constant 0 : index
    %355 = vector.load %arg19[%c0_123, %c0_124] : memref<16x128xf32, #tpu.memory_space<vmem>>, vector<16x128xf32>
    %356 = arith.truncf %355 : vector<16x128xf32> to vector<16x128xbf16>
    %c0_125 = arith.constant 0 : index
    %c0_126 = arith.constant 0 : index
    %357 = vector.load %arg9[%c0_125, %c0_126] : memref<128x128xbf16, #tpu.memory_space<vmem>>, vector<128x128xbf16>
    %cst_127 = arith.constant dense<0.000000e+00> : vector<16x128xf32>
    %358 = tpu.matmul %356, %357, %cst_127 {dimension_numbers = #tpu.dot_dimension_numbers<[1], [0], [0], [1], [0, 0, 1, 1], [], []>} : vector<16x128xbf16>, vector<128x128xbf16>, vector<16x128xf32> -> vector<16x128xf32>
    %359 = arith.addf %200, %358 : vector<16x128xf32>
    %c0_128 = arith.constant 0 : index
    %c0_129 = arith.constant 0 : index
    %360 = vector.load %arg10[%c0_128, %c0_129] : memref<1x128xf32, #tpu.memory_space<vmem>>, vector<1x128xf32>
    %c0_130 = arith.constant 0 : index
    %c0_131 = arith.constant 0 : index
    %361 = vector.load %arg11[%c0_130, %c0_131] : memref<1x128xf32, #tpu.memory_space<vmem>>, vector<1x128xf32>
    %cst_132 = arith.constant dense<0.000000e+00> : vector<16xf32>
    %362 = vector.multi_reduction <add>, %359, %cst_132 [1] : vector<16x128xf32> to vector<16xf32>
    %363 = vector.shape_cast %362 : vector<16xf32> to vector<16x1xf32>
    %cst_133 = arith.constant 1.280000e+02 : f32
    %364 = vector.broadcast %cst_133 : f32 to vector<16x1xf32>
    %365 = arith.divf %363, %364 : vector<16x1xf32>
    %366 = vector.broadcast %365 : vector<16x1xf32> to vector<16x128xf32>
    %367 = arith.subf %359, %366 : vector<16x128xf32>
    %368 = arith.mulf %367, %367 : vector<16x128xf32>
    %cst_134 = arith.constant dense<0.000000e+00> : vector<16xf32>
    %369 = vector.multi_reduction <add>, %368, %cst_134 [1] : vector<16x128xf32> to vector<16xf32>
    %370 = vector.shape_cast %369 : vector<16xf32> to vector<16x1xf32>
    %cst_135 = arith.constant 0.00787401571 : f32
    %371 = vector.broadcast %cst_135 : f32 to vector<16x1xf32>
    %372 = arith.mulf %370, %371 : vector<16x1xf32>
    %373 = math.sqrt %372 : vector<16x1xf32>
    %374 = vector.broadcast %365 : vector<16x1xf32> to vector<16x128xf32>
    %375 = arith.subf %359, %374 : vector<16x128xf32>
    %376 = vector.broadcast %360 : vector<1x128xf32> to vector<16x128xf32>
    %377 = arith.mulf %376, %375 : vector<16x128xf32>
    %cst_136 = arith.constant 9.99999997E-7 : f32
    %378 = vector.broadcast %cst_136 : f32 to vector<16x1xf32>
    %379 = arith.addf %373, %378 : vector<16x1xf32>
    %380 = tpu.reciprocal %379 {approx = true} : vector<16x1xf32> -> vector<16x1xf32>
    %381 = vector.broadcast %380 : vector<16x1xf32> to vector<16x128xf32>
    %382 = arith.mulf %377, %381 : vector<16x128xf32>
    %383 = vector.broadcast %361 : vector<1x128xf32> to vector<16x128xf32>
    %384 = arith.addf %382, %383 : vector<16x128xf32>
    %385 = arith.truncf %384 : vector<16x128xf32> to vector<16x128xbf16>
    %c0_137 = arith.constant 0 : index
    %c0_138 = arith.constant 0 : index
    %386 = vector.load %arg12[%c0_137, %c0_138] : memref<128x256xbf16, #tpu.memory_space<vmem>>, vector<128x256xbf16>
    %cst_139 = arith.constant dense<0.000000e+00> : vector<16x256xf32>
    %387 = tpu.matmul %385, %386, %cst_139 {dimension_numbers = #tpu.dot_dimension_numbers<[1], [0], [0], [1], [0, 0, 1, 1], [], []>} : vector<16x128xbf16>, vector<128x256xbf16>, vector<16x256xf32> -> vector<16x256xf32>
    %c0_140 = arith.constant 0 : index
    %c0_141 = arith.constant 0 : index
    %388 = vector.load %arg13[%c0_140, %c0_141] : memref<1x256xf32, #tpu.memory_space<vmem>>, vector<1x256xf32>
    %389 = vector.broadcast %388 : vector<1x256xf32> to vector<16x256xf32>
    %390 = arith.addf %387, %389 : vector<16x256xf32>
    %cst_142 = arith.constant 0.000000e+00 : f32
    %391 = vector.broadcast %cst_142 : f32 to vector<16x256xf32>
    %392 = arith.maximumf %390, %391 : vector<16x256xf32>
    %393 = arith.truncf %392 : vector<16x256xf32> to vector<16x256xbf16>
    %c0_143 = arith.constant 0 : index
    %c0_144 = arith.constant 0 : index
    %394 = vector.load %arg14[%c0_143, %c0_144] : memref<256x128xbf16, #tpu.memory_space<vmem>>, vector<256x128xbf16>
    %cst_145 = arith.constant dense<0.000000e+00> : vector<16x128xf32>
    %395 = tpu.matmul %393, %394, %cst_145 {dimension_numbers = #tpu.dot_dimension_numbers<[1], [0], [0], [1], [0, 0, 1, 1], [], []>} : vector<16x256xbf16>, vector<256x128xbf16>, vector<16x128xf32> -> vector<16x128xf32>
    %c0_146 = arith.constant 0 : index
    %c0_147 = arith.constant 0 : index
    %396 = vector.load %arg15[%c0_146, %c0_147] : memref<1x128xf32, #tpu.memory_space<vmem>>, vector<1x128xf32>
    %397 = vector.broadcast %396 : vector<1x128xf32> to vector<16x128xf32>
    %398 = arith.addf %395, %397 : vector<16x128xf32>
    %399 = arith.addf %384, %398 : vector<16x128xf32>
    %c0_148 = arith.constant 0 : index
    %c0_149 = arith.constant 0 : index
    %400 = vector.load %arg16[%c0_148, %c0_149] : memref<1x128xf32, #tpu.memory_space<vmem>>, vector<1x128xf32>
    %c0_150 = arith.constant 0 : index
    %c0_151 = arith.constant 0 : index
    %401 = vector.load %arg17[%c0_150, %c0_151] : memref<1x128xf32, #tpu.memory_space<vmem>>, vector<1x128xf32>
    %cst_152 = arith.constant dense<0.000000e+00> : vector<16xf32>
    %402 = vector.multi_reduction <add>, %399, %cst_152 [1] : vector<16x128xf32> to vector<16xf32>
    %403 = vector.shape_cast %402 : vector<16xf32> to vector<16x1xf32>
    %cst_153 = arith.constant 1.280000e+02 : f32
    %404 = vector.broadcast %cst_153 : f32 to vector<16x1xf32>
    %405 = arith.divf %403, %404 : vector<16x1xf32>
    %406 = vector.broadcast %405 : vector<16x1xf32> to vector<16x128xf32>
    %407 = arith.subf %399, %406 : vector<16x128xf32>
    %408 = arith.mulf %407, %407 : vector<16x128xf32>
    %cst_154 = arith.constant dense<0.000000e+00> : vector<16xf32>
    %409 = vector.multi_reduction <add>, %408, %cst_154 [1] : vector<16x128xf32> to vector<16xf32>
    %410 = vector.shape_cast %409 : vector<16xf32> to vector<16x1xf32>
    %cst_155 = arith.constant 0.00787401571 : f32
    %411 = vector.broadcast %cst_155 : f32 to vector<16x1xf32>
    %412 = arith.mulf %410, %411 : vector<16x1xf32>
    %413 = math.sqrt %412 : vector<16x1xf32>
    %414 = vector.broadcast %405 : vector<16x1xf32> to vector<16x128xf32>
    %415 = arith.subf %399, %414 : vector<16x128xf32>
    %416 = vector.broadcast %400 : vector<1x128xf32> to vector<16x128xf32>
    %417 = arith.mulf %416, %415 : vector<16x128xf32>
    %cst_156 = arith.constant 9.99999997E-7 : f32
    %418 = vector.broadcast %cst_156 : f32 to vector<16x1xf32>
    %419 = arith.addf %413, %418 : vector<16x1xf32>
    %420 = tpu.reciprocal %419 {approx = true} : vector<16x1xf32> -> vector<16x1xf32>
    %421 = vector.broadcast %420 : vector<16x1xf32> to vector<16x128xf32>
    %422 = arith.mulf %417, %421 : vector<16x128xf32>
    %423 = vector.broadcast %401 : vector<1x128xf32> to vector<16x128xf32>
    %424 = arith.addf %422, %423 : vector<16x128xf32>
    %425 = vector.shape_cast %424 : vector<16x128xf32> to vector<2x8x128xf32>
    %c0_157 = arith.constant 0 : index
    %c0_158 = arith.constant 0 : index
    %c0_159 = arith.constant 0 : index
    %426 = vector.load %arg18[%c0_157, %c0_158, %c0_159] : memref<2x8x128xf32, #tpu.memory_space<vmem>>, vector<2x8x128xf32>
    tpu.vector_store %arg18[%c0_157, %c0_158, %c0_159], %425 {strides = array<i32>} : memref<2x8x128xf32, #tpu.memory_space<vmem>>, vector<2x8x128xf32>,
    return
  }
  func.func @transform_0(%arg0: i32) -> (i32, i32, i32) {
    %c0_i32 = arith.constant 0 : i32
    %c0_i32_0 = arith.constant 0 : i32
    %c0_i32_1 = arith.constant 0 : i32
    return %arg0, %c0_i32, %c0_i32_0 : i32, i32, i32
  }
  func.func @transform_1(%arg0: i32) -> (i32, i32, i32) {
    %c0_i32 = arith.constant 0 : i32
    %c0_i32_0 = arith.constant 0 : i32
    %c0_i32_1 = arith.constant 0 : i32
    return %arg0, %c0_i32, %c0_i32_0 : i32, i32, i32
  }
  func.func @transform_2(%arg0: i32) -> (i32, i32) {
    %c0_i32 = arith.constant 0 : i32
    %c0_i32_0 = arith.constant 0 : i32
    %c0_i32_1 = arith.constant 0 : i32
    return %c0_i32, %c0_i32_0 : i32, i32
  }
  func.func @transform_3(%arg0: i32) -> (i32, i32) {
    %c0_i32 = arith.constant 0 : i32
    %c0_i32_0 = arith.constant 0 : i32
    %c0_i32_1 = arith.constant 0 : i32
    return %c0_i32, %c0_i32_0 : i32, i32
  }
  func.func @transform_4(%arg0: i32) -> (i32, i32) {
    %c0_i32 = arith.constant 0 : i32
    %c0_i32_0 = arith.constant 0 : i32
    %c0_i32_1 = arith.constant 0 : i32
    return %c0_i32, %c0_i32_0 : i32, i32
  }
  func.func @transform_5(%arg0: i32) -> (i32, i32) {
    %c0_i32 = arith.constant 0 : i32
    %c0_i32_0 = arith.constant 0 : i32
    %c0_i32_1 = arith.constant 0 : i32
    return %c0_i32, %c0_i32_0 : i32, i32
  }
  func.func @transform_6(%arg0: i32) -> (i32, i32) {
    %c0_i32 = arith.constant 0 : i32
    %c0_i32_0 = arith.constant 0 : i32
    %c0_i32_1 = arith.constant 0 : i32
    return %c0_i32, %c0_i32_0 : i32, i32
  }
  func.func @transform_7(%arg0: i32) -> (i32, i32) {
    %c0_i32 = arith.constant 0 : i32
    %c0_i32_0 = arith.constant 0 : i32
    %c0_i32_1 = arith.constant 0 : i32
    return %c0_i32, %c0_i32_0 : i32, i32
  }
  func.func @transform_8(%arg0: i32) -> (i32, i32) {
    %c0_i32 = arith.constant 0 : i32
    %c0_i32_0 = arith.constant 0 : i32
    %c0_i32_1 = arith.constant 0 : i32
    return %c0_i32, %c0_i32_0 : i32, i32
  }
  func.func @transform_9(%arg0: i32) -> (i32, i32) {
    %c0_i32 = arith.constant 0 : i32
    %c0_i32_0 = arith.constant 0 : i32
    %c0_i32_1 = arith.constant 0 : i32
    return %c0_i32, %c0_i32_0 : i32, i32
  }
  func.func @transform_10(%arg0: i32) -> (i32, i32) {
    %c0_i32 = arith.constant 0 : i32
    %c0_i32_0 = arith.constant 0 : i32
    %c0_i32_1 = arith.constant 0 : i32
    return %c0_i32, %c0_i32_0 : i32, i32
  }
  func.func @transform_11(%arg0: i32) -> (i32, i32) {
    %c0_i32 = arith.constant 0 : i32
    %c0_i32_0 = arith.constant 0 : i32
    %c0_i32_1 = arith.constant 0 : i32
    return %c0_i32, %c0_i32_0 : i32, i32
  }
  func.func @transform_12(%arg0: i32) -> (i32, i32) {
    %c0_i32 = arith.constant 0 : i32
    %c0_i32_0 = arith.constant 0 : i32
    %c0_i32_1 = arith.constant 0 : i32
    return %c0_i32, %c0_i32_0 : i32, i32
  }
  func.func @transform_13(%arg0: i32) -> (i32, i32) {
    %c0_i32 = arith.constant 0 : i32
    %c0_i32_0 = arith.constant 0 : i32
    %c0_i32_1 = arith.constant 0 : i32
    return %c0_i32, %c0_i32_0 : i32, i32
  }
  func.func @transform_14(%arg0: i32) -> (i32, i32) {
    %c0_i32 = arith.constant 0 : i32
    %c0_i32_0 = arith.constant 0 : i32
    %c0_i32_1 = arith.constant 0 : i32
    return %c0_i32, %c0_i32_0 : i32, i32
  }
  func.func @transform_15(%arg0: i32) -> (i32, i32) {
    %c0_i32 = arith.constant 0 : i32
    %c0_i32_0 = arith.constant 0 : i32
    %c0_i32_1 = arith.constant 0 : i32
    return %c0_i32, %c0_i32_0 : i32, i32
  }
  func.func @transform_16(%arg0: i32) -> (i32, i32) {
    %c0_i32 = arith.constant 0 : i32
    %c0_i32_0 = arith.constant 0 : i32
    %c0_i32_1 = arith.constant 0 : i32
    return %c0_i32, %c0_i32_0 : i32, i32
  }
  func.func @transform_17(%arg0: i32) -> (i32, i32, i32) {
    %c0_i32 = arith.constant 0 : i32
    %c0_i32_0 = arith.constant 0 : i32
    %c0_i32_1 = arith.constant 0 : i32
    return %arg0, %c0_i32, %c0_i32_0 : i32, i32, i32
  }
}

</mosaic_0001>

<bundles_post_ra>
// kernel: tpu_custom_call.1
= control target key start
LH: loop header
LB: loop body
LE: loop exit
PB: predicated region body
PF: predicated region fallthrough
CT: control target
= control target key end

     0   :  { %s3656_s0 = inlined_call_operand.hbm [shape: bf16[2,8,128], index: 0, kind: input, shape index: {}]   ;;  %s3657_s1 = inlined_call_operand.hbm [shape: bf16[2,16,128], index: 1, kind: input, shape index: {}]   ;;  %s3658_s2 = inlined_call_operand.hbm [shape: bf16[128,384], index: 2, kind: input, shape index: {}]   ;;  %s3659_s3 = inlined_call_operand.hbm [shape: bf16[128,128], index: 3, kind: input, shape index: {}]   ;;  %s3660_s4 = inlined_call_operand.vmem [shape: f32[1,128], index: 4, kind: input, shape index: {}]   ;;  %s3661_s5 = inlined_call_operand.vmem [shape: f32[1,128], index: 5, kind: input, shape index: {}]   ;;  %s3662_s6 = inlined_call_operand.hbm [shape: bf16[128,128], index: 6, kind: input, shape index: {}]   ;;  %s3663_s7 = inlined_call_operand.hbm [shape: bf16[128,256], index: 7, kind: input, shape index: {}]   ;;  %s3664_s8 = inlined_call_operand.hbm [shape: bf16[128,128], index: 8, kind: input, shape index: {}]   ;;  %s3665_s9 = inlined_call_operand.vmem [shape: f32[1,128], index: 9, kind: input, shape index: {}]   ;;  %s3666_s10 = inlined_call_operand.vmem [shape: f32[1,128], index: 10, kind: input, shape index: {}]   ;;  %s3667_s11 = inlined_call_operand.hbm [shape: bf16[128,256], index: 11, kind: input, shape index: {}]   ;;  %s3668_s12 = inlined_call_operand.vmem [shape: f32[1,256], index: 12, kind: input, shape index: {}]   ;;  %s3669_s13 = inlined_call_operand.hbm [shape: bf16[256,128], index: 13, kind: input, shape index: {}]   ;;  %s3670_s14 = inlined_call_operand.vmem [shape: f32[1,128], index: 14, kind: input, shape index: {}]   ;;  %s3671_s15 = inlined_call_operand.vmem [shape: f32[1,128], index: 15, kind: input, shape index: {}]   ;;  %s3672_s16 = inlined_call_operand.vmem [shape: f32[1,128], index: 16, kind: input, shape index: {}]   ;;  %s3673_s17 = inlined_call_operand.hbm [shape: f32[2,8,128], index: 17, kind: output, shape index: {}]  }
   0x1   :  { %3674 = sst [smem:[#allocation25_spill]] %s3656_s0 }
   0x2   :  { %3675 = sst [smem:[#allocation26_spill]] %s3657_s1 }
   0x3   :  { %22 = vsyncpa [#allocation4], 0 }
   0x4   :  { %23 = vsyncpa [#allocation7], 0 }
   0x5   :  { %24 = vsyncpa [#allocation10], 0 }
   0x6   :  { %25 = vsyncpa [#allocation13], 0 }
   0x7   :  { %26 = vsyncpa [#allocation16], 0 }
   0x8   :  { %27 = vsyncpa [#allocation5], 0  ;;  %s3676_s26 = sld [smem:[#allocation26_spill]]  ;;  %s3211_s28 = smov [#allocation6]  }
   0x9   :  { %s47_s29 = sshll.u32 %s3211_s28, 4  ;;  %s71_s18 = sshll.u32 %s3659_s3, 4  ;;  %s48_s29 = int_to_ptr.vmem [resolvable:$true] %s47_s29  ;;  %s72_s18 = int_to_ptr.hbm [resolvable:$true] %s71_s18 }
   0xa   :  { %s3212_s19 = smov 64   ;;  %s3213_s1 = smov 4  }
   0xb   :  { %s3214_s20 = smov [#allocation9]   ;;  %s101_s24 = sshll.u32 %s3663_s7, 4  ;;  %s102_s24 = int_to_ptr.hbm [resolvable:$true] %s101_s24 }
   0xc   :  { %s73_s21 = sshll.u32 %s3214_s20, 4  ;;  %s3215_s3 = smov [#allocation12]   ;;  %s74_s21 = int_to_ptr.vmem [resolvable:$true] %s73_s21 }
   0xd   :  { %79 = dma.hbm_to_vmem [thread:$0]  %s72_s18, 1024, %s74_s21, [#allocation10], %s3212_s19, %s3212_s19, %s3213_s1  }
   0xe   :  { %s45_s27 = sshll.u32 %s3676_s26, 4  ;;  %s103_s25 = sshll.u32 %s3215_s3, 4  ;;  %s46_s27 = int_to_ptr.hbm [resolvable:$true] %s45_s27  ;;  %s104_s25 = int_to_ptr.vmem [resolvable:$true] %s103_s25 }
   0xf   :  { %53 = dma.hbm_to_vmem [thread:$0]  %s46_s27, 256, %s48_s29, [#allocation7], %s3212_s19, %s3212_s19, %s3213_s1  }
  0x10   :  { %s131_s27 = sshll.u32 %s3667_s11, 4  ;;  %s3216_s29 = smov 128   ;;  %s132_s27 = int_to_ptr.hbm [resolvable:$true] %s131_s27 }
  0x11   :  { %s3217_s0 = smov 8   ;;  %s3218_s7 = smov [#allocation15]  }
  0x12   :  { %109 = dma.hbm_to_vmem [thread:$0]  %s102_s24, 2048, %s104_s25, [#allocation13], %s3216_s29, %s3216_s29, %s3217_s0  }
  0x13   :  { %s133_s30 = sshll.u32 %s3218_s7, 4  ;;  %s3677_s23 = sld [smem:[#allocation25_spill]]  ;;  %s134_s30 = int_to_ptr.vmem [resolvable:$true] %s133_s30 }
  0x14   :  { %139 = dma.hbm_to_vmem [thread:$0]  %s132_s27, 2048, %s134_s30, [#allocation16], %s3216_s29, %s3216_s29, %s3217_s0  }
  0x15   :  { %s58_s3 = sshll.u32 %s3658_s2, 4  ;;  %s3219_s26 = smov [#allocation3]   ;;  %s59_s3 = int_to_ptr.hbm [resolvable:$true] %s58_s3 }
  0x16   :  { %s34_s28 = sshll.u32 %s3219_s26, 4  ;;  %s3220_s24 = smov [#allocation8]   ;;  %s35_s28 = int_to_ptr.vmem [resolvable:$true] %s34_s28 }
  0x17   :  { %s60_s25 = sshll.u32 %s3220_s24, 4  ;;  %s3221_s7 = smov 192   ;;  %s61_s25 = int_to_ptr.vmem [resolvable:$true] %s60_s25 }
  0x18   :  { %s3222_s20 = smov 12   ;;  %s88_s30 = sshll.u32 %s3662_s6, 4  ;;  %s89_s30 = int_to_ptr.hbm [resolvable:$true] %s88_s30 }
  0x19   :  { %s32_s18 = sshll.u32 %s3677_s23, 4  ;;  %s3223_s2 = smov [#allocation11]   ;;  %s33_s18 = int_to_ptr.hbm [resolvable:$true] %s32_s18 }
  0x1a   :  { %40 = dma.hbm_to_vmem [thread:$0]  %s33_s18, 128, %s35_s28, [#allocation4], %s3212_s19, %s3212_s19, %s3213_s1  }
  0x1b   :  { %66 = dma.hbm_to_vmem [thread:$0]  %s59_s3, 3072, %s61_s25, [#allocation7], %s3221_s7, %s3221_s7, %s3222_s20  }
  0x1c   :  { %s90_s23 = sshll.u32 %s3223_s2, 4  ;;  %s114_s26 = sshll.u32 %s3664_s8, 4  ;;  %s91_s23 = int_to_ptr.vmem [resolvable:$true] %s90_s23  ;;  %s115_s26 = int_to_ptr.hbm [resolvable:$true] %s114_s26 }
  0x1d   :  { %96 = dma.hbm_to_vmem [thread:$0]  %s89_s30, 1024, %s91_s23, [#allocation10], %s3212_s19, %s3212_s19, %s3213_s1  }
  0x1e   :  { %s3224_s18 = smov [#allocation14]   ;;  %s146_s25 = sshll.u32 %s3669_s13, 4  ;;  %s147_s25 = int_to_ptr.hbm [resolvable:$true] %s146_s25 }
  0x1f   :  { %s116_s28 = sshll.u32 %s3224_s18, 4  ;;  %s3225_s6 = smov [#allocation17]   ;;  %s117_s28 = int_to_ptr.vmem [resolvable:$true] %s116_s28 }
  0x20   :  { %122 = dma.hbm_to_vmem [thread:$0]  %s115_s26, 1024, %s117_s28, [#allocation13], %s3212_s19, %s3212_s19, %s3213_s1  }
  0x21   :  { %s148_s7 = sshll.u32 %s3225_s6, 4  ;;  %s149_s7 = int_to_ptr.vmem [resolvable:$true] %s148_s7 }
  0x22   :  { %154 = dma.hbm_to_vmem [thread:$0]  %s147_s25, 2048, %s149_s7, [#allocation16], %s3212_s19, %s3212_s19, %s3213_s1  }
  0x23   :  { %3199 = dma.done.wait [#allocation4], 128  }
  0x24   :  { %3200 = vsyncadd [#allocation4], 4294967168 }
  0x25   :  { %3201 = dma.done.wait [#allocation7], 3328  }
  0x26   :  { %3202 = vsyncadd [#allocation7], 4294963968 }
  0x27   :  { %3203 = dma.done.wait [#allocation10], 2048  }
  0x28   :  { %3204 = vsyncadd [#allocation10], 4294965248 }
  0x29   :  { %3205 = dma.done.wait [#allocation13], 3072  }
  0x2a   :  { %3206 = vsyncadd [#allocation13], 4294964224 }
  0x2b   :  { %3207 = dma.done.wait [#allocation16], 4096  }
  0x2c   :  { %3208 = vsyncadd [#allocation16], 4294963200  ;;  %v2405_v0 = vld [vmem:[#allocation8 + $0xa8] sm:$0xf]  ;;  %v2768_v1 = vld [vmem:[#allocation8 + $0xb0] sm:$0xf0] }
  0x2d   :  { %v2767_v2 = vld [vmem:[#allocation8 + $0xac] sm:$0xf]  ;;  %v2406_v3 = vor.u32 %v2768_v1, %v2405_v0  ;;  %v2407_v4 = vld [vmem:[#allocation8 + $0xb4] sm:$0xf0]  ;;  %v2393_v5 = vld [vmem:[#allocation8 + $0x90] sm:$0xf] }
  0x2e   :  { %v2765_v6 = vld [vmem:[#allocation8 + $0x98] sm:$0xf0]  ;;  %v2410_v7 = vor.u32 %v2767_v2, %v2407_v4  ;;  %v2764_v8 = vld [vmem:[#allocation8 + $0x94] sm:$0xf]  ;;  %v2395_v9 = vld [vmem:[#allocation8 + $0x9c] sm:$0xf0] }
  0x2f   :  { %370 = vmatpush.bf16.msra.mxu0 %v2406_v3  ;;  %v2394_v10 = vor.u32 %v2765_v6, %v2393_v5  ;;  %v2398_v11 = vor.u32 %v2764_v8, %v2395_v9  ;;  %v2381_v12 = vld [vmem:[#allocation8 + $0x78] sm:$0xf]  ;;  %v2762_v13 = vld [vmem:[#allocation8 + $0x80] sm:$0xf0]  ;;  %v2761_v14 = vld [vmem:[#allocation8 + $0x7c] sm:$0xf] }
  0x30   :  { %384 = vmatpush.bf16.msra.mxu1 %v2410_v7  ;;  %v2383_v15 = vld [vmem:[#allocation8 + $0x84] sm:$0xf0]  ;;  %v2382_v16 = vor.u32 %v2762_v13, %v2381_v12  ;;  %v2369_v18 = vld [vmem:[#allocation8 + $0x60] sm:$0xf]  ;;  %v2759_v19 = vld [vmem:[#allocation8 + $0x68] sm:$0xf0] }
  0x31   :  { %v2386_v17 = vor.u32 %v2761_v14, %v2383_v15  ;;  %v2758_v20 = vld [vmem:[#allocation8 + $0x64] sm:$0xf]  ;;  %v2371_v21 = vld [vmem:[#allocation8 + $0x6c] sm:$0xf0]  ;;  %v2370_v22 = vor.u32 %v2759_v19, %v2369_v18  ;;  %v2769_v24 = vld [vmem:[#allocation8 + $0xb8] sm:$0xf0] }
  0x32   :  { %v2413_v23 = vld [vmem:[#allocation8 + $0xb0] sm:$0xf]  ;;  %v2401_v25 = vld [vmem:[#allocation8 + $0x98] sm:$0xf]  ;;  %v2374_v26 = vor.u32 %v2758_v20, %v2371_v21  ;;  %v2357_v27 = vld [vmem:[#allocation8 + $0x48] sm:$0xf] }
  0x33   :  { %371 = vmatpush.bf16.msra.mxu0 %v2394_v10  ;;  %v2756_v28 = vld [vmem:[#allocation8 + $0x50] sm:$0xf0]  ;;  %v2414_v29 = vor.u32 %v2769_v24, %v2413_v23  ;;  %v2766_v30 = vld [vmem:[#allocation8 + $0xa0] sm:$0xf0]  ;;  %v2755_v31 = vld [vmem:[#allocation8 + $0x4c] sm:$0xf] }
  0x34   :  { %385 = vmatpush.bf16.msra.mxu1 %v2398_v11  ;;  %v2359_v32 = vld [vmem:[#allocation8 + $0x54] sm:$0xf0]  ;;  %v2345_v33 = vld [vmem:[#allocation8 + $0x30] sm:$0xf]  ;;  %v2753_v34 = vld [vmem:[#allocation8 + $0x38] sm:$0xf0]  ;;  %v2402_v35 = vor.u32 %v2766_v30, %v2401_v25  ;;  %v2358_v36 = vor.u32 %v2756_v28, %v2357_v27 }
  0x35   :  { %398 = vmatpush.bf16.msra.mxu2 %v2414_v29  ;;  %v2752_v37 = vld [vmem:[#allocation8 + $0x34] sm:$0xf]  ;;  %v2389_v38 = vld [vmem:[#allocation8 + $0x80] sm:$0xf]  ;;  %v2763_v39 = vld [vmem:[#allocation8 + $0x88] sm:$0xf0]  ;;  %v2362_v40 = vor.u32 %v2755_v31, %v2359_v32  ;;  %v2346_v43 = vor.u32 %v2753_v34, %v2345_v33 }
  0x36   :  { %v2347_v41 = vld [vmem:[#allocation8 + $0x3c] sm:$0xf0]  ;;  %v2390_v42 = vor.u32 %v2763_v39, %v2389_v38  ;;  %v2377_v44 = vld [vmem:[#allocation8 + $0x68] sm:$0xf]  ;;  %v2760_v45 = vld [vmem:[#allocation8 + $0x70] sm:$0xf0] }
  0x37   :  { %372 = vmatpush.bf16.msra.mxu0 %v2382_v16  ;;  %v2350_v46 = vor.u32 %v2752_v37, %v2347_v41  ;;  %v2333_v47 = vld [vmem:[#allocation8 + $0x18] sm:$0xf]  ;;  %v2750_v48 = vld [vmem:[#allocation8 + $0x20] sm:$0xf0]  ;;  %v2749_v49 = vld [vmem:[#allocation8 + $0x1c] sm:$0xf]  ;;  %v2378_v51 = vor.u32 %v2760_v45, %v2377_v44 }
  0x38   :  { %386 = vmatpush.bf16.msra.mxu1 %v2386_v17  ;;  %v2335_v50 = vld [vmem:[#allocation8 + $0x24] sm:$0xf0]  ;;  %v2334_v52 = vor.u32 %v2750_v48, %v2333_v47  ;;  %v2365_v53 = vld [vmem:[#allocation8 + $0x50] sm:$0xf]  ;;  %v2757_v54 = vld [vmem:[#allocation8 + $0x58] sm:$0xf0] }
  0x39   :  { %399 = vmatpush.bf16.msra.mxu2 %v2402_v35  ;;  %v2338_v55 = vor.u32 %v2749_v49, %v2335_v50  ;;  %v2321_v56 = vld [vmem:[#allocation8] sm:$0xf]  ;;  %v2747_v57 = vld [vmem:[#allocation8 + $0x8] sm:$0xf0]  ;;  %v2746_v58 = vld [vmem:[#allocation8 + $0x4] sm:$0xf]  ;;  %v2366_v60 = vor.u32 %v2757_v54, %v2365_v53 }
  0x3a   :  { %v2323_v59 = vld [vmem:[#allocation8 + $0xc] sm:$0xf0]  ;;  %v2322_v61 = vor.u32 %v2747_v57, %v2321_v56  ;;  %v2353_v62 = vld [vmem:[#allocation8 + $0x38] sm:$0xf]  ;;  %v2754_v63 = vld [vmem:[#allocation8 + $0x40] sm:$0xf0] }
  0x3b   :  { %373 = vmatpush.bf16.msra.mxu0 %v2370_v22  ;;  %v2326_v0 = vor.u32 %v2746_v58, %v2323_v59  ;;  %v2743_v1 = vld [vmem:[#allocation3] sm:$0xff]  ;;  %v2354_v2 = vor.u32 %v2754_v63, %v2353_v62  ;;  %v2341_v3 = vld [vmem:[#allocation8 + $0x20] sm:$0xf]  ;;  %v2748_v7 = vld [vmem:[#allocation8 + $0x10] sm:$0xf0]  ;;  %vm426_vm0 = vcmask 261120  }
  0x3c   :  { %387 = vmatpush.bf16.msra.mxu1 %v2374_v26  ;;  %v2751_v4 = vld [vmem:[#allocation8 + $0x28] sm:$0xf0]  ;;  %v2329_v6 = vld [vmem:[#allocation8 + $0x8] sm:$0xf]  ;;  %s3226_s8 = smov 96   ;;  %s3227_s13 = smov 32  }
  0x3d   :  { %400 = vmatpush.bf16.msra.mxu2 %v2390_v42  ;;  %v2342_v5 = vor.u32 %v2751_v4, %v2341_v3  ;;  %v2330_v8 = vor.u32 %v2748_v7, %v2329_v6  ;;  %vm463_vm1 = vcmask 1043456   ;;  %v3228_v39 = vmov 0.0   ;;  %s2298_s3 = sshll.u32 %s3673_s17, 4  ;;  %s2299_s3 = int_to_ptr.hbm [resolvable:$true] %s2298_s3 }
  0x3e   :  { %vm447_vm3 = vcmask 64512   ;;  %vm551_vm4 = vcmask 523520   ;;  %vm614_vm5 = vcmask 785920   ;;  %vm677_vm6 = vcmask 1048320  }
  0x3f   :  { %374 = vmatpush.bf16.msra.mxu0 %v2358_v36  ;;  %v420_v36 = vlaneseq  ;;  %vm1337_vm12 = vcmask 130048  }
  0x40   :  { %388 = vmatpush.bf16.msra.mxu1 %v2362_v40 }
  0x41   :  { %401 = vmatpush.bf16.msra.mxu2 %v2378_v51  ;;  %v421_v37 = vshrl.u32 %v420_v36, 7  ;;  %v423_v38 = vand.u32 127, %v420_v36 }
  0x43   :  { %375 = vmatpush.bf16.msra.mxu0 %v2346_v43  ;;  %vm424_vm2 = vcmp.gt.s32.totalorder %v423_v38, %v421_v37 }
  0x44   :  { %389 = vmatpush.bf16.msra.mxu1 %v2350_v46  ;;  %v3394_v40 = vsel %vm424_vm2, 8.8388346e+08, %v3228_v39 }
  0x45   :  { %402 = vmatpush.bf16.msra.mxu2 %v2366_v60 }
  0x47   :  { %376 = vmatpush.bf16.msra.mxu0 %v2334_v52 }
  0x48   :  { %390 = vmatpush.bf16.msra.mxu1 %v2338_v55 }
  0x49   :  { %403 = vmatpush.bf16.msra.mxu2 %v2354_v2 }
  0x4b   :  { %377 = vmatpush.bf16.msra.mxu0 %v2322_v61 }
  0x4c   :  { %391 = vmatpush.bf16.msra.mxu1 %v2326_v0 }
  0x4d   :  { %404 = vmatpush.bf16.msra.mxu2 %v2342_v5 }
  0x4e   :  { %378 = vmatmul.bf16.vlgmr.msra.gmra.mxu0 %v2743_v1 }
  0x4f   :  { %392 = vmatmul.bf16.vlgmr.msra.gmra.mxu1 %v2743_v1 }
  0x51   :  { %405 = vmatpush.bf16.msra.mxu2 %v2330_v8 }
  0x54   :  { %406 = vmatmul.bf16.vlgmr.msra.gmra.mxu2 %v2743_v1 }
  0xcb   :  { %v379_v9 = vpop.f32.mrf.mxu0 }
  0xcc   :  { %v412_v10 = vmul.f32 0.088388346, %v379_v9  ;;  %v393_v11 = vpop.f32.mrf.mxu1 }
  0xcd   :  { %v416_v12 = vpack.c.bf16 %v393_v11, %v393_v11 }
  0xce   :  { %v414_v13 = vpack.c.bf16 %v412_v10, %v412_v10 }
  0xcf   :  { %v487_v14 = vunpack.c.l.b16 %v416_v12  ;;  %v431_v15 = vsel %vm426_vm0, %v416_v12, 0 }
  0xd0   :  { %440 = vmatpush.bf16.xpose.msrb.mxu0 %v431_v15  ;;  %v482_v17 = vunpack.c.l.b16 %v414_v13 }
  0xd1   :  { %v488_v16 = vpack.c.b16 %v487_v14, %v487_v14 }
  0xd2   :  { %v483_v19 = vpack.c.b16 %v482_v17, %v482_v17 }
  0xd3   :  { %555 = vrot.lane.b32.xlu2 %v488_v16, %s3212_s19  ;;  %489 = vrot.lane.b32.xlu1 %v488_v16, %s3226_s8  ;;  %v381_v21 = vpop.f32.mrf.mxu0 }
  0xd4   :  { %v395_v18 = vpop.f32.mrf.mxu1  ;;  %v413_v22 = vmul.f32 0.088388346, %v381_v21 }
  0xd5   :  { %v417_v20 = vpack.c.bf16 %v395_v18, %v395_v18 }
  0xd6   :  { %v3378_v24 = vpack.c.bf16 %v413_v22, %v413_v22 }
  0xd7   :  { %2415 = vmatmul.msk.bf16.vlgmr.msrb.gmra.mxu0 %vm426_vm0, %v414_v13  ;;  %v737_v23 = vunpack.c.l.b16 %v417_v20  ;;  %v407_v28 = vpop.f32.mrf.mxu2  ;;  %v683_v33 = vsel %vm426_vm0, %v417_v20, 0 }
  0xd8   :  { %v732_v26 = vunpack.c.l.b16 %v3378_v24  ;;  %v3387_v29 = vpack.c.bf16 %v407_v28, %v407_v28 }
  0xd9   :  { %v738_v25 = vpack.c.b16 %v737_v23, %v737_v23 }
  0xda   :  { %v733_v27 = vpack.c.b16 %v732_v26, %v732_v26  ;;  %v465_v30 = vsel %vm463_vm1, %v3387_v29, 0 }
  0xdb   :  { %618 = vrot.lane.b32.xlu2 %v488_v16, %s3227_s13  ;;  %484 = vrot.lane.b32.xlu1 %v483_v19, %s3226_s8 }
  0xdc   :  { %474 = vmatpush.bf16.msra.mxu3 %v465_v30 }
  0xe3   :  { %739 = vrot.lane.b32.xlu2 %v738_v25, %s3226_s8  ;;  %616 = vrot.lane.b32.xlu1 %v483_v19, %s3227_s13 }
  0xeb   :  { %804 = vrot.lane.b32.xlu2 %v738_v25, %s3212_s19  ;;  %734 = vrot.lane.b32.xlu1 %v733_v27, %s3226_s8 }
  0xf3   :  { %802 = vrot.lane.b32.xlu2 %v733_v27, %s3212_s19  ;;  %866 = vrot.lane.b32.xlu1 %v738_v25, %s3227_s13 }
 0x12d   :  { %v556_v31 = vpop.permute.xlu2 %555 }
 0x12e   :  { %v561_v32 = vsel %vm426_vm0, %v556_v31, 0  ;;  %v524_v31 = vunpack.c.l.b16 %v3387_v29 }
 0x12f   :  { %570 = vmatpush.bf16.xpose.msrb.mxu1 %v561_v32 }
 0x130   :  { %v525_v32 = vpack.c.b16 %v524_v31, %v524_v31 }
 0x135   :  { %v619_v50 = vpop.permute.xlu2 %618 }
 0x136   :  { %v624_v57 = vsel %vm426_vm0, %v619_v50, 0 }
 0x137   :  { %692 = vmatpush.bf16.xpose.msra.mxu1 %v683_v33 }
 0x13d   :  { %v740_v53 = vpop.permute.xlu2 %739 }
 0x13e   :  { %v745_v62 = vsel %vm426_vm0, %v740_v53, 0 }
 0x145   :  { %v490_v34 = vpop.permute.xlu1 %489  ;;  %v805_v58 = vpop.permute.xlu2 %804 }
 0x146   :  { %v495_v35 = vsel %vm426_vm0, %v490_v34, 0  ;;  %v810_v60 = vsel %vm426_vm0, %v805_v58, 0 }
 0x147   :  { %504 = vmatpush.bf16.xpose.msrb.mxu3 %v495_v35 }
 0x14d   :  { %v485_v56 = vpop.permute.xlu1 %484  ;;  %v803_v2 = vpop.permute.xlu2 %802 }
 0x154   :  { %v442_v41 = vpop.f32.mrf.mxu0 }
 0x155   :  { %v446_v42 = vsub.f32 %v442_v41, %v3394_v40  ;;  %v617_v61 = vpop.permute.xlu1 %616 }
 0x157   :  { %v448_v43 = vsel %vm447_vm3, %v446_v42, -inf }
 0x158   :  { %449 = vmax.xlane.f32.xlu0 %v448_v43 }
 0x15c   :  { %v444_v44 = vpop.f32.mrf.mxu0 }
 0x15d   :  { %v735_v63 = vpop.permute.xlu1 %734 }
 0x165   :  { %v867_v0 = vpop.permute.xlu1 %866 }
 0x166   :  { %v872_v1 = vsel %vm426_vm0, %v867_v0, 0 }
 0x1cb   :  { %v450_v45 = vpop.xlane.xlu0 %449 }
 0x1cc   :  { %v451_v46 = vsub.f32 %v446_v42, %v450_v45 }
 0x1ce   :  { %v452_v47 = vmul.f32 1.442695, %v451_v46 }
 0x1d0   :  { %2869 = vpow2.f32 %v452_v47 }
 0x1d6   :  { %v2870_v48 = vpop.eup %2869 }
 0x1d7   :  { %v454_v49 = vsel %vm447_vm3, %v2870_v48, 0.0 }
 0x1d8   :  { %455 = vadd.xlane.f32.xlu0 %v454_v49 }
 0x1ec   :  { %553 = vrot.lane.b32.xlu0 %v483_v19, %s3212_s19 }
 0x1f4   :  { %864 = vrot.lane.b32.xlu0 %v733_v27, %s3227_s13 }
 0x24b   :  { %v456_v51 = vpop.xlane.xlu0 %455 }
 0x24c   :  { %2871 = vrcp.f32 %v456_v51 }
 0x252   :  { %v2872_v52 = vpop.eup %2871 }
 0x253   :  { %v458_v54 = vmul.f32 %v2872_v52, %v2870_v48 }
 0x255   :  { %v459_v55 = vpack.c.bf16 %v458_v54, %v458_v54 }
 0x257   :  { %2416 = vmatmul.msk.bf16.vlgmr.msra.gmra.mxu3 %vm447_vm3, %v459_v55 }
 0x258   :  { %633 = vmatpush.bf16.xpose.msra.mxu3 %v624_v57 }
 0x25e   :  { %v554_v59 = vpop.permute.xlu0 %553 }
 0x25f   :  { %2419 = vmatmul.msk.bf16.vlgmr.msrb.gmra.mxu1 %vm426_vm0, %v554_v59 }
 0x260   :  { %819 = vmatpush.bf16.xpose.msrb.mxu1 %v810_v60  ;;  %v409_v60 = vpop.f32.mrf.mxu2 }
 0x266   :  { %v865_v3 = vpop.permute.xlu0 %864 }
 0x267   :  { %2417 = vmatmul.msk.bf16.vlgmr.msrb.gmra.mxu3 %vm426_vm0, %v485_v56 }
 0x268   :  { %754 = vmatpush.bf16.xpose.msrb.mxu3 %v745_v62 }
 0x26f   :  { %2423 = vmatmul.msk.bf16.vlgmr.msra.gmra.mxu1 %vm426_vm0, %v3378_v24 }
 0x277   :  { %2421 = vmatmul.msk.bf16.vlgmr.msra.gmra.mxu3 %vm426_vm0, %v617_v61  ;;  %v419_v61 = vpack.c.bf16 %v409_v60, %v409_v60 }
 0x278   :  { %881 = vmatpush.bf16.xpose.msra.mxu3 %v872_v1 }
 0x279   :  { %v774_v1 = vunpack.c.l.b16 %v419_v61 }
 0x27f   :  { %2427 = vmatmul.msk.bf16.vlgmr.msrb.gmra.mxu1 %vm426_vm0, %v803_v2 }
 0x287   :  { %2425 = vmatmul.msk.bf16.vlgmr.msrb.gmra.mxu3 %vm426_vm0, %v735_v63 }
 0x297   :  { %2429 = vmatmul.msk.bf16.vlgmr.msra.gmra.mxu3 %vm426_vm0, %v865_v3  ;;  %v775_v3 = vpack.c.b16 %v774_v1, %v774_v1 }
 0x2da   :  { %v476_v4 = vpop.f32.mrf.mxu3 }
 0x2db   :  { %480 = vst.msk [vmem:[#allocation2] sm:$0xff] %vm426_vm0, %v476_v4 }
 0x2dc   :  { %v572_v5 = vpop.f32.mrf.mxu1 }
 0x2dd   :  { %v576_v6 = vsub.f32 %v572_v5, %v3394_v40 }
 0x2df   :  { %v577_v7 = vsel %vm447_vm3, %v576_v6, -inf }
 0x2e0   :  { %578 = vmax.xlane.f32.xlu2 %v577_v7 }
 0x2e2   :  { %v478_v8 = vpop.f32.mrf.mxu3 }
 0x2e4   :  { %v574_v9 = vpop.f32.mrf.mxu1 }
 0x2ea   :  { %v506_v10 = vpop.f32.mrf.mxu3 }
 0x2eb   :  { %v510_v11 = vsub.f32 %v506_v10, %v3394_v40 }
 0x2ec   :  { %v694_v12 = vpop.f32.mrf.mxu1 }
 0x2ed   :  { %v698_v13 = vsub.f32 %v694_v12, %v3394_v40  ;;  %v511_v14 = vsel %vm447_vm3, %v510_v11, -inf }
 0x2ee   :  { %512 = vmax.xlane.f32.xlu1 %v511_v14 }
 0x2ef   :  { %v699_v15 = vsel %vm447_vm3, %v698_v13, -inf }
 0x2f0   :  { %700 = vmax.xlane.f32.xlu2 %v699_v15 }
 0x2f2   :  { %v508_v16 = vpop.f32.mrf.mxu3 }
 0x2f4   :  { %v696_v17 = vpop.f32.mrf.mxu1 }
 0x2fa   :  { %v635_v18 = vpop.f32.mrf.mxu3 }
 0x2fb   :  { %v639_v23 = vsub.f32 %v635_v18, %v3394_v40 }
 0x2fc   :  { %v821_v19 = vpop.f32.mrf.mxu1 }
 0x2fd   :  { %v3422_v20 = vsub.f32 %v821_v19, %v3394_v40  ;;  %v640_v25 = vsel %vm447_vm3, %v639_v23, -inf  ;;  %v715_v19 = vsel %vm463_vm1, %v419_v61, 0 }
 0x2ff   :  { %v826_v21 = vsel %vm447_vm3, %v3422_v20, -inf }
 0x300   :  { %827 = vmax.xlane.f32.xlu0 %v826_v21 }
 0x302   :  { %v637_v22 = vpop.f32.mrf.mxu3 }
 0x304   :  { %v823_v24 = vpop.f32.mrf.mxu1 }
 0x308   :  { %641 = vmax.xlane.f32.xlu0 %v640_v25 }
 0x30a   :  { %v756_v26 = vpop.f32.mrf.mxu3 }
 0x30b   :  { %v760_v27 = vsub.f32 %v756_v26, %v3394_v40 }
 0x30d   :  { %v761_v28 = vsel %vm447_vm3, %v760_v27, -inf }
 0x30e   :  { %762 = vmax.xlane.f32.xlu1 %v761_v28 }
 0x312   :  { %v758_v30 = vpop.f32.mrf.mxu3 }
 0x31a   :  { %v883_v33 = vpop.f32.mrf.mxu3 }
 0x31b   :  { %v887_v43 = vsub.f32 %v883_v33, %v3394_v40 }
 0x31c   :  { %526 = vrot.lane.b32.xlu0 %v525_v32, %s3226_s8 }
 0x31d   :  { %v888_v47 = vsel %vm447_vm3, %v887_v43, -inf }
 0x322   :  { %v885_v34 = vpop.f32.mrf.mxu3 }
 0x327   :  { %652 = vrot.lane.b32.xlu1 %v525_v32, %s3227_s13 }
 0x353   :  { %v579_v35 = vpop.xlane.xlu2 %578 }
 0x354   :  { %v580_v36 = vsub.f32 %v576_v6, %v579_v35 }
 0x356   :  { %v581_v37 = vmul.f32 1.442695, %v580_v36 }
 0x358   :  { %2873 = vpow2.f32 %v581_v37 }
 0x35e   :  { %v2874_v38 = vpop.eup %2873 }
 0x35f   :  { %v583_v39 = vsel %vm447_vm3, %v2874_v38, 0.0 }
 0x360   :  { %584 = vadd.xlane.f32.xlu2 %v583_v39 }
 0x361   :  { %v513_v41 = vpop.xlane.xlu1 %512 }
 0x362   :  { %v514_v42 = vsub.f32 %v510_v11, %v513_v41 }
 0x363   :  { %v701_v29 = vpop.xlane.xlu2 %700 }
 0x364   :  { %v515_v44 = vmul.f32 1.442695, %v514_v42  ;;  %v702_v45 = vsub.f32 %v698_v13, %v701_v29 }
 0x366   :  { %2875 = vpow2.f32 %v515_v44  ;;  %v703_v46 = vmul.f32 1.442695, %v702_v45 }
 0x368   :  { %2877 = vpow2.f32 %v703_v46  ;;  %889 = vmax.xlane.f32.xlu2 %v888_v47 }
 0x36c   :  { %v2876_v48 = vpop.eup %2875 }
 0x36d   :  { %v517_v49 = vsel %vm447_vm3, %v2876_v48, 0.0 }
 0x36e   :  { %v3437_v50 = vpop.eup %2877  ;;  %518 = vadd.xlane.f32.xlu1 %v517_v49 }
 0x36f   :  { %v705_v51 = vsel %vm447_vm3, %v3437_v50, 0.0 }
 0x370   :  { %706 = vadd.xlane.f32.xlu0 %v705_v51 }
 0x373   :  { %v828_v40 = vpop.xlane.xlu0 %827 }
 0x374   :  { %v829_v6 = vsub.f32 %v3422_v20, %v828_v40 }
 0x376   :  { %v830_v7 = vmul.f32 1.442695, %v829_v6  ;;  %v2775_v6 = vld [vmem:[#allocation9 + $0x28] sm:$0xff] }
 0x37b   :  { %v642_v52 = vpop.xlane.xlu0 %641 }
 0x37c   :  { %v643_v53 = vsub.f32 %v639_v23, %v642_v52 }
 0x37e   :  { %v644_v54 = vmul.f32 1.442695, %v643_v53 }
 0x380   :  { %2879 = vpow2.f32 %v644_v54  ;;  %589 = vrot.lane.b32.xlu2 %v525_v32, %s3212_s19 }
 0x381   :  { %v763_v59 = vpop.xlane.xlu1 %762 }
 0x382   :  { %v764_v62 = vsub.f32 %v760_v27, %v763_v59 }
 0x384   :  { %v765_v2 = vmul.f32 1.442695, %v764_v62 }
 0x386   :  { %v2880_v55 = vpop.eup %2879  ;;  %2881 = vpow2.f32 %v765_v2 }
 0x387   :  { %v646_v56 = vsel %vm447_vm3, %v2880_v55, 0.0  ;;  %2883 = vpow2.f32 %v830_v7  ;;  %v2774_v7 = vld [vmem:[#allocation9 + $0x20] sm:$0xff] }
 0x388   :  { %647 = vadd.xlane.f32.xlu1 %v646_v56 }
 0x38c   :  { %v2882_v4 = vpop.eup %2881 }
 0x38d   :  { %v767_v5 = vsel %vm447_vm3, %v2882_v4, 0.0  ;;  %v3449_v8 = vpop.eup %2883 }
 0x38e   :  { %v527_v57 = vpop.permute.xlu0 %526  ;;  %v832_v9 = vsel %vm447_vm3, %v3449_v8, 0.0 }
 0x38f   :  { %v532_v58 = vsel %vm463_vm1, %v527_v57, 0 }
 0x390   :  { %541 = vmatpush.bf16.msra.mxu0 %v532_v58 }
 0x399   :  { %v653_v63 = vpop.permute.xlu1 %652 }
 0x39a   :  { %v658_v0 = vsel %vm463_vm1, %v653_v63, 0 }
 0x39b   :  { %667 = vmatpush.bf16.msrb.mxu0 %v658_v0 }
 0x3a1   :  { %776 = vrot.lane.b32.xlu1 %v775_v3, %s3226_s8 }
 0x3a9   :  { %768 = vadd.xlane.f32.xlu2 %v767_v5  ;;  %v2776_v5 = vld [vmem:[#allocation9 + $0x30] sm:$0xff] }
 0x3c1   :  { %900 = vrot.lane.b32.xlu2 %v775_v3, %s3227_s13 }
 0x3cb   :  { %833 = vadd.xlane.f32.xlu1 %v832_v9 }
 0x3d3   :  { %v585_v10 = vpop.xlane.xlu2 %584 }
 0x3d4   :  { %2885 = vrcp.f32 %v585_v10  ;;  %v2773_v10 = vld [vmem:[#allocation9 + $0x18] sm:$0xff] }
 0x3da   :  { %v2886_v14 = vpop.eup %2885 }
 0x3db   :  { %v890_v11 = vpop.xlane.xlu2 %889  ;;  %v587_v16 = vmul.f32 %v2886_v14, %v2874_v38 }
 0x3dc   :  { %v891_v12 = vsub.f32 %v887_v43, %v890_v11  ;;  %v2772_v11 = vld [vmem:[#allocation9 + $0x10] sm:$0xff] }
 0x3dd   :  { %v588_v22 = vpack.c.bf16 %v587_v16, %v587_v16 }
 0x3de   :  { %v892_v13 = vmul.f32 1.442695, %v891_v12  ;;  %v2771_v12 = vld [vmem:[#allocation9 + $0x8] sm:$0xff] }
 0x3e0   :  { %2887 = vpow2.f32 %v892_v13  ;;  %v2770_v13 = vld [vmem:[#allocation9] sm:$0xff] }
 0x3e1   :  { %v519_v15 = vpop.xlane.xlu1 %518 }
 0x3e2   :  { %2889 = vrcp.f32 %v519_v15 }
 0x3e3   :  { %v590_v17 = vpop.permute.xlu2 %589  ;;  %v707_v21 = vpop.xlane.xlu0 %706 }
 0x3e4   :  { %v595_v18 = vsel %vm463_vm1, %v590_v17, 0  ;;  %2891 = vrcp.f32 %v707_v21 }
 0x3e5   :  { %604 = vmatpush.bf16.msrb.mxu2 %v595_v18 }
 0x3e6   :  { %v2888_v20 = vpop.eup %2887 }
 0x3e7   :  { %v894_v23 = vsel %vm447_vm3, %v2888_v20, 0.0 }
 0x3e8   :  { %v2890_v24 = vpop.eup %2889  ;;  %2420 = vmatmul.msk.bf16.vlgmr.msrb.gmra.mxu2 %vm447_vm3, %v588_v22  ;;  %895 = vadd.xlane.f32.xlu0 %v894_v23 }
 0x3e9   :  { %724 = vmatpush.bf16.msra.mxu2 %v715_v19  ;;  %v521_v25 = vmul.f32 %v2890_v24, %v2876_v48  ;;  %v198_v19 = vld [vmem:[#allocation3] sm:$0xff]  }
 0x3ea   :  { %v2892_v27 = vpop.eup %2891  ;;  %v1008_v23 = vunpack.c.h.bf16 %v198_v19 }
 0x3eb   :  { %v522_v26 = vpack.c.bf16 %v521_v25, %v521_v25  ;;  %v709_v28 = vmul.f32 %v2892_v27, %v3437_v50 }
 0x3ed   :  { %2418 = vmatmul.msk.bf16.vlgmr.msra.gmra.mxu0 %vm447_vm3, %v522_v26  ;;  %v710_v30 = vpack.c.bf16 %v709_v28, %v709_v28  ;;  %v3229_v26 = vmov 128.0  }
 0x3f8   :  { %2424 = vmatmul.msk.bf16.vlgmr.msra.gmra.mxu2 %vm447_vm3, %v710_v30  ;;  %v2561_v30 = vld [vmem:[#allocation12 + $0x70] sm:$0xf] }
 0x3fb   :  { %v648_v31 = vpop.xlane.xlu1 %647 }
 0x3fc   :  { %2893 = vrcp.f32 %v648_v31  ;;  %838 = vrot.lane.b32.xlu0 %v775_v3, %s3212_s19  ;;  %v2801_v31 = vld [vmem:[#allocation12 + $0x74] sm:$0xf0] }
 0x402   :  { %v2894_v32 = vpop.eup %2893 }
 0x403   :  { %v650_v33 = vmul.f32 %v2894_v32, %v2880_v55  ;;  %v2553_v32 = vld [vmem:[#allocation12 + $0x60] sm:$0xf] }
 0x405   :  { %v651_v34 = vpack.c.bf16 %v650_v33, %v650_v33  ;;  %v2562_v33 = vor.u32 %v2801_v31, %v2561_v30 }
 0x407   :  { %2422 = vmatmul.msk.bf16.vlgmr.msrb.gmra.mxu0 %vm447_vm3, %v651_v34  ;;  %v2799_v34 = vld [vmem:[#allocation12 + $0x64] sm:$0xf0]  ;;  %1265 = vmatpush.bf16.msrb.mxu3 %v2562_v33 }
 0x413   :  { %v777_v35 = vpop.permute.xlu1 %776 }
 0x414   :  { %v782_v36 = vsel %vm463_vm1, %v777_v35, 0 }
 0x415   :  { %791 = vmatpush.bf16.msra.mxu0 %v782_v36  ;;  %v2554_v36 = vor.u32 %v2799_v34, %v2553_v32 }
 0x417   :  { %1266 = vmatpush.bf16.msrb.mxu3 %v2554_v36 }
 0x41c   :  { %v769_v37 = vpop.xlane.xlu2 %768 }
 0x41d   :  { %2895 = vrcp.f32 %v769_v37  ;;  %v2545_v37 = vld [vmem:[#allocation12 + $0x50] sm:$0xf] }
 0x423   :  { %v2896_v38 = vpop.eup %2895 }
 0x424   :  { %v771_v39 = vmul.f32 %v2896_v38, %v2882_v4  ;;  %v901_v41 = vpop.permute.xlu2 %900  ;;  %v2777_v4 = vld [vmem:[#allocation9 + $0x38] sm:$0xff] }
 0x425   :  { %v906_v42 = vsel %vm463_vm1, %v901_v41, 0  ;;  %993 = vmatpush.bf16.msra.mxu1 %v2777_v4  ;;  %v2797_v38 = vld [vmem:[#allocation12 + $0x54] sm:$0xf0]  ;;  %v2783_v4 = vld [vmem:[#allocation11 + $0x28] sm:$0xff] }
 0x426   :  { %v772_v43 = vpack.c.bf16 %v771_v39, %v771_v39  ;;  %915 = vmatpush.bf16.msrb.mxu0 %v906_v42  ;;  %v2546_v41 = vor.u32 %v2797_v38, %v2545_v37  ;;  %v2537_v42 = vld [vmem:[#allocation12 + $0x40] sm:$0xf] }
 0x428   :  { %2426 = vmatmul.msk.bf16.vlgmr.msra.gmra.mxu0 %vm447_vm3, %v772_v43  ;;  %v2795_v43 = vld [vmem:[#allocation12 + $0x44] sm:$0xf0]  ;;  %1267 = vmatpush.bf16.msrb.mxu3 %v2546_v41  ;;  %v2862_v41 = vld [vmem:[%s3660_s4] ss:$0 sm:$0xff] }
 0x429   :  { %994 = vmatpush.bf16.msra.mxu1 %v2776_v5  ;;  %v2782_v5 = vld [vmem:[#allocation11 + $0x20] sm:$0xff] }
 0x42d   :  { %995 = vmatpush.bf16.msra.mxu1 %v2775_v6  ;;  %v2781_v6 = vld [vmem:[#allocation11 + $0x18] sm:$0xff] }
 0x431   :  { %996 = vmatpush.bf16.msra.mxu1 %v2774_v7 }
 0x435   :  { %997 = vmatpush.bf16.msra.mxu1 %v2773_v10  ;;  %v2779_v10 = vld [vmem:[#allocation11 + $0x8] sm:$0xff] }
 0x439   :  { %998 = vmatpush.bf16.msra.mxu1 %v2772_v11 }
 0x43d   :  { %999 = vmatpush.bf16.msra.mxu1 %v2771_v12 }
 0x43e   :  { %v834_v44 = vpop.xlane.xlu1 %833 }
 0x441   :  { %1000 = vmatpush.bf16.msra.mxu1 %v2770_v13 }
 0x45b   :  { %v896_v29 = vpop.xlane.xlu0 %895 }
 0x45c   :  { %2897 = vrcp.f32 %v896_v29 }
 0x45d   :  { %2899 = vrcp.f32 %v834_v44  ;;  %v2538_v44 = vor.u32 %v2795_v43, %v2537_v42 }
 0x45e   :  { %2901 = vrcp.f32 %v3229_v26 }
 0x45f   :  { %1268 = vmatpush.bf16.msrb.mxu3 %v2538_v44 }
 0x462   :  { %v2898_v45 = vpop.eup %2897 }
 0x463   :  { %v898_v46 = vmul.f32 %v2898_v45, %v2888_v20  ;;  %v2900_v48 = vpop.eup %2899  ;;  %v1007_v20 = vunpack.c.l.bf16 %v198_v19  ;;  %v2529_v45 = vld [vmem:[#allocation12 + $0x30] sm:$0xf] }
 0x464   :  { %v836_v51 = vmul.f32 %v2900_v48, %v3449_v8  ;;  %v2902_v27 = vpop.eup %2901 }
 0x465   :  { %v899_v47 = vpack.c.bf16 %v898_v46, %v898_v46  ;;  %v1018_v28 = vmul.f32 128.0, %v2902_v27  ;;  %vm1022_vm7 = vweird.f32 %v2902_v27  ;;  %v2793_v46 = vld [vmem:[#allocation12 + $0x34] sm:$0xf0] }
 0x466   :  { %v837_v53 = vpack.c.bf16 %v836_v51, %v836_v51  ;;  %v2530_v48 = vor.u32 %v2793_v46, %v2529_v45 }
 0x467   :  { %2430 = vmatmul.msk.bf16.vlgmr.msrb.gmra.mxu0 %vm447_vm3, %v899_v47  ;;  %v1019_v35 = vsub.f32 1.0, %v1018_v28 }
 0x468   :  { %1269 = vmatpush.bf16.msrb.mxu3 %v2530_v48 }
 0x469   :  { %v1020_v39 = vmul.f32 %v2902_v27, %v1019_v35 }
 0x46a   :  { %v543_v49 = vpop.f32.mrf.mxu0 }
 0x46b   :  { %v606_v50 = vpop.f32.mrf.mxu2  ;;  %548 = vrot.lane.b32.xlu1 %v543_v49, %s3227_s13  ;;  %v1021_v29 = vadd.f32 %v2902_v27, %v1020_v39  ;;  %v2521_v49 = vld [vmem:[#allocation12 + $0x20] sm:$0xf] }
 0x46c   :  { %611 = vrot.lane.b32.xlu0 %v606_v50, %s3212_s19  ;;  %v2791_v50 = vld [vmem:[#allocation12 + $0x24] sm:$0xf0] }
 0x46d   :  { %v3482_v47 = vsel %vm1022_vm7, %v2902_v27, %v1021_v29 }
 0x46e   :  { %v839_v40 = vpop.permute.xlu0 %838 }
 0x46f   :  { %v844_v52 = vsel %vm463_vm1, %v839_v40, 0 }
 0x470   :  { %853 = vmatpush.bf16.msrb.mxu2 %v844_v52  ;;  %v2522_v52 = vor.u32 %v2791_v50, %v2521_v49  ;;  %v2863_v50 = vld [vmem:[%s3661_s5] ss:$0 sm:$0xff] }
 0x472   :  { %v545_v54 = vpop.f32.mrf.mxu0  ;;  %1270 = vmatpush.bf16.msrb.mxu3 %v2522_v52 }
 0x473   :  { %v608_v55 = vpop.f32.mrf.mxu2  ;;  %2428 = vmatmul.msk.bf16.vlgmr.msrb.gmra.mxu2 %vm447_vm3, %v837_v53  ;;  %v2513_v54 = vld [vmem:[#allocation12 + $0x10] sm:$0xf] }
 0x474   :  { %v2789_v55 = vld [vmem:[#allocation12 + $0x14] sm:$0xf0] }
 0x47b   :  { %v726_v56 = vpop.f32.mrf.mxu2 }
 0x47c   :  { %730 = vst.msk [vmem:[#allocation2 + $0x8] sm:$0xff] %vm426_vm0, %v726_v56 }
 0x483   :  { %v728_v57 = vpop.f32.mrf.mxu2 }
 0x484   :  { %v669_v58 = vpop.f32.mrf.mxu0  ;;  %v2514_v57 = vor.u32 %v2789_v55, %v2513_v54 }
 0x486   :  { %1271 = vmatpush.bf16.msrb.mxu3 %v2514_v57 }
 0x48c   :  { %v671_v59 = vpop.f32.mrf.mxu0 }
 0x48d   :  { %v2787_v59 = vld [vmem:[#allocation12 + $0x4] sm:$0xf0] }
 0x4a5   :  { %v793_v60 = vpop.f32.mrf.mxu0 }
 0x4a6   :  { %798 = vrot.lane.b32.xlu0 %v793_v60, %s3227_s13 }
 0x4ad   :  { %v795_v61 = vpop.f32.mrf.mxu0 }
 0x4ae   :  { %674 = vrot.lane.b32.xlu0 %v669_v58, %s3226_s8  ;;  %v2505_v58 = vld [vmem:[#allocation12] sm:$0xf] }
 0x4dd   :  { %v549_v62 = vpop.permute.xlu1 %548 }
 0x4de   :  { %552 = vst.msk [vmem:[#allocation2] sm:$0xff] %vm551_vm4, %v549_v62  ;;  %v612_v63 = vpop.permute.xlu0 %611  ;;  %v2506_v62 = vor.u32 %v2787_v59, %v2505_v58 }
 0x4df   :  { %615 = vst.msk [vmem:[#allocation2] sm:$0xff] %vm614_vm5, %v612_v63 }
 0x4e0   :  { %1272 = vmatpush.bf16.msrb.mxu3 %v2506_v62 }
 0x4e4   :  { %v917_v0 = vpop.f32.mrf.mxu0 }
 0x4ec   :  { %v919_v1 = vpop.f32.mrf.mxu0 }
 0x4ed   :  { %v3494_v1 = vld [vmem:[#allocation6] sm:$0xff] }
 0x4ee   :  { %1273 = vmatmul.bf16.vlgmr.msrb.gmra.mxu3 %v3494_v1 }
 0x4f6   :  { %v855_v2 = vpop.f32.mrf.mxu2 }
 0x4f7   :  { %860 = vrot.lane.b32.xlu2 %v855_v2, %s3212_s19  ;;  %v2785_v2 = vld [vmem:[#allocation11 + $0x38] sm:$0xff] }
 0x4f8   :  { %1141 = vmatpush.bf16.msra.mxu2 %v2785_v2 }
 0x4fe   :  { %v857_v3 = vpop.f32.mrf.mxu2 }
 0x4ff   :  { %922 = vrot.lane.b32.xlu2 %v917_v0, %s3226_s8  ;;  %v2784_v3 = vld [vmem:[#allocation11 + $0x30] sm:$0xff] }
 0x500   :  { %1142 = vmatpush.bf16.msra.mxu2 %v2784_v3 }
 0x504   :  { %1143 = vmatpush.bf16.msra.mxu2 %v2783_v4 }
 0x508   :  { %1144 = vmatpush.bf16.msra.mxu2 %v2782_v5 }
 0x50c   :  { %1145 = vmatpush.bf16.msra.mxu2 %v2781_v6 }
 0x518   :  { %v799_v8 = vpop.permute.xlu0 %798 }
 0x519   :  { %801 = vst.msk [vmem:[#allocation2 + $0x8] sm:$0xff] %vm551_vm4, %v799_v8 }
 0x520   :  { %v675_v9 = vpop.permute.xlu0 %674 }
 0x521   :  { %678 = vst.msk [vmem:[#allocation2] sm:$0xff] %vm677_vm6, %v675_v9  ;;  %v2780_v9 = vld [vmem:[#allocation11 + $0x10] sm:$0xff] }
 0x522   :  { %1146 = vmatpush.bf16.msra.mxu2 %v2780_v9 }
 0x526   :  { %1147 = vmatpush.bf16.msra.mxu2 %v2779_v10 }
 0x528   :  { %v926_v16 = vld [vmem:[#allocation2] sm:$0xff] }
 0x551   :  { %v861_v14 = vpop.permute.xlu2 %860 }
 0x552   :  { %863 = vst.msk [vmem:[#allocation2 + $0x8] sm:$0xff] %vm614_vm5, %v861_v14  ;;  %v2778_v14 = vld [vmem:[#allocation11] sm:$0xff] }
 0x553   :  { %1148 = vmatpush.bf16.msra.mxu2 %v2778_v14 }
 0x559   :  { %v923_v15 = vpop.permute.xlu2 %922 }
 0x55a   :  { %925 = vst.msk [vmem:[#allocation2 + $0x8] sm:$0xff] %vm677_vm6, %v923_v15 }
 0x561   :  { %v927_v17 = vld [vmem:[#allocation2 + $0x8] sm:$0xff] }
 0x562   :  { %v928_v18 = vpack.c.bf16 %v927_v17, %v926_v16 }
 0x564   :  { %1001 = vmatmul.bf16.vlgmr.msra.gmra.mxu1 %v928_v18  ;;  %v3497_v18 = vld [vmem:[#allocation6 + $0x8] sm:$0xff] }
 0x565   :  { %1278 = vmatmul.bf16.gmra.mxu3 %v3497_v18 }
 0x571   :  { %v1274_v33 = vpop.f32.mrf.mxu3 }
 0x572   :  { %v1305_v38 = vpack.c.bf16 %v1274_v33, %v1274_v33  ;;  %v2539_v33 = vld [vmem:[#allocation12 + $0x48] sm:$0xf0] }
 0x574   :  { %v1315_v43 = vunpack.c.l.b16 %v1305_v38 }
 0x579   :  { %v1276_v42 = vpop.f32.mrf.mxu3 }
 0x57a   :  { %v1306_v29 = vpack.c.bf16 %v1276_v42, %v1276_v42 }
 0x57c   :  { %v1316_v46 = vunpack.c.l.b16 %v1306_v29  ;;  %v2515_v29 = vld [vmem:[#allocation12 + $0x18] sm:$0xf0] }
 0x5e1   :  { %v1002_v21 = vpop.f32.mrf.mxu1 }
 0x5e2   :  { %v1009_v22 = vadd.f32 %v1007_v20, %v1002_v21 }
 0x5e4   :  { %1013 = vadd.xlane.f32.xlu1 %v1009_v22 }
 0x5e8   :  { %v1279_v57 = vpop.f32.mrf.mxu3 }
 0x5e9   :  { %v1004_v24 = vpop.f32.mrf.mxu1  ;;  %v1307_v58 = vpack.c.bf16 %v1279_v57, %v1279_v57 }
 0x5ea   :  { %v1010_v25 = vadd.f32 %v1008_v23, %v1004_v24 }
 0x5ec   :  { %1015 = vadd.xlane.f32.xlu0 %v1010_v25 }
 0x5f0   :  { %v1281_v59 = vpop.f32.mrf.mxu3 }
 0x657   :  { %v1014_v51 = vpop.xlane.xlu1 %1013 }
 0x658   :  { %v1024_v40 = vmul.f32 %v3482_v47, %v1014_v51  ;;  %v1317_v51 = vpack.c.b16 %v1316_v46, %v1315_v43  ;;  %v2788_v43 = vld [vmem:[#allocation12 + $0x14] sm:$0xf]  ;;  %v2507_v46 = vld [vmem:[#allocation12 + $0x8] sm:$0xf0] }
 0x65a   :  { %v3485_v53 = vsub.f32 %v1009_v22, %v1024_v40  ;;  %1378 = vrot.lane.b32.xlu0 %v1317_v51, %s3226_s8  ;;  %v1322_v54 = vsel %vm426_vm0, %v1317_v51, 0 }
 0x65b   :  { %1331 = vmatpush.bf16.xpose.msrb.mxu1 %v1322_v54 }
 0x65c   :  { %v1028_v56 = vmul.f32 %v3485_v53, %v3485_v53  ;;  %v1063_v45 = vmul.f32 %v2862_v41, %v3485_v53 }
 0x65e   :  { %1030 = vadd.xlane.f32.xlu2 %v1028_v56 }
 0x65f   :  { %v1016_v60 = vpop.xlane.xlu0 %1015 }
 0x660   :  { %v1025_v61 = vmul.f32 %v3482_v47, %v1016_v60  ;;  %v1555_v60 = vunpack.c.l.b16 %v1307_v58 }
 0x662   :  { %v3490_v63 = vsub.f32 %v1010_v25, %v1025_v61  ;;  %1496 = vrot.lane.b32.xlu0 %v1317_v51, %s3227_s13  ;;  %v1308_v61 = vpack.c.bf16 %v1281_v59, %v1281_v59 }
 0x664   :  { %v1029_v0 = vmul.f32 %v3490_v63, %v3490_v63  ;;  %v1064_v48 = vmul.f32 %v2862_v41, %v3490_v63  ;;  %v1556_v62 = vunpack.c.l.b16 %v1308_v61  ;;  %v2523_v41 = vld [vmem:[#allocation12 + $0x28] sm:$0xf0] }
 0x666   :  { %1032 = vadd.xlane.f32.xlu1 %v1029_v0  ;;  %v1557_v63 = vpack.c.b16 %v1556_v62, %v1555_v60 }
 0x668   :  { %v1562_v4 = vsel %vm426_vm0, %v1557_v63, 0 }
 0x67f   :  { %1437 = vrot.lane.b32.xlu1 %v1317_v51, %s3212_s19 }
 0x687   :  { %1617 = vrot.lane.b32.xlu1 %v1557_v63, %s3226_s8 }
 0x68f   :  { %1735 = vrot.lane.b32.xlu1 %v1557_v63, %s3227_s13 }
 0x6cc   :  { %v1379_v5 = vpop.permute.xlu0 %1378 }
 0x6d1   :  { %v1031_v7 = vpop.xlane.xlu2 %1030 }
 0x6d2   :  { %v1034_v8 = vmul.f32 0.007874016, %v1031_v7  ;;  %v1384_v7 = vsel %vm426_vm0, %v1379_v5, 0 }
 0x6d3   :  { %1393 = vmatpush.bf16.xpose.msra.mxu1 %v1384_v7 }
 0x6d4   :  { %2903 = vrsqrt.f32 %v1034_v8  ;;  %vm1043_vm8 = vcmp.eq.f32.partialorder %v1034_v8, inf  ;;  %v1046_v25 = vand.u32 2147483648, %v1034_v8  ;;  %vm1045_vm9 = vcmp.eq.f32.partialorder %v1034_v8, 0.0 }
 0x6d9   :  { %v1033_v11 = vpop.xlane.xlu1 %1032 }
 0x6da   :  { %v2904_v12 = vpop.eup %2903  ;;  %v1035_v13 = vmul.f32 0.007874016, %v1033_v11 }
 0x6db   :  { %v1037_v15 = vmul.f32 %v2904_v12, %v1034_v8 }
 0x6dc   :  { %2905 = vrsqrt.f32 %v1035_v13  ;;  %vm1055_vm10 = vcmp.eq.f32.partialorder %v1035_v13, inf  ;;  %v1058_v35 = vand.u32 2147483648, %v1035_v13  ;;  %vm1057_vm11 = vcmp.eq.f32.partialorder %v1035_v13, 0.0 }
 0x6dd   :  { %v1038_v16 = vmul.f32 %v2904_v12, %v1037_v15 }
 0x6df   :  { %v1039_v17 = vmul.f32 0.5, %v1038_v16 }
 0x6e1   :  { %v1040_v19 = vsub.f32 1.5, %v1039_v17 }
 0x6e2   :  { %v2906_v20 = vpop.eup %2905 }
 0x6e3   :  { %v1041_v21 = vmul.f32 %v2904_v12, %v1040_v19  ;;  %v1049_v22 = vmul.f32 %v2906_v20, %v1035_v13  ;;  %v1497_v12 = vpop.permute.xlu0 %1496  ;;  %v2800_v19 = vld [vmem:[#allocation12 + $0x74] sm:$0xf] }
 0x6e5   :  { %v1042_v23 = vmul.f32 %v1041_v21, %v1034_v8  ;;  %v1050_v24 = vmul.f32 %v2906_v20, %v1049_v22  ;;  %v2798_v22 = vld [vmem:[#allocation12 + $0x64] sm:$0xf] }
 0x6e7   :  { %v1051_v26 = vmul.f32 0.5, %v1050_v24  ;;  %v1044_v27 = vsel %vm1043_vm8, %v1034_v8, %v1042_v23  ;;  %v2555_v23 = vld [vmem:[#allocation12 + $0x68] sm:$0xf0] }
 0x6e8   :  { %v1047_v28 = vsel %vm1045_vm9, %v1046_v25, %v1044_v27  ;;  %v2558_v24 = vor.u32 %v2798_v22, %v2555_v23 }
 0x6e9   :  { %v1052_v30 = vsub.f32 1.5, %v1051_v26  ;;  %v1065_v32 = vadd.f32 1e-06, %v1047_v28  ;;  %v2796_v28 = vld [vmem:[#allocation12 + $0x54] sm:$0xf] }
 0x6eb   :  { %v1053_v31 = vmul.f32 %v2906_v20, %v1052_v30  ;;  %2907 = vrcp.f32 %v1065_v32  ;;  %v2563_v20 = vld [vmem:[#allocation12 + $0x78] sm:$0xf0]  ;;  %v2794_v32 = vld [vmem:[#allocation12 + $0x44] sm:$0xf] }
 0x6ec   :  { %v2566_v21 = vor.u32 %v2800_v19, %v2563_v20  ;;  %v2547_v30 = vld [vmem:[#allocation12 + $0x58] sm:$0xf0] }
 0x6ed   :  { %v1054_v34 = vmul.f32 %v1053_v31, %v1035_v13  ;;  %v2550_v31 = vor.u32 %v2796_v28, %v2547_v30 }
 0x6ee   :  { %1284 = vmatpush.bf16.msra.mxu0 %v2566_v21 }
 0x6ef   :  { %v1056_v36 = vsel %vm1055_vm10, %v1035_v13, %v1054_v34  ;;  %v1502_v13 = vsel %vm426_vm0, %v1497_v12, 0  ;;  %v2542_v34 = vor.u32 %v2794_v32, %v2539_v33 }
 0x6f0   :  { %v1059_v37 = vsel %vm1057_vm11, %v1058_v35, %v1056_v36  ;;  %v2792_v36 = vld [vmem:[#allocation12 + $0x34] sm:$0xf] }
 0x6f1   :  { %v1066_v39 = vadd.f32 1e-06, %v1059_v37  ;;  %v2908_v44 = vpop.eup %2907  ;;  %v1438_v3 = vpop.permute.xlu1 %1437  ;;  %v2531_v37 = vld [vmem:[#allocation12 + $0x38] sm:$0xf0] }
 0x6f2   :  { %v1069_v49 = vmul.f32 %v2908_v44, %v1063_v45  ;;  %v1443_v6 = vsel %vm426_vm0, %v1438_v3, 0  ;;  %1285 = vmatpush.bf16.msra.mxu0 %v2558_v24  ;;  %v2534_v38 = vor.u32 %v2792_v36, %v2531_v37  ;;  %v2518_v44 = vor.u32 %v2788_v43, %v2515_v29  ;;  %v2786_v45 = vld [vmem:[#allocation12 + $0x4] sm:$0xf] }
 0x6f3   :  { %2909 = vrcp.f32 %v1066_v39  ;;  %1452 = vmatpush.bf16.xpose.msra.mxu3 %v1443_v6  ;;  %v2790_v39 = vld [vmem:[#allocation12 + $0x24] sm:$0xf] }
 0x6f4   :  { %v3511_v55 = vadd.f32 %v2863_v50, %v1069_v49  ;;  %v2526_v42 = vor.u32 %v2790_v39, %v2523_v41  ;;  %v2510_v49 = vor.u32 %v2786_v45, %v2507_v46 }
 0x6f6   :  { %1286 = vmatpush.bf16.msra.mxu0 %v2550_v31 }
 0x6f9   :  { %v2910_v40 = vpop.eup %2909  ;;  %v1618_v26 = vpop.permute.xlu1 %1617 }
 0x6fa   :  { %v1070_v52 = vmul.f32 %v2910_v40, %v1064_v48  ;;  %v1623_v27 = vsel %vm426_vm0, %v1618_v26, 0  ;;  %1287 = vmatpush.bf16.msra.mxu0 %v2542_v34 }
 0x6fb   :  { %1571 = vmatpush.bf16.xpose.msrb.mxu3 %v1562_v4 }
 0x6fc   :  { %v3513_v53 = vadd.f32 %v2863_v50, %v1070_v52 }
 0x6fe   :  { %v1076_v56 = vpack.c.bf16 %v3513_v53, %v3511_v55  ;;  %1288 = vmatpush.bf16.msra.mxu0 %v2534_v38 }
 0x700   :  { %1149 = vmatmul.bf16.vlgmr.msra.gmra.mxu2 %v1076_v56 }
 0x701   :  { %v1736_v48 = vpop.permute.xlu1 %1735 }
 0x702   :  { %1289 = vmatpush.bf16.msra.mxu0 %v2526_v42  ;;  %v1741_v50 = vsel %vm426_vm0, %v1736_v48, 0 }
 0x706   :  { %1290 = vmatpush.bf16.msra.mxu0 %v2518_v44 }
 0x70a   :  { %1291 = vmatpush.bf16.msra.mxu0 %v2510_v49 }
 0x70d   :  { %1292 = vmatmul.bf16.vlgmr.msra.gmra.mxu0 %v3494_v1 }
 0x71d   :  { %1297 = vmatmul.bf16.gmra.mxu0 %v3497_v18 }
 0x783   :  { %v1150_v0 = vpop.f32.mrf.mxu2 }
 0x784   :  { %v1155_v2 = vmul.f32 0.088388346, %v1150_v0 }
 0x786   :  { %v1303_v8 = vpack.c.bf16 %v1155_v2, %v1155_v2 }
 0x788   :  { %v1374_v9 = vunpack.c.l.b16 %v1303_v8  ;;  %2567 = vmatmul.msk.bf16.vlgmr.msrb.gmra.mxu1 %vm426_vm0, %v1303_v8 }
 0x789   :  { %1511 = vmatpush.bf16.xpose.msrb.mxu1 %v1502_v13 }
 0x78a   :  { %v1375_v10 = vpack.c.b16 %v1374_v9, %v1374_v9  ;;  %v1293_v18 = vpop.f32.mrf.mxu0 }
 0x78b   :  { %v1152_v11 = vpop.f32.mrf.mxu2 }
 0x78c   :  { %1494 = vrot.lane.b32.xlu0 %v1375_v10, %s3227_s13  ;;  %1376 = vrot.lane.b32.xlu2 %v1375_v10, %s3226_s8  ;;  %v1156_v14 = vmul.f32 0.088388346, %v1152_v11  ;;  %v1309_v11 = vpack.c.bf16 %v1293_v18, %v1293_v18 }
 0x78e   :  { %v1304_v15 = vpack.c.bf16 %v1156_v14, %v1156_v14  ;;  %v1352_v14 = vunpack.c.l.b16 %v1309_v11 }
 0x790   :  { %v1613_v16 = vunpack.c.l.b16 %v1304_v15 }
 0x792   :  { %v1614_v17 = vpack.c.b16 %v1613_v16, %v1613_v16  ;;  %v1295_v13 = vpop.f32.mrf.mxu0 }
 0x794   :  { %1676 = vrot.lane.b32.xlu0 %v1557_v63, %s3212_s19  ;;  %1435 = vrot.lane.b32.xlu2 %v1375_v10, %s3212_s19 }
 0x79a   :  { %v1298_v42 = vpop.f32.mrf.mxu0 }
 0x79b   :  { %v1311_v46 = vpack.c.bf16 %v1298_v42, %v1298_v42 }
 0x79c   :  { %1733 = vrot.lane.b32.xlu0 %v1614_v17, %s3227_s13  ;;  %1615 = vrot.lane.b32.xlu2 %v1614_v17, %s3226_s8 }
 0x7a2   :  { %v1300_v29 = vpop.f32.mrf.mxu0 }
 0x7a3   :  { %v1312_v49 = vpack.c.bf16 %v1300_v29, %v1300_v29 }
 0x7a4   :  { %1674 = vrot.lane.b32.xlu2 %v1614_v17, %s3212_s19 }
 0x7e6   :  { %v1377_v25 = vpop.permute.xlu2 %1376 }
 0x7e7   :  { %2569 = vmatmul.msk.bf16.vlgmr.msra.gmra.mxu1 %vm426_vm0, %v1377_v25 }
 0x7e8   :  { %1632 = vmatpush.bf16.xpose.msra.mxu1 %v1623_v27 }
 0x7ee   :  { %v1436_v35 = vpop.permute.xlu2 %1435 }
 0x7ef   :  { %2571 = vmatmul.msk.bf16.vlgmr.msra.gmra.mxu3 %vm426_vm0, %v1436_v35 }
 0x7f6   :  { %v1616_v40 = vpop.permute.xlu2 %1615 }
 0x7fe   :  { %v1495_v51 = vpop.permute.xlu0 %1494  ;;  %v1675_v59 = vpop.permute.xlu2 %1674 }
 0x7ff   :  { %2573 = vmatmul.msk.bf16.vlgmr.msrb.gmra.mxu1 %vm426_vm0, %v1495_v51  ;;  %2575 = vmatmul.msk.bf16.vlgmr.msrb.gmra.mxu3 %vm426_vm0, %v1304_v15  ;;  %v1310_v15 = vpack.c.bf16 %v1295_v13, %v1295_v13 }
 0x800   :  { %1750 = vmatpush.bf16.xpose.msrb.mxu1 %v1741_v50 }
 0x801   :  { %v1353_v17 = vunpack.c.l.b16 %v1310_v15 }
 0x803   :  { %v1354_v21 = vpack.c.b16 %v1353_v17, %v1352_v14 }
 0x805   :  { %v1333_v52 = vpop.f32.mrf.mxu1  ;;  %1366 = vmatpush.bf16.msrb.mxu2 %v1354_v21 }
 0x806   :  { %v1677_v54 = vpop.permute.xlu0 %1676  ;;  %v1338_v56 = vsel %vm1337_vm12, %v1333_v52, -inf }
 0x807   :  { %v1682_v57 = vsel %vm426_vm0, %v1677_v54, 0  ;;  %1339 = vmax.xlane.f32.xlu1 %v1338_v56  ;;  %v1591_v54 = vunpack.c.l.b16 %v1311_v46  ;;  %v1592_v56 = vunpack.c.l.b16 %v1312_v49 }
 0x808   :  { %1691 = vmatpush.bf16.xpose.msra.mxu3 %v1682_v57 }
 0x80d   :  { %v1335_v58 = vpop.f32.mrf.mxu1 }
 0x80e   :  { %v1734_v60 = vpop.permute.xlu0 %1733 }
 0x80f   :  { %2577 = vmatmul.msk.bf16.vlgmr.msra.gmra.mxu1 %vm426_vm0, %v1616_v40  ;;  %2579 = vmatmul.msk.bf16.vlgmr.msra.gmra.mxu3 %vm426_vm0, %v1675_v59  ;;  %v1593_v59 = vpack.c.b16 %v1592_v56, %v1591_v54 }
 0x81f   :  { %2581 = vmatmul.msk.bf16.vlgmr.msrb.gmra.mxu1 %vm426_vm0, %v1734_v60 }
 0x864   :  { %v1395_v1 = vpop.f32.mrf.mxu1 }
 0x865   :  { %v1399_v61 = vsel %vm1337_vm12, %v1395_v1, -inf }
 0x866   :  { %1400 = vmax.xlane.f32.xlu2 %v1399_v61 }
 0x86c   :  { %v1397_v62 = vpop.f32.mrf.mxu1 }
 0x872   :  { %v1454_v63 = vpop.f32.mrf.mxu3 }
 0x873   :  { %v1458_v0 = vsel %vm1337_vm12, %v1454_v63, -inf }
 0x874   :  { %1459 = vmax.xlane.f32.xlu1 %v1458_v0 }
 0x87a   :  { %v1456_v2 = vpop.f32.mrf.mxu3  ;;  %v1340_v3 = vpop.xlane.xlu1 %1339 }
 0x87b   :  { %v1341_v4 = vsub.f32 %v1333_v52, %v1340_v3 }
 0x87c   :  { %v3547_v5 = vpop.f32.mrf.mxu1 }
 0x87d   :  { %v1342_v6 = vmul.f32 1.442695, %v1341_v4  ;;  %v1517_v22 = vsel %vm1337_vm12, %v3547_v5, -inf }
 0x87f   :  { %2911 = vpow2.f32 %v1342_v6 }
 0x882   :  { %v3549_v7 = vpop.f32.mrf.mxu3 }
 0x883   :  { %v1577_v8 = vsel %vm1337_vm12, %v3549_v7, -inf }
 0x884   :  { %v1515_v9 = vpop.f32.mrf.mxu1  ;;  %1578 = vmax.xlane.f32.xlu1 %v1577_v8 }
 0x885   :  { %v2912_v10 = vpop.eup %2911 }
 0x886   :  { %v1344_v12 = vsel %vm1337_vm12, %v2912_v10, 0.0 }
 0x887   :  { %1345 = vadd.xlane.f32.xlu0 %v1344_v12 }
 0x88a   :  { %v1575_v16 = vpop.f32.mrf.mxu3 }
 0x88c   :  { %v1634_v19 = vpop.f32.mrf.mxu1 }
 0x88d   :  { %v1638_v20 = vsel %vm1337_vm12, %v1634_v19, -inf }
 0x88e   :  { %1639 = vmax.xlane.f32.xlu2 %v1638_v20 }
 0x88f   :  { %1518 = vmax.xlane.f32.xlu0 %v1517_v22 }
 0x892   :  { %v1693_v23 = vpop.f32.mrf.mxu3 }
 0x893   :  { %v1697_v24 = vsel %vm1337_vm12, %v1693_v23, -inf }
 0x894   :  { %1698 = vmax.xlane.f32.xlu1 %v1697_v24  ;;  %v1636_v25 = vpop.f32.mrf.mxu1 }
 0x89a   :  { %v1695_v26 = vpop.f32.mrf.mxu3 }
 0x89c   :  { %v3558_v27 = vpop.f32.mrf.mxu1 }
 0x89d   :  { %v1756_v28 = vsel %vm1337_vm12, %v3558_v27, -inf }
 0x89e   :  { %1757 = vmax.xlane.f32.xlu2 %v1756_v28 }
 0x8a4   :  { %v1754_v30 = vpop.f32.mrf.mxu1 }
 0x8ad   :  { %1470 = vrot.lane.b32.xlu1 %v1354_v21, %s3212_s19 }
 0x8b6   :  { %1411 = vrot.lane.b32.xlu2 %v1354_v21, %s3226_s8 }
 0x8d9   :  { %v1401_v31 = vpop.xlane.xlu2 %1400 }
 0x8da   :  { %v1402_v32 = vsub.f32 %v1395_v1, %v1401_v31 }
 0x8dc   :  { %v1403_v33 = vmul.f32 1.442695, %v1402_v32 }
 0x8de   :  { %2913 = vpow2.f32 %v1403_v33 }
 0x8e4   :  { %v3564_v34 = vpop.eup %2913 }
 0x8e5   :  { %v1405_v35 = vsel %vm1337_vm12, %v3564_v34, 0.0 }
 0x8e6   :  { %1406 = vadd.xlane.f32.xlu0 %v1405_v35 }
 0x8e7   :  { %v1460_v36 = vpop.xlane.xlu1 %1459 }
 0x8e8   :  { %v1461_v37 = vsub.f32 %v1454_v63, %v1460_v36 }
 0x8ea   :  { %v1462_v38 = vmul.f32 1.442695, %v1461_v37 }
 0x8ec   :  { %2915 = vpow2.f32 %v1462_v38 }
 0x8f2   :  { %v3568_v39 = vpop.eup %2915 }
 0x8f3   :  { %v1464_v41 = vsel %vm1337_vm12, %v3568_v39, 0.0 }
 0x8f4   :  { %1465 = vadd.xlane.f32.xlu1 %v1464_v41 }
 0x8f7   :  { %v1579_v44 = vpop.xlane.xlu1 %1578 }
 0x8f8   :  { %v1580_v18 = vsub.f32 %v3549_v7, %v1579_v44 }
 0x8fa   :  { %1529 = vrot.lane.b32.xlu0 %v1354_v21, %s3227_s13  ;;  %v1346_v43 = vpop.xlane.xlu0 %1345  ;;  %v1581_v8 = vmul.f32 1.442695, %v1580_v18  ;;  %v2809_v18 = vld [vmem:[#allocation14 + $0x38] sm:$0xff] }
 0x8fb   :  { %2917 = vrcp.f32 %v1346_v43  ;;  %1859 = vmatpush.bf16.msrb.mxu3 %v2809_v18 }
 0x901   :  { %v2918_v45 = vpop.eup %2917  ;;  %v1640_v48 = vpop.xlane.xlu2 %1639 }
 0x902   :  { %v1348_v50 = vmul.f32 %v2918_v45, %v2912_v10  ;;  %v1641_v51 = vsub.f32 %v1634_v19, %v1640_v48  ;;  %v1519_v62 = vpop.xlane.xlu0 %1518 }
 0x903   :  { %v1520_v2 = vsub.f32 %v3547_v5, %v1519_v62 }
 0x904   :  { %v1349_v40 = vpack.c.bf16 %v1348_v50, %v1348_v50  ;;  %v1642_v52 = vmul.f32 1.442695, %v1641_v51 }
 0x905   :  { %v1521_v4 = vmul.f32 1.442695, %v1520_v2 }
 0x906   :  { %2919 = vpow2.f32 %v1642_v52  ;;  %2568 = vmatmul.msk.bf16.vlgmr.msrb.gmra.mxu2 %vm1337_vm12, %v1349_v40 }
 0x907   :  { %v1699_v57 = vpop.xlane.xlu1 %1698 }
 0x908   :  { %v1700_v58 = vsub.f32 %v1693_v23, %v1699_v57 }
 0x90a   :  { %v1701_v60 = vmul.f32 1.442695, %v1700_v58 }
 0x90c   :  { %v3574_v1 = vpop.eup %2919  ;;  %2921 = vpow2.f32 %v1701_v60 }
 0x90d   :  { %1650 = vrot.lane.b32.xlu1 %v1593_v59, %s3226_s8  ;;  %v1644_v61 = vsel %vm1337_vm12, %v3574_v1, 0.0  ;;  %2923 = vpow2.f32 %v1521_v4 }
 0x90e   :  { %1645 = vadd.xlane.f32.xlu2 %v1644_v61  ;;  %2925 = vpow2.f32 %v1581_v8  ;;  %v2808_v8 = vld [vmem:[#allocation14 + $0x30] sm:$0xff] }
 0x90f   :  { %1860 = vmatpush.bf16.msrb.mxu3 %v2808_v8 }
 0x911   :  { %v1758_v63 = vpop.xlane.xlu2 %1757 }
 0x912   :  { %v3579_v0 = vpop.eup %2921  ;;  %v1759_v5 = vsub.f32 %v3558_v27, %v1758_v63 }
 0x913   :  { %v1703_v3 = vsel %vm1337_vm12, %v3579_v0, 0.0  ;;  %v2924_v10 = vpop.eup %2923 }
 0x914   :  { %v1523_v11 = vsel %vm1337_vm12, %v2924_v10, 0.0  ;;  %v2926_v12 = vpop.eup %2925  ;;  %v1760_v13 = vmul.f32 1.442695, %v1759_v5  ;;  %v2805_v5 = vld [vmem:[#allocation14 + $0x18] sm:$0xff] }
 0x915   :  { %v1583_v14 = vsel %vm1337_vm12, %v2926_v12, 0.0 }
 0x916   :  { %1704 = vadd.xlane.f32.xlu2 %v1703_v3  ;;  %2927 = vpow2.f32 %v1760_v13  ;;  %v2803_v13 = vld [vmem:[#allocation14 + $0x8] sm:$0xff] }
 0x919   :  { %v1412_v6 = vpop.permute.xlu2 %1411 }
 0x91a   :  { %1424 = vmatpush.bf16.msra.mxu2 %v1412_v6 }
 0x91c   :  { %v2928_v7 = vpop.eup %2927 }
 0x91d   :  { %v1762_v15 = vsel %vm1337_vm12, %v2928_v7, 0.0 }
 0x91f   :  { %v1471_v9 = vpop.permute.xlu1 %1470 }
 0x920   :  { %1483 = vmatpush.bf16.msrb.mxu0 %v1471_v9 }
 0x924   :  { %1605 = vmatpush.bf16.msra.mxu0 %v1593_v59  ;;  %1524 = vadd.xlane.f32.xlu0 %v1523_v11  ;;  %v2806_v11 = vld [vmem:[#allocation14 + $0x20] sm:$0xff] }
 0x92c   :  { %1584 = vadd.xlane.f32.xlu0 %v1583_v14  ;;  %v2802_v14 = vld [vmem:[#allocation14] sm:$0xff] }
 0x92e   :  { %1768 = vrot.lane.b32.xlu2 %v1593_v59, %s3227_s13 }
 0x937   :  { %1763 = vadd.xlane.f32.xlu1 %v1762_v15 }
 0x940   :  { %1709 = vrot.lane.b32.xlu0 %v1593_v59, %s3212_s19 }
 0x959   :  { %v1407_v16 = vpop.xlane.xlu0 %1406 }
 0x95a   :  { %2929 = vrcp.f32 %v1407_v16 }
 0x960   :  { %v2930_v17 = vpop.eup %2929 }
 0x961   :  { %v1409_v19 = vmul.f32 %v2930_v17, %v3564_v34 }
 0x963   :  { %v1410_v20 = vpack.c.bf16 %v1409_v19, %v1409_v19 }
 0x965   :  { %2570 = vmatmul.msk.bf16.vlgmr.msra.gmra.mxu2 %vm1337_vm12, %v1410_v20 }
 0x967   :  { %v1466_v21 = vpop.xlane.xlu1 %1465 }
 0x968   :  { %2931 = vrcp.f32 %v1466_v21 }
 0x96c   :  { %v1530_v22 = vpop.permute.xlu0 %1529 }
 0x96d   :  { %1542 = vmatpush.bf16.msrb.mxu2 %v1530_v22 }
 0x96e   :  { %v2932_v23 = vpop.eup %2931 }
 0x96f   :  { %v1468_v24 = vmul.f32 %v2932_v23, %v3568_v39 }
 0x971   :  { %v1469_v25 = vpack.c.bf16 %v1468_v24, %v1468_v24 }
 0x973   :  { %2572 = vmatmul.msk.bf16.vlgmr.msrb.gmra.mxu0 %vm1337_vm12, %v1469_v25 }
 0x97f   :  { %v1651_v26 = vpop.permute.xlu1 %1650 }
 0x980   :  { %1663 = vmatpush.bf16.msra.mxu2 %v1651_v26 }
 0x981   :  { %v1646_v28 = vpop.xlane.xlu2 %1645 }
 0x989   :  { %v1368_v27 = vpop.f32.mrf.mxu2  ;;  %v1705_v32 = vpop.xlane.xlu2 %1704 }
 0x98a   :  { %1372 = vst.msk [vmem:[#allocation2] sm:$0xff] %vm426_vm0, %v1368_v27 }
 0x991   :  { %v1370_v30 = vpop.f32.mrf.mxu2  ;;  %v1769_v37 = vpop.permute.xlu2 %1768 }
 0x997   :  { %v1525_v31 = vpop.xlane.xlu0 %1524 }
 0x998   :  { %2933 = vrcp.f32 %v1525_v31 }
 0x99e   :  { %v2934_v33 = vpop.eup %2933 }
 0x99f   :  { %v1527_v34 = vmul.f32 %v2934_v33, %v2924_v10  ;;  %v1585_v35 = vpop.xlane.xlu0 %1584  ;;  %v2807_v10 = vld [vmem:[#allocation14 + $0x28] sm:$0xff]  ;;  %v2825_v33 = vld [vmem:[#allocation15 + $0x74] sm:$0xf0] }
 0x9a0   :  { %2935 = vrcp.f32 %v1585_v35  ;;  %1861 = vmatpush.bf16.msrb.mxu3 %v2807_v10  ;;  %v2813_v10 = vld [vmem:[#allocation15 + $0x14] sm:$0xf0] }
 0x9a1   :  { %v1528_v36 = vpack.c.bf16 %v1527_v34, %v1527_v34  ;;  %2937 = vrcp.f32 %v1646_v28  ;;  %v2824_v34 = vld [vmem:[#allocation15 + $0x74] sm:$0xf] }
 0x9a2   :  { %2939 = vrcp.f32 %v1705_v32 }
 0x9a3   :  { %2574 = vmatmul.msk.bf16.vlgmr.msrb.gmra.mxu2 %vm1337_vm12, %v1528_v36  ;;  %v2675_v36 = vld [vmem:[#allocation15 + $0x78] sm:$0xf0] }
 0x9a4   :  { %1781 = vmatpush.bf16.msrb.mxu2 %v1769_v37  ;;  %1862 = vmatpush.bf16.msrb.mxu3 %v2806_v11  ;;  %v2678_v37 = vor.u32 %v2824_v34, %v2675_v36  ;;  %v2812_v11 = vld [vmem:[#allocation15 + $0x14] sm:$0xf] }
 0x9a6   :  { %v2936_v38 = vpop.eup %2935  ;;  %2050 = vmatpush.bf16.msra.mxu1 %v2678_v37 }
 0x9a7   :  { %v1587_v39 = vmul.f32 %v2936_v38, %v2926_v12  ;;  %v2938_v42 = vpop.eup %2937  ;;  %v2804_v12 = vld [vmem:[#allocation14 + $0x10] sm:$0xff]  ;;  %v2665_v38 = vld [vmem:[#allocation15 + $0x60] sm:$0xf] }
 0x9a8   :  { %v1648_v43 = vmul.f32 %v2938_v42, %v3574_v1  ;;  %v2940_v45 = vpop.eup %2939  ;;  %1863 = vmatpush.bf16.msrb.mxu3 %v2805_v5  ;;  %v2627_v5 = vld [vmem:[#allocation15 + $0x18] sm:$0xf0] }
 0x9a9   :  { %v1588_v41 = vpack.c.bf16 %v1587_v39, %v1587_v39  ;;  %v1707_v48 = vmul.f32 %v2940_v45, %v3579_v0  ;;  %v2823_v39 = vld [vmem:[#allocation15 + $0x64] sm:$0xf0]  ;;  %v2821_v45 = vld [vmem:[#allocation15 + $0x54] sm:$0xf0] }
 0x9aa   :  { %v1649_v29 = vpack.c.bf16 %v1648_v43, %v1648_v43  ;;  %v1764_v44 = vpop.xlane.xlu1 %1763  ;;  %v2666_v42 = vor.u32 %v2823_v39, %v2665_v38  ;;  %v2667_v43 = vld [vmem:[#allocation15 + $0x68] sm:$0xf0] }
 0x9ab   :  { %2576 = vmatmul.msk.bf16.vlgmr.msra.gmra.mxu0 %vm1337_vm12, %v1588_v41  ;;  %2941 = vrcp.f32 %v1764_v44  ;;  %v1708_v49 = vpack.c.bf16 %v1707_v48, %v1707_v48  ;;  %v2822_v41 = vld [vmem:[#allocation15 + $0x64] sm:$0xf]  ;;  %v2657_v44 = vld [vmem:[#allocation15 + $0x50] sm:$0xf]  ;;  %v2831_v38 = vld [vmem:[#allocation17 + $0x28] sm:$0xff] }
 0x9ac   :  { %1864 = vmatpush.bf16.msrb.mxu3 %v2804_v12  ;;  %v2658_v48 = vor.u32 %v2821_v45, %v2657_v44  ;;  %v2839_v39 = vld [vmem:[#allocation17 + $0x68] sm:$0xff]  ;;  %v2830_v44 = vld [vmem:[#allocation17 + $0x20] sm:$0xff] }
 0x9ad   :  { %v2838_v45 = vld [vmem:[#allocation17 + $0x60] sm:$0xff] }
 0x9b0   :  { %1865 = vmatpush.bf16.msrb.mxu3 %v2803_v13  ;;  %v2630_v13 = vor.u32 %v2812_v11, %v2627_v5 }
 0x9b1   :  { %v2942_v50 = vpop.eup %2941 }
 0x9b2   :  { %v1710_v46 = vpop.permute.xlu0 %1709  ;;  %v1766_v51 = vmul.f32 %v2942_v50, %v2928_v7 }
 0x9b3   :  { %2578 = vmatmul.msk.bf16.vlgmr.msra.gmra.mxu2 %vm1337_vm12, %v1649_v29  ;;  %1722 = vmatpush.bf16.msrb.mxu0 %v1710_v46  ;;  %v2670_v29 = vor.u32 %v2822_v41, %v2667_v43  ;;  %v2820_v46 = vld [vmem:[#allocation15 + $0x54] sm:$0xf] }
 0x9b4   :  { %v1767_v40 = vpack.c.bf16 %v1766_v51, %v1766_v51  ;;  %1866 = vmatpush.bf16.msrb.mxu3 %v2802_v14  ;;  %v2649_v51 = vld [vmem:[#allocation15 + $0x40] sm:$0xf] }
 0x9b5   :  { %2051 = vmatpush.bf16.msra.mxu1 %v2670_v29  ;;  %v2617_v14 = vld [vmem:[#allocation15] sm:$0xf] }
 0x9bb   :  { %2580 = vmatmul.msk.bf16.vlgmr.msrb.gmra.mxu0 %vm1337_vm12, %v1708_v49  ;;  %v2659_v49 = vld [vmem:[#allocation15 + $0x58] sm:$0xf0] }
 0x9bc   :  { %v2662_v50 = vor.u32 %v2820_v46, %v2659_v49 }
 0x9be   :  { %2052 = vmatpush.bf16.msra.mxu1 %v2662_v50 }
 0x9c3   :  { %2582 = vmatmul.msk.bf16.vlgmr.msrb.gmra.mxu2 %vm1337_vm12, %v1767_v40  ;;  %v2819_v40 = vld [vmem:[#allocation15 + $0x44] sm:$0xf0] }
 0x9e8   :  { %v1426_v52 = vpop.f32.mrf.mxu2 }
 0x9e9   :  { %1431 = vrot.lane.b32.xlu1 %v1426_v52, %s3227_s13  ;;  %v2818_v52 = vld [vmem:[#allocation15 + $0x44] sm:$0xf] }
 0x9f0   :  { %v1428_v54 = vpop.f32.mrf.mxu2  ;;  %v1485_v56 = vpop.f32.mrf.mxu0 }
 0x9f1   :  { %1490 = vrot.lane.b32.xlu2 %v1485_v56, %s3212_s19  ;;  %v2650_v54 = vor.u32 %v2819_v40, %v2649_v51  ;;  %v2651_v56 = vld [vmem:[#allocation15 + $0x48] sm:$0xf0] }
 0x9f8   :  { %v1487_v57 = vpop.f32.mrf.mxu0 }
 0x9f9   :  { %v2654_v57 = vor.u32 %v2818_v52, %v2651_v56 }
 0x9fb   :  { %2053 = vmatpush.bf16.msra.mxu1 %v2654_v57 }
 0xa26   :  { %v1544_v58 = vpop.f32.mrf.mxu2 }
 0xa27   :  { %1549 = vrot.lane.b32.xlu2 %v1544_v58, %s3226_s8  ;;  %v2641_v58 = vld [vmem:[#allocation15 + $0x30] sm:$0xf] }
 0xa28   :  { %v1607_v59 = vpop.f32.mrf.mxu0 }
 0xa29   :  { %1611 = vst.msk [vmem:[#allocation2 + $0x8] sm:$0xff] %vm426_vm0, %v1607_v59  ;;  %v2817_v59 = vld [vmem:[#allocation15 + $0x34] sm:$0xf0] }
 0xa2e   :  { %v1546_v60 = vpop.f32.mrf.mxu2 }
 0xa2f   :  { %v2816_v60 = vld [vmem:[#allocation15 + $0x34] sm:$0xf] }
 0xa30   :  { %v1609_v1 = vpop.f32.mrf.mxu0 }
 0xa31   :  { %v2642_v1 = vor.u32 %v2817_v59, %v2641_v58 }
 0xa36   :  { %v1665_v61 = vpop.f32.mrf.mxu2 }
 0xa37   :  { %1670 = vrot.lane.b32.xlu0 %v1665_v61, %s3227_s13  ;;  %v2643_v61 = vld [vmem:[#allocation15 + $0x38] sm:$0xf0] }
 0xa38   :  { %v1724_v62 = vpop.f32.mrf.mxu0 }
 0xa3e   :  { %v1667_v63 = vpop.f32.mrf.mxu2 }
 0xa3f   :  { %1729 = vrot.lane.b32.xlu0 %v1724_v62, %s3212_s19  ;;  %v2646_v62 = vor.u32 %v2816_v60, %v2643_v61  ;;  %v2633_v63 = vld [vmem:[#allocation15 + $0x20] sm:$0xf]  ;;  %v2865_v60 = vld [vmem:[%s3666_s10] ss:$0 sm:$0xff] }
 0xa40   :  { %v1726_v0 = vpop.f32.mrf.mxu0 }
 0xa41   :  { %v2815_v0 = vld [vmem:[#allocation15 + $0x24] sm:$0xf0]  ;;  %2054 = vmatpush.bf16.msra.mxu1 %v2646_v62 }
 0xa42   :  { %v2634_v18 = vor.u32 %v2815_v0, %v2633_v63 }
 0xa46   :  { %v1783_v2 = vpop.f32.mrf.mxu2 }
 0xa47   :  { %1788 = vrot.lane.b32.xlu0 %v1783_v2, %s3226_s8  ;;  %v2814_v2 = vld [vmem:[#allocation15 + $0x24] sm:$0xf] }
 0xa4b   :  { %v1491_v6 = vpop.permute.xlu2 %1490 }
 0xa4e   :  { %v1785_v3 = vpop.f32.mrf.mxu2 }
 0xa4f   :  { %v2635_v3 = vld [vmem:[#allocation15 + $0x28] sm:$0xf0] }
 0xa50   :  { %v2638_v8 = vor.u32 %v2814_v2, %v2635_v3  ;;  %v2829_v2 = vld [vmem:[#allocation17 + $0x18] sm:$0xff] }
 0xa51   :  { %v2837_v3 = vld [vmem:[#allocation17 + $0x58] sm:$0xff] }
 0xa52   :  { %2055 = vmatpush.bf16.msra.mxu1 %v2638_v8  ;;  %v2834_v8 = vld [vmem:[#allocation17 + $0x40] sm:$0xff] }
 0xa56   :  { %2056 = vmatpush.bf16.msra.mxu1 %v2630_v13 }
 0xa5b   :  { %v1432_v4 = vpop.permute.xlu1 %1431 }
 0xa5c   :  { %1434 = vst.msk [vmem:[#allocation2] sm:$0xff] %vm551_vm4, %v1432_v4 }
 0xa5d   :  { %1493 = vst.msk [vmem:[#allocation2] sm:$0xff] %vm614_vm5, %v1491_v6 }
 0xa81   :  { %v1550_v9 = vpop.permute.xlu2 %1549 }
 0xa82   :  { %1552 = vst.msk [vmem:[#allocation2] sm:$0xff] %vm677_vm6, %v1550_v9  ;;  %v2625_v9 = vld [vmem:[#allocation15 + $0x10] sm:$0xf] }
 0xa83   :  { %v2626_v12 = vor.u32 %v2813_v10, %v2625_v9  ;;  %v1950_v9 = vld [vmem:[%s3668_s12] sm:$0x3] }
 0xa84   :  { %v1952_v5 = vperm.slane %v1950_v9, 0 }
 0xa89   :  { %v1792_v17 = vld [vmem:[#allocation2] sm:$0xff] }
 0xaa9   :  { %v1671_v7 = vpop.permute.xlu0 %1670 }
 0xaaa   :  { %1673 = vst.msk [vmem:[#allocation2 + $0x8] sm:$0xff] %vm551_vm4, %v1671_v7  ;;  %v2811_v7 = vld [vmem:[#allocation15 + $0x4] sm:$0xf0] }
 0xab1   :  { %v1730_v15 = vpop.permute.xlu0 %1729 }
 0xab2   :  { %1732 = vst.msk [vmem:[#allocation2 + $0x8] sm:$0xff] %vm614_vm5, %v1730_v15  ;;  %v2810_v15 = vld [vmem:[#allocation15 + $0x4] sm:$0xf] }
 0xab9   :  { %v1789_v16 = vpop.permute.xlu0 %1788 }
 0xaba   :  { %1791 = vst.msk [vmem:[#allocation2 + $0x8] sm:$0xff] %vm677_vm6, %v1789_v16  ;;  %v2619_v16 = vld [vmem:[#allocation15 + $0x8] sm:$0xf0] }
 0xac1   :  { %v1793_v19 = vld [vmem:[#allocation2 + $0x8] sm:$0xff] }
 0xac2   :  { %v1794_v20 = vpack.c.bf16 %v1793_v19, %v1792_v17 }
 0xac4   :  { %1867 = vmatmul.bf16.vlgmr.msrb.gmra.mxu3 %v1794_v20 }
 0xb47   :  { %v1868_v21 = vpop.f32.mrf.mxu3 }
 0xb48   :  { %v1873_v22 = vadd.f32 %v1868_v21, %v3511_v55  ;;  %v2618_v21 = vor.u32 %v2811_v7, %v2617_v14 }
 0xb4a   :  { %1877 = vadd.xlane.f32.xlu2 %v1873_v22 }
 0xb4f   :  { %v1870_v23 = vpop.f32.mrf.mxu3 }
 0xb50   :  { %v1874_v24 = vadd.f32 %v1870_v23, %v3513_v53  ;;  %v2673_v53 = vld [vmem:[#allocation15 + $0x70] sm:$0xf]  ;;  %v2622_v23 = vor.u32 %v2810_v15, %v2619_v16 }
 0xb51   :  { %v2674_v35 = vor.u32 %v2825_v33, %v2673_v53  ;;  %v2840_v53 = vld [vmem:[#allocation17 + $0x70] sm:$0xff] }
 0xb52   :  { %1879 = vadd.xlane.f32.xlu1 %v1874_v24  ;;  %2057 = vmatpush.bf16.msra.mxu1 %v2622_v23 }
 0xb53   :  { %2036 = vmatpush.bf16.msra.mxu0 %v2674_v35 }
 0xb57   :  { %2037 = vmatpush.bf16.msra.mxu0 %v2666_v42 }
 0xb5b   :  { %2038 = vmatpush.bf16.msra.mxu0 %v2658_v48 }
 0xb5f   :  { %2039 = vmatpush.bf16.msra.mxu0 %v2650_v54  ;;  %v2864_v54 = vld [vmem:[%s3665_s9] ss:$0 sm:$0xff] }
 0xb63   :  { %2040 = vmatpush.bf16.msra.mxu0 %v2642_v1 }
 0xb67   :  { %2041 = vmatpush.bf16.msra.mxu0 %v2634_v18  ;;  %v2826_v18 = vld [vmem:[#allocation17] sm:$0xff] }
 0xb6b   :  { %2042 = vmatpush.bf16.msra.mxu0 %v2626_v12  ;;  %v1953_v12 = vperm.slane %v1950_v9, 1 }
 0xb6f   :  { %2043 = vmatpush.bf16.msra.mxu0 %v2618_v21 }
 0xbbd   :  { %v1878_v25 = vpop.xlane.xlu2 %1877 }
 0xbbe   :  { %v1881_v26 = vmul.f32 %v1878_v25, %v3482_v47 }
 0xbc0   :  { %v3619_v27 = vsub.f32 %v1873_v22, %v1881_v26  ;;  %v2833_v26 = vld [vmem:[#allocation17 + $0x38] sm:$0xff] }
 0xbc1   :  { %2202 = vmatpush.bf16.msra.mxu2 %v2833_v26 }
 0xbc2   :  { %v1885_v28 = vmul.f32 %v3619_v27, %v3619_v27  ;;  %v1920_v57 = vmul.f32 %v2864_v54, %v3619_v27  ;;  %v2836_v27 = vld [vmem:[#allocation17 + $0x50] sm:$0xff] }
 0xbc4   :  { %1887 = vadd.xlane.f32.xlu0 %v1885_v28  ;;  %v2841_v28 = vld [vmem:[#allocation17 + $0x78] sm:$0xff] }
 0xbc5   :  { %v1880_v30 = vpop.xlane.xlu1 %1879  ;;  %2216 = vmatpush.bf16.msra.mxu3 %v2841_v28 }
 0xbc6   :  { %v1882_v31 = vmul.f32 %v1880_v30, %v3482_v47 }
 0xbc8   :  { %v3624_v32 = vsub.f32 %v1874_v24, %v1882_v31 }
 0xbc9   :  { %2217 = vmatpush.bf16.msra.mxu3 %v2840_v53 }
 0xbca   :  { %v1886_v55 = vmul.f32 %v3624_v32, %v3624_v32  ;;  %v1921_v58 = vmul.f32 %v2864_v54, %v3624_v32  ;;  %v2827_v32 = vld [vmem:[#allocation17 + $0x8] sm:$0xff] }
 0xbcc   :  { %1889 = vadd.xlane.f32.xlu2 %v1886_v55  ;;  %v2832_v55 = vld [vmem:[#allocation17 + $0x30] sm:$0xff] }
 0xbcd   :  { %2203 = vmatpush.bf16.msra.mxu2 %v2832_v55  ;;  %2218 = vmatpush.bf16.msra.mxu3 %v2839_v39 }
 0xbd1   :  { %2204 = vmatpush.bf16.msra.mxu2 %v2831_v38  ;;  %2219 = vmatpush.bf16.msra.mxu3 %v2838_v45 }
 0xbd5   :  { %2205 = vmatpush.bf16.msra.mxu2 %v2830_v44  ;;  %2220 = vmatpush.bf16.msra.mxu3 %v2837_v3  ;;  %v2867_v3 = vld [vmem:[%s3671_s15] ss:$0 sm:$0xff]  ;;  %s3230_s15 = smov [#allocation18]  }
 0xbd6   :  { %s2296_s26 = sshll.u32 %s3230_s15, 4  ;;  %s2297_s26 = int_to_ptr.vmem [resolvable:$true] %s2296_s26 }
 0xbd9   :  { %2206 = vmatpush.bf16.msra.mxu2 %v2829_v2  ;;  %2221 = vmatpush.bf16.msra.mxu3 %v2836_v27 }
 0xc37   :  { %v1888_v4 = vpop.xlane.xlu0 %1887 }
 0xc38   :  { %v1891_v6 = vmul.f32 0.007874016, %v1888_v4  ;;  %v2828_v4 = vld [vmem:[#allocation17 + $0x10] sm:$0xff] }
 0xc39   :  { %2207 = vmatpush.bf16.msra.mxu2 %v2828_v4 }
 0xc3a   :  { %2943 = vrsqrt.f32 %v1891_v6  ;;  %vm1900_vm13 = vcmp.eq.f32.partialorder %v1891_v6, inf  ;;  %v1903_v37 = vand.u32 2147483648, %v1891_v6  ;;  %vm1902_vm14 = vcmp.eq.f32.partialorder %v1891_v6, 0.0 }
 0xc3d   :  { %2208 = vmatpush.bf16.msra.mxu2 %v2827_v32 }
 0xc3f   :  { %v1890_v17 = vpop.xlane.xlu2 %1889 }
 0xc40   :  { %v2944_v19 = vpop.eup %2943  ;;  %v1892_v20 = vmul.f32 0.007874016, %v1890_v17 }
 0xc41   :  { %v1894_v22 = vmul.f32 %v2944_v19, %v1891_v6  ;;  %2209 = vmatpush.bf16.msra.mxu2 %v2826_v18 }
 0xc42   :  { %2945 = vrsqrt.f32 %v1892_v20  ;;  %vm1912_vm15 = vcmp.eq.f32.partialorder %v1892_v20, inf  ;;  %v1915_v50 = vand.u32 2147483648, %v1892_v20  ;;  %vm1914_vm0 = vcmp.eq.f32.partialorder %v1892_v20, 0.0 }
 0xc43   :  { %v1895_v24 = vmul.f32 %v2944_v19, %v1894_v22 }
 0xc45   :  { %v1896_v25 = vmul.f32 0.5, %v1895_v24 }
 0xc47   :  { %v1897_v30 = vsub.f32 1.5, %v1896_v25  ;;  %v2866_v25 = vld [vmem:[%s3670_s14] ss:$0 sm:$0xff] }
 0xc48   :  { %v2946_v31 = vpop.eup %2945 }
 0xc49   :  { %v1898_v33 = vmul.f32 %v2944_v19, %v1897_v30  ;;  %v1906_v34 = vmul.f32 %v2946_v31, %v1892_v20 }
 0xc4b   :  { %v1899_v35 = vmul.f32 %v1898_v33, %v1891_v6  ;;  %v1907_v36 = vmul.f32 %v2946_v31, %v1906_v34 }
 0xc4d   :  { %v1908_v41 = vmul.f32 0.5, %v1907_v36  ;;  %v1901_v42 = vsel %vm1900_vm13, %v1891_v6, %v1899_v35  ;;  %v2835_v6 = vld [vmem:[#allocation17 + $0x48] sm:$0xff] }
 0xc4e   :  { %v1904_v43 = vsel %vm1902_vm14, %v1903_v37, %v1901_v42  ;;  %2222 = vmatpush.bf16.msra.mxu3 %v2835_v6 }
 0xc4f   :  { %v1909_v29 = vsub.f32 1.5, %v1908_v41  ;;  %v1922_v48 = vadd.f32 1e-06, %v1904_v43 }
 0xc51   :  { %v1910_v46 = vmul.f32 %v2946_v31, %v1909_v29  ;;  %2947 = vrcp.f32 %v1922_v48 }
 0xc52   :  { %2223 = vmatpush.bf16.msra.mxu3 %v2834_v8  ;;  %v2868_v8 = vld [vmem:[%s3672_s16] ss:$0 sm:$0xff] }
 0xc53   :  { %v1911_v49 = vmul.f32 %v1910_v46, %v1892_v20 }
 0xc55   :  { %v1913_v51 = vsel %vm1912_vm15, %v1892_v20, %v1911_v49 }
 0xc56   :  { %v1916_v40 = vsel %vm1914_vm0, %v1915_v50, %v1913_v51 }
 0xc57   :  { %v1923_v52 = vadd.f32 1e-06, %v1916_v40  ;;  %v2948_v56 = vpop.eup %2947 }
 0xc58   :  { %v1926_v59 = vmul.f32 %v2948_v56, %v1920_v57 }
 0xc59   :  { %2949 = vrcp.f32 %v1923_v52 }
 0xc5a   :  { %v1931_v62 = vadd.f32 %v2865_v60, %v1926_v59 }
 0xc5f   :  { %v2950_v1 = vpop.eup %2949 }
 0xc60   :  { %v1927_v61 = vmul.f32 %v2950_v1, %v1921_v58 }
 0xc62   :  { %v1932_v63 = vadd.f32 %v2865_v60, %v1927_v61 }
 0xc64   :  { %v1933_v0 = vpack.c.bf16 %v1932_v63, %v1931_v62 }
 0xc66   :  { %2044 = vmatmul.bf16.vlgmr.msra.gmra.mxu0 %v1933_v0  ;;  %2058 = vmatmul.bf16.vlgmr.msra.gmra.mxu1 %v1933_v0 }
 0xce3   :  { %v2045_v10 = vpop.f32.mrf.mxu0  ;;  %v2059_v11 = vpop.f32.mrf.mxu1 }
 0xce4   :  { %v2046_v13 = vadd.f32 %v2045_v10, %v1952_v5  ;;  %v2060_v14 = vadd.f32 %v2059_v11, %v1953_v12 }
 0xce6   :  { %v2064_v19 = vmax.f32 %v2046_v13, 0.0  ;;  %v2065_v20 = vmax.f32 %v2060_v14, 0.0 }
 0xceb   :  { %v2047_v7 = vpop.f32.mrf.mxu0  ;;  %v2061_v15 = vpop.f32.mrf.mxu1 }
 0xcec   :  { %v2048_v16 = vadd.f32 %v2047_v7, %v1952_v5  ;;  %v2062_v17 = vadd.f32 %v2061_v15, %v1953_v12 }
 0xcee   :  { %v2066_v21 = vmax.f32 %v2048_v16, 0.0  ;;  %v2067_v22 = vmax.f32 %v2062_v17, 0.0 }
 0xcf0   :  { %v2068_v23 = vpack.c.bf16 %v2066_v21, %v2064_v19  ;;  %v2069_v24 = vpack.c.bf16 %v2067_v22, %v2065_v20 }
 0xcf2   :  { %2210 = vmatmul.bf16.vlgmr.msra.gmra.mxu2 %v2068_v23  ;;  %2224 = vmatmul.bf16.vlgmr.msra.gmra.mxu3 %v2069_v24 }
 0xd75   :  { %v2211_v26 = vpop.f32.mrf.mxu2  ;;  %v2225_v28 = vpop.f32.mrf.mxu3 }
 0xd76   :  { %v2212_v30 = vadd.f32 %v2866_v25, %v2211_v26 }
 0xd78   :  { %v2226_v31 = vadd.f32 %v2225_v28, %v2212_v30 }
 0xd7a   :  { %v2230_v55 = vadd.f32 %v2226_v31, %v1931_v62 }
 0xd7c   :  { %2234 = vadd.xlane.f32.xlu1 %v2230_v55 }
 0xd7d   :  { %v2213_v53 = vpop.f32.mrf.mxu2  ;;  %v2227_v34 = vpop.f32.mrf.mxu3 }
 0xd7e   :  { %v2214_v33 = vadd.f32 %v2866_v25, %v2213_v53 }
 0xd80   :  { %v2228_v35 = vadd.f32 %v2227_v34, %v2214_v33 }
 0xd82   :  { %v2231_v36 = vadd.f32 %v2228_v35, %v1932_v63 }
 0xd84   :  { %2236 = vadd.xlane.f32.xlu0 %v2231_v36 }
 0xdef   :  { %v2235_v37 = vpop.xlane.xlu1 %2234 }
 0xdf0   :  { %v2238_v38 = vmul.f32 %v2235_v37, %v3482_v47 }
 0xdf2   :  { %v2240_v39 = vsub.f32 %v2230_v55, %v2238_v38 }
 0xdf4   :  { %v2242_v41 = vmul.f32 %v2240_v39, %v2240_v39  ;;  %v2277_v6 = vmul.f32 %v2867_v3, %v2240_v39 }
 0xdf6   :  { %2244 = vadd.xlane.f32.xlu2 %v2242_v41 }
 0xdf7   :  { %v2237_v42 = vpop.xlane.xlu0 %2236 }
 0xdf8   :  { %v2239_v43 = vmul.f32 %v2237_v42, %v3482_v47 }
 0xdfa   :  { %v2241_v29 = vsub.f32 %v2231_v36, %v2239_v43 }
 0xdfc   :  { %v2243_v44 = vmul.f32 %v2241_v29, %v2241_v29  ;;  %v2278_v12 = vmul.f32 %v2867_v3, %v2241_v29 }
 0xdfe   :  { %2246 = vadd.xlane.f32.xlu1 %v2243_v44 }
 0xe69   :  { %v2245_v45 = vpop.xlane.xlu2 %2244 }
 0xe6a   :  { %v2248_v46 = vmul.f32 0.007874016, %v2245_v45 }
 0xe6c   :  { %2951 = vrsqrt.f32 %v2248_v46  ;;  %vm2257_vm1 = vcmp.eq.f32.partialorder %v2248_v46, inf  ;;  %v2260_v47 = vand.u32 2147483648, %v2248_v46  ;;  %vm2259_vm2 = vcmp.eq.f32.partialorder %v2248_v46, 0.0 }
 0xe71   :  { %v2247_v48 = vpop.xlane.xlu1 %2246 }
 0xe72   :  { %v2952_v49 = vpop.eup %2951  ;;  %v2249_v50 = vmul.f32 0.007874016, %v2247_v48 }
 0xe73   :  { %v2251_v51 = vmul.f32 %v2952_v49, %v2248_v46 }
 0xe74   :  { %2953 = vrsqrt.f32 %v2249_v50  ;;  %vm2269_vm3 = vcmp.eq.f32.partialorder %v2249_v50, inf  ;;  %v2272_v27 = vand.u32 2147483648, %v2249_v50  ;;  %vm2271_vm4 = vcmp.eq.f32.partialorder %v2249_v50, 0.0 }
 0xe75   :  { %v2252_v40 = vmul.f32 %v2952_v49, %v2251_v51 }
 0xe77   :  { %v2253_v52 = vmul.f32 0.5, %v2252_v40 }
 0xe79   :  { %v2254_v54 = vsub.f32 1.5, %v2253_v52 }
 0xe7a   :  { %v2954_v56 = vpop.eup %2953 }
 0xe7b   :  { %v2263_v57 = vmul.f32 %v2954_v56, %v2249_v50  ;;  %v2255_v58 = vmul.f32 %v2952_v49, %v2254_v54 }
 0xe7d   :  { %v2264_v59 = vmul.f32 %v2954_v56, %v2263_v57  ;;  %v2256_v60 = vmul.f32 %v2255_v58, %v2248_v46 }
 0xe7f   :  { %v2265_v1 = vmul.f32 0.5, %v2264_v59  ;;  %v2258_v61 = vsel %vm2257_vm1, %v2248_v46, %v2256_v60 }
 0xe80   :  { %v2261_v62 = vsel %vm2259_vm2, %v2260_v47, %v2258_v61 }
 0xe81   :  { %v2266_v63 = vsub.f32 1.5, %v2265_v1  ;;  %v2279_v0 = vadd.f32 1e-06, %v2261_v62 }
 0xe83   :  { %v2267_v2 = vmul.f32 %v2954_v56, %v2266_v63  ;;  %2955 = vrcp.f32 %v2279_v0 }
 0xe85   :  { %v2268_v4 = vmul.f32 %v2267_v2, %v2249_v50 }
 0xe87   :  { %v2270_v32 = vsel %vm2269_vm3, %v2249_v50, %v2268_v4 }
 0xe88   :  { %v2273_v18 = vsel %vm2271_vm4, %v2272_v27, %v2270_v32 }
 0xe89   :  { %v2956_v9 = vpop.eup %2955  ;;  %v2280_v10 = vadd.f32 1e-06, %v2273_v18 }
 0xe8a   :  { %v2283_v11 = vmul.f32 %v2956_v9, %v2277_v6 }
 0xe8b   :  { %2957 = vrcp.f32 %v2280_v10 }
 0xe8c   :  { %v2288_v5 = vadd.f32 %v2868_v8, %v2283_v11 }
 0xe8e   :  { %2290 = vst [vmem:[#allocation18] sm:$0xff] %v2288_v5 }
 0xe91   :  { %v2958_v13 = vpop.eup %2957 }
 0xe92   :  { %v2284_v14 = vmul.f32 %v2958_v13, %v2278_v12 }
 0xe94   :  { %v2289_v7 = vadd.f32 %v2868_v8, %v2284_v14 }
 0xe96   :  { %2291 = vst [vmem:[#allocation18 + $0x8] sm:$0xff] %v2289_v7 }
 0xe97   :  { %2304 = dma.vmem_to_hbm [thread:$0]  %s2297_s26, 256, %s2299_s3, [#allocation5], %s3216_s29, %s3216_s29, %s3217_s0  }
 0xe98   :  { %3209 = dma.done.wait [#allocation5], 256  }
 0xe99   :  { %3210 = vsyncadd [#allocation5], 4294967040 }
 0xe9a   :  { %2309 = vsyncpa [#allocation4], 1 }
 0xe9b   :  { %2310 = vsyncpa [#allocation7], 1 }
 0xe9c   :  { %2311 = vsyncpa [#allocation10], 1 }
 0xe9d   :  { %2312 = vsyncpa [#allocation13], 1 }
 0xe9e   :  { %2313 = vsyncpa [#allocation16], 1 }
 0xe9f   :  { %2314 = vsyncpa [#allocation5], 1 }

</bundles_post_ra>
